<compile_context>
chip_gen: v5e
topology: v5e:2x2
jax: 0.10.0
libtpu: 0.0.40
codegen_flags: <defaults>
</compile_context>

<pallas_src>
import functools

import numpy as np
import jax
import jax.numpy as jnp
from jax import lax
from jax.experimental import pallas as pl
from jax.experimental.pallas import tpu as pltpu

# ----- Config (matches the PyTorch Config) -----------------------------------
T0, TBAR, TPOINTS = 0.0, 2.0, 10
STEP_SIZE = 0.1                      # odeint options=dict(step_size=0.1)
INPUTSIZE = 3
OUTPUTSIZE = 2
H1, H2, H3 = 256, 1024, 128          # w1 -> 256, w2 -> 1024, w3 -> 128


# ----- Static RK4 integration / interpolation schedule (torchdiffeq semantics)
def _build_integration_schedule():
    t_out = np.linspace(T0, TBAR, TPOINTS)                      # like torch.tensor(np.linspace)
    niters = int(np.ceil((TBAR - T0) / STEP_SIZE + 1))          # 21 grid points
    grid = np.arange(niters, dtype=np.float64) * STEP_SIZE + T0
    grid[-1] = TBAR
    sched = []                                                  # per step: (dt, [(out_idx, alpha), ...])
    j = 1                                                       # t_out[0] -> y0 (all zeros)
    for i in range(len(grid) - 1):
        t0, t1 = grid[i], grid[i + 1]
        entries = []
        while j < len(t_out) and t1 >= t_out[j]:
            entries.append((j, float((t_out[j] - t0) / (t1 - t0))))
            j += 1
        sched.append((float(t1 - t0), entries))
    return sched


_SCHED = _build_integration_schedule()
NSTEPS = len(_SCHED)                  # 20 RK4 steps

# Flattened static per-step tables (each 0.1s step contains at most one output
# time, since output spacing 2/9 > 0.1; asserted below).
_DTS = np.array([dt for dt, _ in _SCHED], np.float32)
_JIDX = np.zeros(NSTEPS, np.int32)
_ALPHA = np.zeros(NSTEPS, np.float32)
_HAS = np.zeros(NSTEPS, np.float32)
for _i, (_dt, _entries) in enumerate(_SCHED):
    assert len(_entries) <= 1
    if _entries:
        _j, _a = _entries[0]
        _JIDX[_i] = _j
        _ALPHA[_i] = _a
        _HAS[_i] = 1.0


def _pool_coeffs(wpool):
    """Per-RK4-step pooling FMA constants from the softmaxed pooling weights."""
    w = wpool[jnp.asarray(_JIDX)]
    c_old = jnp.asarray(_HAS) * (1.0 - jnp.asarray(_ALPHA)) * w
    c_new = jnp.asarray(_HAS) * jnp.asarray(_ALPHA) * w
    return c_old.astype(jnp.float32), c_new.astype(jnp.float32)


def _default_compute_dtype():
    """bf16 elementwise only on generations with bf16 VPU (v6e / v7x)."""
    try:
        kind = jax.devices()[0].device_kind.lower()
    except Exception:
        return jnp.float32
    if ("v6" in kind) or ("v7" in kind) or ("tpu7" in kind):
        return jnp.bfloat16
    return jnp.float32


# ----- Pallas kernel ----------------------------------------------------------
def _nmode_kernel(dts_ref, cold_ref, cnew_ref,     # (NSTEPS,) f32, SMEM
                  x_ref,                           # (bm, N, 3)
                  w1_ref, b1_ref,                  # (3, 256), (1, 256)
                  w2_ref, b2_ref,                  # (256, 1024), (1, 1024)
                  w3a_ref, w3b_ref, b3_ref,        # (1024, 128), (256, 128), (1, 128)
                  wo_ref, bo_ref,                  # (128, 2), (1, 2)
                  o_ref,                           # (bm, N, 2)
                  *, bm, n, compute_dtype):
    m = bm * n
    # Leading-dims-only reshapes (sublane dim) are free views on TPU.
    x2d = x_ref[...].reshape(m, INPUTSIZE)                              # (M, 3)

    # feature = relu(w1(x)) — K=3: keep off the MXU, 3 broadcast FMAs on the VPU.
    w1 = w1_ref[...]                                                    # (3, 256)
    pre = b1_ref[...]
    for c in range(INPUTSIZE):
        pre = pre + x2d[:, c:c + 1] * w1[c:c + 1, :]
    feature = jnp.maximum(pre, 0.0)                                     # (M, 256) f32
    gamma_c = feature.astype(compute_dtype)

    # dt * f(p) with f(p) = -p + sin(p + gamma)^2.  sin is evaluated in f32
    # (portable across v5e/v6e/v7x); state / stage algebra is in compute_dtype.
    def fdt(p, dt):
        z = (p + gamma_c).astype(jnp.float32)
        s = jnp.sin(z)
        d = s * s - p.astype(jnp.float32)
        return (dt * d).astype(compute_dtype)

    # Fixed-grid RK4 (3/8-rule, torchdiffeq 'rk4'), incremental stage
    # accumulation, fused with the softmax-weighted time pooling (f32 acc).
    def rk4_body(i, carry):
        p, acc = carry
        dt = dts_ref[i]                 # f32 scalars from SMEM
        c_old = cold_ref[i]
        c_new = cnew_ref[i]
        l1 = fdt(p, dt)                 # l_i = dt * k_i (compute_dtype)
        l1_3 = l1 * (1.0 / 3.0)
        ksum = l1
        l2 = fdt(p + l1_3, dt)
        ksum = ksum + 3.0 * l2
        l3 = fdt(p + l2 - l1_3, dt)
        ksum = ksum + 3.0 * l3
        l4 = fdt(p + l1 - l2 + l3, dt)
        ksum = ksum + l4
        p_new = p + 0.125 * ksum
        acc = acc + c_old * p + c_new * p_new      # promotes to f32
        return p_new, acc

    p0 = jnp.zeros((m, H1), compute_dtype)         # y0 = zeros; yt[0] contributes 0
    acc0 = jnp.zeros((m, H1), jnp.float32)         # pooling accumulator stays f32
    _, acc = lax.fori_loop(0, NSTEPS, rk4_body, (p0, acc0))

    # x = relu(w2(feature)); per-batch-element max over the N samples.
    h2 = jnp.maximum(
        jnp.dot(feature, w2_ref[...], preferred_element_type=jnp.float32) + b2_ref[...],
        0.0)                                                            # (M, 1024)
    mvec = jnp.max(h2.reshape(bm, n, H2), axis=1)                       # (bm, 1024)

    # Hoisted: (bm,1024)@(1024,128) ONCE per batch element, then broadcast-add.
    mh3 = jnp.dot(mvec, w3a_ref[...], preferred_element_type=jnp.float32)   # (bm, 128)
    mh3_rows = jnp.broadcast_to(mh3[:, None, :], (bm, n, H3)).reshape(m, H3)

    # cat((max-repeated, yt), dim=2) @ w3^T  ==  max @ w3a + yt @ w3b
    h3 = jnp.maximum(
        jnp.dot(acc, w3b_ref[...], preferred_element_type=jnp.float32)
        + mh3_rows + b3_ref[...],
        0.0)                                                            # (M, 128)

    out = jnp.dot(h3, wo_ref[...], preferred_element_type=jnp.float32) + bo_ref[...]
    o_ref[...] = out.reshape(bm, n, OUTPUTSIZE)


# ----- Wrapper ----------------------------------------------------------------
def nmode_forward(x, params, *, batch_block=None, compute_dtype=None,
                  vmem_limit_bytes=40 * 1024 * 1024):
    (w1t, b1, w2t, b2, w3at, w3bt, b3, wot, bo, wpool) = params
    B, N, _ = x.shape

    if compute_dtype is None:
        compute_dtype = _default_compute_dtype()

    if batch_block is None:
        # ~512 rows per grid step keeps the working set (~10 MiB) well under the
        # explicit 40 MiB VMEM limit on every generation (v5e default is 16 MiB,
        # hence the explicit limit below).
        bm = max(1, min(B, 512 // max(N, 1)))
        # Guarantee >= 2 grid steps whenever B >= 2 so the "parallel" axis
        # actually spans both TensorCores on v7x (single-TC chips unaffected).
        if B >= 2:
            bm = min(bm, (B + 1) // 2)
    else:
        bm = int(batch_block)
    bm = max(1, min(bm, B))

    Bp = ((B + bm - 1) // bm) * bm
    if Bp != B:
        # Padded batch elements are fully independent (max is per-batch-element),
        # computed on zeros and sliced off below.
        x = jnp.pad(x, ((0, Bp - B), (0, 0), (0, 0)))

    c_old, c_new = _pool_coeffs(wpool)
    dts = jnp.asarray(_DTS)

    kernel = functools.partial(_nmode_kernel, bm=bm, n=N, compute_dtype=compute_dtype)

    flops = int(
        B * N * (2 * INPUTSIZE * H1 + 2 * H1 * H2 + 2 * H1 * H3
                 + 2 * H3 * OUTPUTSIZE + NSTEPS * 40 * H1)
        + B * 2 * H2 * H3)
    transcendentals = int(B * N * H1 * NSTEPS * 4)
    bytes_accessed = int(4 * (x.size + Bp * N * OUTPUTSIZE
                              + w1t.size + b1.size + w2t.size + b2.size
                              + w3at.size + w3bt.size + b3.size + wot.size + bo.size))

    out = pl.pallas_call(
        kernel,
        out_shape=jax.ShapeDtypeStruct((Bp, N, OUTPUTSIZE), jnp.float32),
        grid=(Bp // bm,),
        in_specs=[
            pl.BlockSpec(memory_space=pltpu.MemorySpace.SMEM),            # dt per step
            pl.BlockSpec(memory_space=pltpu.MemorySpace.SMEM),            # c_old per step
            pl.BlockSpec(memory_space=pltpu.MemorySpace.SMEM),            # c_new per step
            pl.BlockSpec((bm, N, INPUTSIZE), lambda b: (b, 0, 0)),        # x block
            pl.BlockSpec((INPUTSIZE, H1), lambda b: (0, 0)),              # w1^T
            pl.BlockSpec((1, H1), lambda b: (0, 0)),                      # b1
            pl.BlockSpec((H1, H2), lambda b: (0, 0)),                     # w2^T
            pl.BlockSpec((1, H2), lambda b: (0, 0)),                      # b2
            pl.BlockSpec((H2, H3), lambda b: (0, 0)),                     # w3^T (max part)
            pl.BlockSpec((H1, H3), lambda b: (0, 0)),                     # w3^T (yt part)
            pl.BlockSpec((1, H3), lambda b: (0, 0)),                      # b3
            pl.BlockSpec((H3, OUTPUTSIZE), lambda b: (0, 0)),             # out^T
            pl.BlockSpec((1, OUTPUTSIZE), lambda b: (0, 0)),              # out bias
        ],
        out_specs=pl.BlockSpec((bm, N, OUTPUTSIZE), lambda b: (b, 0, 0)),
        compiler_params=pltpu.CompilerParams(
            dimension_semantics=("parallel",),                           # independent per step
            vmem_limit_bytes=int(vmem_limit_bytes)),
        cost_estimate=pl.CostEstimate(
            flops=flops, transcendentals=transcendentals,
            bytes_accessed=bytes_accessed),
    )(dts, c_old, c_new, x, w1t, b1, w2t, b2, w3at, w3bt, b3, wot, bo)
    return out[:B]


# ----- Pure-JAX reference (same math, for validation) --------------------------
def nmode_reference(x, params):
    (w1t, b1, w2t, b2, w3at, w3bt, b3, wot, bo, wpool) = params
    feature = jax.nn.relu(x @ w1t + b1)                     # (B, N, 256)
    gamma = feature

    def f(p):
        s = jnp.sin(p + gamma)
        return -p + s * s

    p = jnp.zeros_like(feature)
    acc = jnp.zeros_like(feature)
    for dt, entries in _SCHED:
        k1 = f(p)
        k2 = f(p + dt * k1 / 3.0)
        k3 = f(p + dt * (k2 - k1 / 3.0))
        k4 = f(p + dt * (k1 - k2 + k3))
        p_new = p + (k1 + 3.0 * (k2 + k3) + k4) * (dt * 0.125)
        for j, alpha in entries:
            acc = acc + wpool[j] * ((1.0 - alpha) * p + alpha * p_new)
        p = p_new

    h2 = jax.nn.relu(feature @ w2t + b2)
    m = jnp.broadcast_to(jnp.max(h2, axis=1, keepdims=True), h2.shape)
    h3 = jax.nn.relu(m @ w3at + acc @ w3bt + b3)
    return h3 @ wot + bo


# ----- Main --------------------------------------------------------------------
if __name__ == "__main__":
    key = jax.random.PRNGKey(0)
    ks = jax.random.split(key, 10)

    def init_linear(kw, kb, fan_in, fan_out):
        # deterministic init mimicking torch.nn.Linear default U(-1/sqrt(fan_in), 1/sqrt(fan_in))
        bound = 1.0 / np.sqrt(fan_in)
        w = jax.random.uniform(kw, (fan_out, fan_in), jnp.float32, -bound, bound)
        b = jax.random.uniform(kb, (fan_out,), jnp.float32, -bound, bound)
        return w, b

    w1, b1 = init_linear(ks[0], ks[1], INPUTSIZE, H1)
    w2, b2 = init_linear(ks[2], ks[3], H1, H2)
    w3, b3 = init_linear(ks[4], ks[5], H2 + H1, H3)          # Linear(1024 + 256, 128)
    wo, bo = init_linear(ks[6], ks[7], H3, OUTPUTSIZE)
    wpool = jax.nn.softmax(jnp.ones((TPOINTS,), jnp.float32))  # WeightedAveragePooling(ones(10))

    params = (
        w1.T, b1.reshape(1, -1),
        w2.T, b2.reshape(1, -1),
        w3[:, :H2].T, w3[:, H2:].T, b3.reshape(1, -1),       # split cat([max_x, yt]) @ w3^T
        wo.T, bo.reshape(1, -1),
        wpool,
    )

    # --- test 1: small shapes, f32 path; heuristic gives grid=2 (both v7x TCs) --
    B, N = 2, 8
    x = jax.random.normal(ks[8], (B, N, INPUTSIZE), jnp.float32)
    out = jax.block_until_ready(nmode_forward(x, params, compute_dtype=jnp.float32))
    assert out.shape == (B, N, OUTPUTSIZE) and out.dtype == jnp.float32
    ref = jax.block_until_ready(nmode_reference(x, params))
    np.testing.assert_allclose(np.asarray(out), np.asarray(ref), rtol=1e-3, atol=1e-3)

    # --- test 2: multi-step grid + batch padding, f32 path ---------------------
    B2, N2 = 5, 16
    x2 = jax.random.normal(ks[9], (B2, N2, INPUTSIZE), jnp.float32)
    out2 = jax.block_until_ready(
        nmode_forward(x2, params, batch_block=2, compute_dtype=jnp.float32))  # grid=3, pad B to 6
    ref2 = jax.block_until_ready(nmode_reference(x2, params))
    np.testing.assert_allclose(np.asarray(out2), np.asarray(ref2), rtol=1e-3, atol=1e-3)

    # --- test 3: auto compute dtype (bf16 RK4 state on v6e/v7x, f32 elsewhere) --
    out3 = jax.block_until_ready(nmode_forward(x2, params))
    np.testing.assert_allclose(np.asarray(out3), np.asarray(ref2), rtol=5e-2, atol=5e-2)

    print("KERNEL_OK")
</pallas_src>

<mosaic_0001>
module attributes {stable_mosaic.version = 11 : i64} {
  func.func @_nmode_kernel(%arg0: i32, %arg1: memref<20xf32, #tpu.memory_space<smem>>, %arg2: memref<20xf32, #tpu.memory_space<smem>>, %arg3: memref<20xf32, #tpu.memory_space<smem>>, %arg4: memref<1x8x3xf32, #tpu.memory_space<vmem>>, %arg5: memref<3x256xf32, #tpu.memory_space<vmem>>, %arg6: memref<1x256xf32, #tpu.memory_space<vmem>>, %arg7: memref<256x1024xf32, #tpu.memory_space<vmem>>, %arg8: memref<1x1024xf32, #tpu.memory_space<vmem>>, %arg9: memref<1024x128xf32, #tpu.memory_space<vmem>>, %arg10: memref<256x128xf32, #tpu.memory_space<vmem>>, %arg11: memref<1x128xf32, #tpu.memory_space<vmem>>, %arg12: memref<128x2xf32, #tpu.memory_space<vmem>>, %arg13: memref<1x2xf32, #tpu.memory_space<vmem>>, %arg14: memref<1x8x2xf32, #tpu.memory_space<vmem>>) attributes {dimension_semantics = [#tpu.dimension_semantics<parallel>], iteration_bounds = array<i64: 2>, scalar_prefetch = 0 : i64, scratch_operands = 0 : i64, tpu.core_type = #tpu.core_type<tc>, window_params = [{transform_indices = @transform_0, window_bounds = array<i64: 20>}, {transform_indices = @transform_1, window_bounds = array<i64: 20>}, {transform_indices = @transform_2, window_bounds = array<i64: 20>}, {transform_indices = @transform_3, window_bounds = array<i64: 1, 8, 3>}, {pipeline_mode = #tpu.pipeline_mode<synchronous>, transform_indices = @transform_4, window_bounds = array<i64: 3, 256>}, {pipeline_mode = #tpu.pipeline_mode<synchronous>, transform_indices = @transform_5, window_bounds = array<i64: 1, 256>}, {pipeline_mode = #tpu.pipeline_mode<synchronous>, transform_indices = @transform_6, window_bounds = array<i64: 256, 1024>}, {pipeline_mode = #tpu.pipeline_mode<synchronous>, transform_indices = @transform_7, window_bounds = array<i64: 1, 1024>}, {pipeline_mode = #tpu.pipeline_mode<synchronous>, transform_indices = @transform_8, window_bounds = array<i64: 1024, 128>}, {pipeline_mode = #tpu.pipeline_mode<synchronous>, transform_indices = @transform_9, window_bounds = array<i64: 256, 128>}, {pipeline_mode = #tpu.pipeline_mode<synchronous>, transform_indices = @transform_10, window_bounds = array<i64: 1, 128>}, {pipeline_mode = #tpu.pipeline_mode<synchronous>, transform_indices = @transform_11, window_bounds = array<i64: 128, 2>}, {pipeline_mode = #tpu.pipeline_mode<synchronous>, transform_indices = @transform_12, window_bounds = array<i64: 1, 2>}, {transform_indices = @transform_13, window_bounds = array<i64: 1, 8, 2>}]} {
    %c0 = arith.constant 0 : index
    %c0_0 = arith.constant 0 : index
    %c0_1 = arith.constant 0 : index
    %0 = vector.load %arg4[%c0, %c0_0, %c0_1] : memref<1x8x3xf32, #tpu.memory_space<vmem>>, vector<1x8x3xf32>
    %1 = vector.shape_cast %0 : vector<1x8x3xf32> to vector<8x3xf32>
    %c0_2 = arith.constant 0 : index
    %c0_3 = arith.constant 0 : index
    %2 = vector.load %arg5[%c0_2, %c0_3] : memref<3x256xf32, #tpu.memory_space<vmem>>, vector<3x256xf32>
    %c0_4 = arith.constant 0 : index
    %c0_5 = arith.constant 0 : index
    %3 = vector.load %arg6[%c0_4, %c0_5] : memref<1x256xf32, #tpu.memory_space<vmem>>, vector<1x256xf32>
    %4 = vector.extract_strided_slice %1 {offsets = [0, 0], sizes = [8, 1], strides = [1, 1]} : vector<8x3xf32> to vector<8x1xf32>
    %5 = vector.extract_strided_slice %2 {offsets = [0, 0], sizes = [1, 256], strides = [1, 1]} : vector<3x256xf32> to vector<1x256xf32>
    %6 = vector.broadcast %4 : vector<8x1xf32> to vector<8x256xf32>
    %7 = vector.broadcast %5 : vector<1x256xf32> to vector<8x256xf32>
    %8 = arith.mulf %6, %7 : vector<8x256xf32>
    %9 = vector.broadcast %3 : vector<1x256xf32> to vector<8x256xf32>
    %10 = arith.addf %9, %8 : vector<8x256xf32>
    %11 = vector.extract_strided_slice %1 {offsets = [0, 1], sizes = [8, 1], strides = [1, 1]} : vector<8x3xf32> to vector<8x1xf32>
    %12 = vector.extract_strided_slice %2 {offsets = [1, 0], sizes = [1, 256], strides = [1, 1]} : vector<3x256xf32> to vector<1x256xf32>
    %13 = vector.broadcast %11 : vector<8x1xf32> to vector<8x256xf32>
    %14 = vector.broadcast %12 : vector<1x256xf32> to vector<8x256xf32>
    %15 = arith.mulf %13, %14 : vector<8x256xf32>
    %16 = arith.addf %10, %15 : vector<8x256xf32>
    %17 = vector.extract_strided_slice %1 {offsets = [0, 2], sizes = [8, 1], strides = [1, 1]} : vector<8x3xf32> to vector<8x1xf32>
    %18 = vector.extract_strided_slice %2 {offsets = [2, 0], sizes = [1, 256], strides = [1, 1]} : vector<3x256xf32> to vector<1x256xf32>
    %19 = vector.broadcast %17 : vector<8x1xf32> to vector<8x256xf32>
    %20 = vector.broadcast %18 : vector<1x256xf32> to vector<8x256xf32>
    %21 = arith.mulf %19, %20 : vector<8x256xf32>
    %22 = arith.addf %16, %21 : vector<8x256xf32>
    %cst = arith.constant 0.000000e+00 : f32
    %23 = vector.broadcast %cst : f32 to vector<8x256xf32>
    %24 = arith.maximumf %22, %23 : vector<8x256xf32>
    %cst_6 = arith.constant 0.000000e+00 : f32
    %25 = vector.broadcast %cst_6 : f32 to vector<8x256xf32>
    %cst_7 = arith.constant 0.000000e+00 : f32
    %26 = vector.broadcast %cst_7 : f32 to vector<8x256xf32>
    %c0_i32 = arith.constant 0 : i32
    %c20_i32 = arith.constant 20 : i32
    %27 = arith.addi %c0_i32, %c20_i32 : i32
    %c1_i32 = arith.constant 1 : i32
    %28:2 = scf.for %arg15 = %c0_i32 to %27 step %c1_i32 iter_args(%arg16 = %25, %arg17 = %26) -> (vector<8x256xf32>, vector<8x256xf32>)  : i32 {
      %59 = arith.index_cast %arg15 : i32 to index
      %60 = memref.load %arg1[%59] : memref<20xf32, #tpu.memory_space<smem>>
      %61 = arith.index_cast %arg15 : i32 to index
      %62 = memref.load %arg2[%61] : memref<20xf32, #tpu.memory_space<smem>>
      %63 = arith.index_cast %arg15 : i32 to index
      %64 = memref.load %arg3[%63] : memref<20xf32, #tpu.memory_space<smem>>
      %65 = arith.addf %arg16, %24 : vector<8x256xf32>
      %66 = math.sin %65 : vector<8x256xf32>
      %67 = arith.mulf %66, %66 : vector<8x256xf32>
      %68 = arith.subf %67, %arg16 : vector<8x256xf32>
      %69 = vector.broadcast %60 : f32 to vector<8x256xf32>
      %70 = arith.mulf %69, %68 : vector<8x256xf32>
      %cst_33 = arith.constant 0.333333343 : f32
      %71 = vector.broadcast %cst_33 : f32 to vector<8x256xf32>
      %72 = arith.mulf %70, %71 : vector<8x256xf32>
      %73 = arith.addf %arg16, %72 : vector<8x256xf32>
      %74 = arith.addf %73, %24 : vector<8x256xf32>
      %75 = math.sin %74 : vector<8x256xf32>
      %76 = arith.mulf %75, %75 : vector<8x256xf32>
      %77 = arith.subf %76, %73 : vector<8x256xf32>
      %78 = vector.broadcast %60 : f32 to vector<8x256xf32>
      %79 = arith.mulf %78, %77 : vector<8x256xf32>
      %cst_34 = arith.constant 3.000000e+00 : f32
      %80 = vector.broadcast %cst_34 : f32 to vector<8x256xf32>
      %81 = arith.mulf %80, %79 : vector<8x256xf32>
      %82 = arith.addf %70, %81 : vector<8x256xf32>
      %83 = arith.addf %arg16, %79 : vector<8x256xf32>
      %84 = arith.subf %83, %72 : vector<8x256xf32>
      %85 = arith.addf %84, %24 : vector<8x256xf32>
      %86 = math.sin %85 : vector<8x256xf32>
      %87 = arith.mulf %86, %86 : vector<8x256xf32>
      %88 = arith.subf %87, %84 : vector<8x256xf32>
      %89 = vector.broadcast %60 : f32 to vector<8x256xf32>
      %90 = arith.mulf %89, %88 : vector<8x256xf32>
      %cst_35 = arith.constant 3.000000e+00 : f32
      %91 = vector.broadcast %cst_35 : f32 to vector<8x256xf32>
      %92 = arith.mulf %91, %90 : vector<8x256xf32>
      %93 = arith.addf %82, %92 : vector<8x256xf32>
      %94 = arith.addf %arg16, %70 : vector<8x256xf32>
      %95 = arith.subf %94, %79 : vector<8x256xf32>
      %96 = arith.addf %95, %90 : vector<8x256xf32>
      %97 = arith.addf %96, %24 : vector<8x256xf32>
      %98 = math.sin %97 : vector<8x256xf32>
      %99 = arith.mulf %98, %98 : vector<8x256xf32>
      %100 = arith.subf %99, %96 : vector<8x256xf32>
      %101 = vector.broadcast %60 : f32 to vector<8x256xf32>
      %102 = arith.mulf %101, %100 : vector<8x256xf32>
      %103 = arith.addf %93, %102 : vector<8x256xf32>
      %cst_36 = arith.constant 1.250000e-01 : f32
      %104 = vector.broadcast %cst_36 : f32 to vector<8x256xf32>
      %105 = arith.mulf %104, %103 : vector<8x256xf32>
      %106 = arith.addf %arg16, %105 : vector<8x256xf32>
      %107 = vector.broadcast %62 : f32 to vector<8x256xf32>
      %108 = arith.mulf %107, %arg16 : vector<8x256xf32>
      %109 = arith.addf %arg17, %108 : vector<8x256xf32>
      %110 = vector.broadcast %64 : f32 to vector<8x256xf32>
      %111 = arith.mulf %110, %106 : vector<8x256xf32>
      %112 = arith.addf %109, %111 : vector<8x256xf32>
      scf.yield %106, %112 : vector<8x256xf32>, vector<8x256xf32>
    }
    %c20_i32_8 = arith.constant 20 : i32
    %c0_9 = arith.constant 0 : index
    %c0_10 = arith.constant 0 : index
    %29 = vector.load %arg7[%c0_9, %c0_10] : memref<256x1024xf32, #tpu.memory_space<vmem>>, vector<256x1024xf32>
    %cst_11 = arith.constant dense<0.000000e+00> : vector<8x1024xf32>
    %30 = tpu.matmul %24, %29, %cst_11 {dimension_numbers = #tpu.dot_dimension_numbers<[1], [0], [0], [1], [0, 0, 1, 1], [], []>} : vector<8x256xf32>, vector<256x1024xf32>, vector<8x1024xf32> -> vector<8x1024xf32>
    %c0_12 = arith.constant 0 : index
    %c0_13 = arith.constant 0 : index
    %31 = vector.load %arg8[%c0_12, %c0_13] : memref<1x1024xf32, #tpu.memory_space<vmem>>, vector<1x1024xf32>
    %32 = vector.broadcast %31 : vector<1x1024xf32> to vector<8x1024xf32>
    %33 = arith.addf %30, %32 : vector<8x1024xf32>
    %cst_14 = arith.constant 0.000000e+00 : f32
    %34 = vector.broadcast %cst_14 : f32 to vector<8x1024xf32>
    %35 = arith.maximumf %33, %34 : vector<8x1024xf32>
    %36 = vector.shape_cast %35 : vector<8x1024xf32> to vector<1x8x1024xf32>
    %cst_15 = arith.constant dense<0xFF800000> : vector<1x1024xf32>
    %37 = vector.multi_reduction <maximumf>, %36, %cst_15 [1] : vector<1x8x1024xf32> to vector<1x1024xf32>
    %c0_16 = arith.constant 0 : index
    %c0_17 = arith.constant 0 : index
    %38 = vector.load %arg9[%c0_16, %c0_17] : memref<1024x128xf32, #tpu.memory_space<vmem>>, vector<1024x128xf32>
    %cst_18 = arith.constant dense<0.000000e+00> : vector<1x128xf32>
    %39 = tpu.matmul %37, %38, %cst_18 {dimension_numbers = #tpu.dot_dimension_numbers<[1], [0], [0], [1], [0, 0, 1, 1], [], []>} : vector<1x1024xf32>, vector<1024x128xf32>, vector<1x128xf32> -> vector<1x128xf32>
    %40 = vector.shape_cast %39 : vector<1x128xf32> to vector<1x1x128xf32>
    %41 = vector.shape_cast %40 : vector<1x1x128xf32> to vector<1x1x128xf32>
    %42 = vector.broadcast %41 : vector<1x1x128xf32> to vector<1x8x128xf32>
    %43 = vector.shape_cast %42 : vector<1x8x128xf32> to vector<8x128xf32>
    %c0_19 = arith.constant 0 : index
    %c0_20 = arith.constant 0 : index
    %44 = vector.load %arg10[%c0_19, %c0_20] : memref<256x128xf32, #tpu.memory_space<vmem>>, vector<256x128xf32>
    %cst_21 = arith.constant dense<0.000000e+00> : vector<8x128xf32>
    %45 = tpu.matmul %28#1, %44, %cst_21 {dimension_numbers = #tpu.dot_dimension_numbers<[1], [0], [0], [1], [0, 0, 1, 1], [], []>} : vector<8x256xf32>, vector<256x128xf32>, vector<8x128xf32> -> vector<8x128xf32>
    %46 = arith.addf %45, %43 : vector<8x128xf32>
    %c0_22 = arith.constant 0 : index
    %c0_23 = arith.constant 0 : index
    %47 = vector.load %arg11[%c0_22, %c0_23] : memref<1x128xf32, #tpu.memory_space<vmem>>, vector<1x128xf32>
    %48 = vector.broadcast %47 : vector<1x128xf32> to vector<8x128xf32>
    %49 = arith.addf %46, %48 : vector<8x128xf32>
    %cst_24 = arith.constant 0.000000e+00 : f32
    %50 = vector.broadcast %cst_24 : f32 to vector<8x128xf32>
    %51 = arith.maximumf %49, %50 : vector<8x128xf32>
    %c0_25 = arith.constant 0 : index
    %c0_26 = arith.constant 0 : index
    %52 = vector.load %arg12[%c0_25, %c0_26] : memref<128x2xf32, #tpu.memory_space<vmem>>, vector<128x2xf32>
    %cst_27 = arith.constant dense<0.000000e+00> : vector<8x2xf32>
    %53 = tpu.matmul %51, %52, %cst_27 {dimension_numbers = #tpu.dot_dimension_numbers<[1], [0], [0], [1], [0, 0, 1, 1], [], []>} : vector<8x128xf32>, vector<128x2xf32>, vector<8x2xf32> -> vector<8x2xf32>
    %c0_28 = arith.constant 0 : index
    %c0_29 = arith.constant 0 : index
    %54 = vector.load %arg13[%c0_28, %c0_29] : memref<1x2xf32, #tpu.memory_space<vmem>>, vector<1x2xf32>
    %55 = vector.broadcast %54 : vector<1x2xf32> to vector<8x2xf32>
    %56 = arith.addf %53, %55 : vector<8x2xf32>
    %57 = vector.shape_cast %56 : vector<8x2xf32> to vector<1x8x2xf32>
    %c0_30 = arith.constant 0 : index
    %c0_31 = arith.constant 0 : index
    %c0_32 = arith.constant 0 : index
    %58 = vector.load %arg14[%c0_30, %c0_31, %c0_32] : memref<1x8x2xf32, #tpu.memory_space<vmem>>, vector<1x8x2xf32>
    tpu.vector_store %arg14[%c0_30, %c0_31, %c0_32], %57 {strides = array<i32>} : memref<1x8x2xf32, #tpu.memory_space<vmem>>, vector<1x8x2xf32>,
    return
  }
  func.func @transform_0(%arg0: i32) -> i32 {
    %c0_i32 = arith.constant 0 : i32
    %c0_i32_0 = arith.constant 0 : i32
    return %c0_i32 : i32
  }
  func.func @transform_1(%arg0: i32) -> i32 {
    %c0_i32 = arith.constant 0 : i32
    %c0_i32_0 = arith.constant 0 : i32
    return %c0_i32 : i32
  }
  func.func @transform_2(%arg0: i32) -> i32 {
    %c0_i32 = arith.constant 0 : i32
    %c0_i32_0 = arith.constant 0 : i32
    return %c0_i32 : i32
  }
  func.func @transform_3(%arg0: i32) -> (i32, i32, i32) {
    %c0_i32 = arith.constant 0 : i32
    %c0_i32_0 = arith.constant 0 : i32
    %c0_i32_1 = arith.constant 0 : i32
    return %arg0, %c0_i32, %c0_i32_0 : i32, i32, i32
  }
  func.func @transform_4(%arg0: i32) -> (i32, i32) {
    %c0_i32 = arith.constant 0 : i32
    %c0_i32_0 = arith.constant 0 : i32
    %c0_i32_1 = arith.constant 0 : i32
    return %c0_i32, %c0_i32_0 : i32, i32
  }
  func.func @transform_5(%arg0: i32) -> (i32, i32) {
    %c0_i32 = arith.constant 0 : i32
    %c0_i32_0 = arith.constant 0 : i32
    %c0_i32_1 = arith.constant 0 : i32
    return %c0_i32, %c0_i32_0 : i32, i32
  }
  func.func @transform_6(%arg0: i32) -> (i32, i32) {
    %c0_i32 = arith.constant 0 : i32
    %c0_i32_0 = arith.constant 0 : i32
    %c0_i32_1 = arith.constant 0 : i32
    return %c0_i32, %c0_i32_0 : i32, i32
  }
  func.func @transform_7(%arg0: i32) -> (i32, i32) {
    %c0_i32 = arith.constant 0 : i32
    %c0_i32_0 = arith.constant 0 : i32
    %c0_i32_1 = arith.constant 0 : i32
    return %c0_i32, %c0_i32_0 : i32, i32
  }
  func.func @transform_8(%arg0: i32) -> (i32, i32) {
    %c0_i32 = arith.constant 0 : i32
    %c0_i32_0 = arith.constant 0 : i32
    %c0_i32_1 = arith.constant 0 : i32
    return %c0_i32, %c0_i32_0 : i32, i32
  }
  func.func @transform_9(%arg0: i32) -> (i32, i32) {
    %c0_i32 = arith.constant 0 : i32
    %c0_i32_0 = arith.constant 0 : i32
    %c0_i32_1 = arith.constant 0 : i32
    return %c0_i32, %c0_i32_0 : i32, i32
  }
  func.func @transform_10(%arg0: i32) -> (i32, i32) {
    %c0_i32 = arith.constant 0 : i32
    %c0_i32_0 = arith.constant 0 : i32
    %c0_i32_1 = arith.constant 0 : i32
    return %c0_i32, %c0_i32_0 : i32, i32
  }
  func.func @transform_11(%arg0: i32) -> (i32, i32) {
    %c0_i32 = arith.constant 0 : i32
    %c0_i32_0 = arith.constant 0 : i32
    %c0_i32_1 = arith.constant 0 : i32
    return %c0_i32, %c0_i32_0 : i32, i32
  }
  func.func @transform_12(%arg0: i32) -> (i32, i32) {
    %c0_i32 = arith.constant 0 : i32
    %c0_i32_0 = arith.constant 0 : i32
    %c0_i32_1 = arith.constant 0 : i32
    return %c0_i32, %c0_i32_0 : i32, i32
  }
  func.func @transform_13(%arg0: i32) -> (i32, i32, i32) {
    %c0_i32 = arith.constant 0 : i32
    %c0_i32_0 = arith.constant 0 : i32
    %c0_i32_1 = arith.constant 0 : i32
    return %arg0, %c0_i32, %c0_i32_0 : i32, i32, i32
  }
}

</mosaic_0001>

<bundles_post_ra>
// kernel: tpu_custom_call.1
= control target key start
LH: loop header
LB: loop body
LE: loop exit
PB: predicated region body
PF: predicated region fallthrough
CT: control target
= control target key end

     0   :  { %s4561_s0 = inlined_call_operand.vmem [shape: f32[20], index: 0, kind: input, shape index: {}]   ;;  %s4562_s1 = inlined_call_operand.vmem [shape: f32[20], index: 1, kind: input, shape index: {}]   ;;  %s4563_s2 = inlined_call_operand.vmem [shape: f32[20], index: 2, kind: input, shape index: {}]   ;;  %s4564_s3 = inlined_call_operand.vmem [shape: f32[2,8,3], index: 3, kind: input, shape index: {}]   ;;  %s4565_s4 = inlined_call_operand.vmem [shape: f32[3,256], index: 4, kind: input, shape index: {}]   ;;  %s4566_s5 = inlined_call_operand.vmem [shape: f32[1,256], index: 5, kind: input, shape index: {}]   ;;  %s4567_s6 = inlined_call_operand.hbm [shape: f32[256,1024], index: 6, kind: input, shape index: {}]   ;;  %s4568_s7 = inlined_call_operand.vmem [shape: f32[1,1024], index: 7, kind: input, shape index: {}]   ;;  %s4569_s8 = inlined_call_operand.hbm [shape: f32[1024,128], index: 8, kind: input, shape index: {}]   ;;  %s4570_s9 = inlined_call_operand.hbm [shape: f32[256,128], index: 9, kind: input, shape index: {}]   ;;  %s4571_s10 = inlined_call_operand.vmem [shape: f32[1,128], index: 10, kind: input, shape index: {}]   ;;  %s4572_s11 = inlined_call_operand.vmem [shape: f32[128,2], index: 11, kind: input, shape index: {}]   ;;  %s4573_s12 = inlined_call_operand.vmem [shape: f32[1,2], index: 12, kind: input, shape index: {}]   ;;  %s4574_s13 = inlined_call_operand.vmem [shape: f32[2,8,2], index: 13, kind: output, shape index: {}]  }
   0x1   :  { %4575 = sst [smem:[#allocation16_spill]] %s4561_s0 }
   0x2   :  { %4576 = sst [smem:[#allocation17_spill]] %s4562_s1 }
   0x3   :  { %18 = vsyncpa [#allocation4], 0 }
   0x4   :  { %19 = vsyncpa [#allocation6], 0 }
   0x5   :  { %20 = vsyncpa [#allocation3], 0 }
   0x6   :  { %21 = vsyncpa [#allocation10], 0  ;;  %s3557_s25 = smov 0  }
   0x7 LB: > { %s4577_s1 = sld [smem:[#allocation17_spill]]  ;;  %s3566_s29 = sadd.s32 4294967295, %s3445_s25   ;;  %s3445_s25 = sphi %s3557_s25, %s27_s25  }
   0x8   : > { %p3096_p0 = scmp.ge.s32.totalorder %s3445_s25, 1  ;;  %p336_p1 = scmp.lt.s32.totalorder %s3445_s25, 3 }
   0x9   : > { %p3182_p2 = scmp.eq.s32.totalorder %s3566_s29, 0  ;;  %s400_s16 = sshll.u32 %s4569_s8, 4  ;;  %s401_s16 = int_to_ptr.hbm [resolvable:$true] %s400_s16 }
   0xa   : > { %p3571_p3 = pnand %p3096_p0, %p336_p1  ;;  %s3467_s17 = smov [#allocation9]  }
   0xb   : > { %s402_s18 = sshll.u32 %s3467_s17, 4  ;;  %s4580_s0 = sld [smem:[#allocation16_spill]]  ;;  %s403_s18 = int_to_ptr.vmem [resolvable:$true] %s402_s18 }
   0xc   : > { %p3163_p4 = pneg %p3571_p3  ;;  %s3468_s23 = smov [#allocation5]  }
   0xd   : > { %s358_s28 = sshll.u32 %s4577_s1, 4  ;;  %s3469_s24 = smov 128   ;;  %s359_s28 = int_to_ptr.vmem [resolvable:$true] %s358_s28 }
   0xe   : > { %p3582_p5 = pnand %p3182_p2, %p3163_p4  ;;  %s3470_s26 = smov 8  }
   0xf   : > { %s3471_s27 = smov [#allocation2]   ;;  %s368_s17 = sshll.u32 %s4563_s2, 4  ;;  %s369_s17 = int_to_ptr.vmem [resolvable:$true] %s368_s17 }
  0x10   : > { %3169 = dma.vmem_to_smem (!%p3582_p5), %s359_s28, 16, %s3468_s23, [#allocation6]  }
  0x11   : > { %s348_s22 = sshll.u32 %s4580_s0, 4  ;;  %s383_s0 = sshll.u32 %s4567_s6, 4  ;;  %s349_s22 = int_to_ptr.vmem [resolvable:$true] %s348_s22  ;;  %s384_s0 = int_to_ptr.hbm [resolvable:$true] %s383_s0 }
  0x12   : > { %3178 = dma.hbm_to_vmem [thread:$0]  (!%p3582_p5), %s401_s16, 16384, %s403_s18, [#allocation10], %s3469_s24, %s3469_s24, %s3470_s26  }
  0x13   : > { %3166 = dma.vmem_to_smem (!%p3582_p5), %s349_s22, 16, %s3471_s27, [#allocation4]  }
  0x14   : > { %s3472_s1 = smov [#allocation7]   ;;  %s3473_s28 = smov [#allocation8]  }
  0x15   : > { %3172 = dma.vmem_to_smem (!%p3582_p5), %s369_s17, 16, %s3472_s1, [#allocation6]  }
  0x16   : > { %s385_s23 = sshll.u32 %s3473_s28, 4  ;;  %s3474_s16 = smov 1024   ;;  %s386_s23 = int_to_ptr.vmem [resolvable:$true] %s385_s23 }
  0x17   : > { %s3475_s18 = smov 64   ;;  %s414_s14 = sshll.u32 %s4570_s9, 4  ;;  %s415_s14 = int_to_ptr.hbm [resolvable:$true] %s414_s14 }
  0x18   : > { %3175 = dma.hbm_to_vmem [thread:$0]  (!%p3582_p5), %s384_s0, 32768, %s386_s23, [#allocation3], %s3474_s16, %s3474_s16, %s3475_s18  }
  0x19   : > { %s3476_s15 = smov [#allocation11]   ;;  %448 = sbr.rel (%p3571_p3) target bundleno = 1203 (0x4b3), region = 72 }
  0x1a   : > { %s416_s20 = sshll.u32 %s3476_s15, 4  ;;  %s417_s20 = int_to_ptr.vmem [resolvable:$true] %s416_s20 }
  0x1b   : > { %3181 = dma.hbm_to_vmem [thread:$0]  (!%p3582_p5), %s415_s14, 4096, %s417_s20, [#allocation10], %s3469_s24, %s3469_s24, %s3470_s26  }
  0x1e   : > { %3428 = dma.done.wait (%p3182_p2), [#allocation4], 16  }
  0x1f   : > { %3430 = vsyncadd (%p3182_p2), [#allocation4], 4294967280 }
  0x20   : > { %3432 = dma.done.wait (%p3182_p2), [#allocation6], 32  }
  0x21   : > { %3434 = vsyncadd (%p3182_p2), [#allocation6], 4294967264 }
  0x22   : > { %3436 = dma.done.wait (%p3182_p2), [#allocation3], 32768  }
  0x23   : > { %3438 = vsyncadd (%p3182_p2), [#allocation3], 4294934528 }
  0x24   : > { %3440 = dma.done.wait (%p3182_p2), [#allocation10], 20480  }
  0x25   : > { %3442 = vsyncadd (%p3182_p2), [#allocation10], 4294946816 }
  0x26   : > { %480 = sfence }
  0x27   : > { %p517_p6 = scmp.lt.s32.totalorder %s3566_s29, 1  ;;  %v3477_v0 = vmov 0   ;;  %v3478_v1 = vmov 2   ;;  %v3479_v3 = vmov 1   ;;  %v526_v4 = vld [vmem:[%s4565_s4] sm:$0x77] }
  0x28   : > { %3262 = vset.pattern.permute.xlu0 %v3477_v0  ;;  %3264 = vset.pattern.permute.xlu1 %v3478_v1  ;;  %v534_v5 = vperm.slane %v526_v4, 0  ;;  %v535_v6 = vperm.slane %v526_v4, 4  ;;  %v567_v8 = vperm.slane %v526_v4, 2  ;;  %v568_v9 = vperm.slane %v526_v4, 6  ;;  %v527_v10 = vld [vmem:[%s4566_s5] sm:$0x3] }
  0x29   : > { %s4599_s29 = smov (!%p517_p6, %s3566_s29), 1  ;;  %v553_v13 = vperm.slane %v526_v4, 1  ;;  %v554_v14 = vperm.slane %v526_v4, 5  ;;  %v543_v15 = vperm.slane %v527_v10, 0  ;;  %v544_v16 = vperm.slane %v527_v10, 1  ;;  %s3656_s16 = smov 0  }
  0x2a   : > { %s3111_s0 = sshll.u32 %s4599_s29, 3  ;;  %v538_v11 = vperm.slane %v534_v5, 0  ;;  %v539_v12 = vperm.slane %v535_v6, 0  ;;  %v571_v17 = vperm.slane %v567_v8, 2  ;;  %v572_v18 = vperm.slane %v568_v9, 2 }
  0x2b   : > { %s520_s19 = scalar_lea.vmem %s4564_s3, %s3111_s0  ;;  %s3636_s17 = scalar_lea.vmem %s4574_s13, %s3111_s0  ;;  %v557_v21 = vperm.slane %v553_v13, 1  ;;  %v558_v22 = vperm.slane %v554_v14, 1  ;;  %v3648_v37 = vmov 0.0   ;;  %v3650_v38 = vmov 0.0  }
  0x2c   : > { %v525_v2 = vld [vmem:[%s520_s19] sm:$0xff]  ;;  %v3652_v39 = vmov 0.0   ;;  %v3654_v40 = vmov 0.0  }
  0x2d   : > { %530 = vperm.xlu0 %3262, %v525_v2   ;;  %564 = vperm.xlu1 %3264, %v525_v2  }
  0x35   : > { %3263 = vset.pattern.permute.xlu0 %v3479_v3 }
  0x36   : > { %550 = vperm.xlu0 %3263, %v525_v2  }
  0x3e   : > { %3265 = vset.pattern.permute.xlu0 %v3478_v1 }
  0x9f   : > { %v531_v7 = vpop.permute.xlu0 %530  ;;  %v565_v23 = vpop.permute.xlu1 %564 }
  0xa0   : > { %v540_v19 = vmul.f32 %v538_v11, %v531_v7  ;;  %v541_v20 = vmul.f32 %v539_v12, %v531_v7  ;;  %v573_v25 = vmul.f32 %v571_v17, %v565_v23  ;;  %v574_v26 = vmul.f32 %v572_v18, %v565_v23 }
  0xa2   : > { %v547_v27 = vadd.f32 %v543_v15, %v540_v19  ;;  %v548_v28 = vadd.f32 %v544_v16, %v541_v20 }
  0xa8   : > { %v551_v24 = vpop.permute.xlu0 %550 }
  0xa9   : > { %v559_v29 = vmul.f32 %v557_v21, %v551_v24  ;;  %v560_v30 = vmul.f32 %v558_v22, %v551_v24 }
  0xab   : > { %v561_v31 = vadd.f32 %v559_v29, %v547_v27  ;;  %v562_v32 = vadd.f32 %v560_v30, %v548_v28 }
  0xad   : > { %v575_v33 = vadd.f32 %v573_v25, %v561_v31  ;;  %v576_v34 = vadd.f32 %v574_v26, %v562_v32 }
  0xaf   : > { %v3644_v35 = vmax.f32 %v575_v33, 0.0  ;;  %v3646_v36 = vmax.f32 %v576_v34, 0.0 }
  0xb0 LB: >> { %v3480_v0 = vmov 683565275   ;;  %v3481_v2 = vmov 2475754826   ;;  %v3482_v4 = vmov 2131351028   ;;  %s3465_s16 = sphi %s3656_s16, %s584_s16   ;;  %v3461_v40 = vphi %v3654_v40, %v4597_v40   ;;  %v3457_v39 = vphi %v3652_v39, %v1892_v39   ;;  %v3453_v38 = vphi %v3650_v38, %v4596_v38   ;;  %v3449_v37 = vphi %v3648_v37, %v4595_v37  }
  0xb1   : >> { %v3675_v41 = vadd.f32 %v3461_v40, %v3644_v35  ;;  %v3679_v42 = vadd.f32 %v3457_v39, %v3646_v36  ;;  %v3483_v6 = vmov 2102212464   ;;  %v3484_v8 = vmov 920167782   ;;  %s589_s18 = sld [smem:[#allocation2 + %s3465_s16]] }
  0xb2   : >> { %v3485_v17 = vmov 1326507024   ;;  %s4422_s22 = sld [smem:[#allocation5 + %s3465_s16]] }
  0xb3   : >> { %v594_v43 = vand.u32 2147483647, %v3675_v41  ;;  %v597_v44 = vand.u32 2139095040, %v3675_v41  ;;  %v752_v45 = vand.u32 2139095040, %v3679_v42  ;;  %v749_v46 = vand.u32 2147483647, %v3679_v42 }
  0xb4   : >> { %s4426_s27 = sld [smem:[#allocation7 + %s3465_s16]]  ;;  %s584_s16 = sadd.s32 1, %s3465_s16  }
  0xb5   : >> { %v598_v47 = vshrl.u32 %v597_v44, 23  ;;  %v601_v48 = vand.u32 8388607, %v594_v43  ;;  %v753_v49 = vshrl.u32 %v752_v45, 23  ;;  %v756_v53 = vand.u32 8388607, %v749_v46 }
  0xb6   : >> { %p581_p7 = scmp.ge.s32.totalorder %s584_s16, 20  }
  0xb7   : >> { %v3113_v50 = vadd.s32 4294967169, %v598_v47  ;;  %v3116_v51 = vadd.s32 4294967169, %v753_v49  ;;  %v602_v52 = vor.u32 8388608, %v601_v48  ;;  %v757_v58 = vor.u32 8388608, %v756_v53 }
  0xb9   : >> { %v604_v54 = vadd.s32 1, %v3113_v50  ;;  %v759_v55 = vadd.s32 1, %v3116_v51  ;;  %v3689_v57 = vshll.u32 %v602_v52, 8  ;;  %v3701_v11 = vshll.u32 %v757_v58, 8 }
  0xbb   : >> { %vm605_vm0 = vcmp.gt.s32.totalorder %v604_v54, 0  ;;  %vm760_vm1 = vcmp.gt.s32.totalorder %v759_v55, 0  ;;  %v643_v10 = vand.u32 65535, %v3689_v57  ;;  %v644_v15 = vshrl.u32 %v3689_v57, 16 }
  0xbc   : >> { %v606_v56 = vsel %vm605_vm0, %v604_v54, 0  ;;  %v761_v59 = vsel %vm760_vm1, %v759_v55, 0 }
  0xbd   : >> { %v608_v60 = vand.u32 31, %v606_v56  ;;  %v3691_v61 = vshrl.u32 %v606_v56, 5  ;;  %v3693_v62 = vand.u32 31, %v761_v59  ;;  %v3721_v28 = vshrl.u32 %v761_v59, 5 }
  0xbf   : >> { %v609_v63 = vsub.s32 32, %v608_v60  ;;  %v611_v1 = vshll.u32 %v3480_v0, %v608_v60  ;;  %v614_v3 = vshll.u32 %v3481_v2, %v608_v60  ;;  %v617_v5 = vshll.u32 %v3482_v4, %v608_v60 }
  0xc0   : >> { %v620_v7 = vshll.u32 %v3483_v6, %v608_v60  ;;  %v623_v9 = vshll.u32 %v3484_v8, %v608_v60  ;;  %vm626_vm2 = vcmp.lt.s32.totalorder %v3691_v61, 1  ;;  %vm629_vm3 = vcmp.lt.s32.totalorder %v3691_v61, 4 }
  0xc1   : >> { %v612_v12 = vshrl.u32 %v3481_v2, %v609_v63  ;;  %v615_v13 = vshrl.u32 %v3482_v4, %v609_v63  ;;  %v618_v14 = vshrl.u32 %v3483_v6, %v609_v63  ;;  %v621_v16 = vshrl.u32 %v3484_v8, %v609_v63 }
  0xc2   : >> { %v624_v18 = vshrl.u32 %v3485_v17, %v609_v63  ;;  %v3712_v22 = vsub.s32 32, %v3693_v62  ;;  %v610_v23 = vshrl.u32 %v3480_v0, %v609_v63  ;;  %vm628_vm4 = vcmp.lt.s32.totalorder %v3691_v61, 3 }
  0xc3   : >> { %v613_v19 = vor.u32 %v612_v12, %v611_v1  ;;  %v616_v20 = vor.u32 %v615_v13, %v614_v3  ;;  %v619_v21 = vor.u32 %v618_v14, %v617_v5  ;;  %v622_v24 = vor.u32 %v621_v16, %v620_v7 }
  0xc4   : >> { %v625_v25 = vor.u32 %v624_v18, %v623_v9  ;;  %vm627_vm5 = vcmp.lt.s32.totalorder %v3691_v61, 2  ;;  %v766_v31 = vshll.u32 %v3480_v0, %v3693_v62  ;;  %v769_v32 = vshll.u32 %v3481_v2, %v3693_v62 }
  0xc5   : >> { %v634_v26 = vsel %vm626_vm2, %v613_v19, %v616_v20  ;;  %v638_v27 = vsel %vm626_vm2, %v616_v20, %v619_v21  ;;  %v635_v29 = vsel %vm629_vm3, %v622_v24, 920167782  ;;  %v631_v33 = vsel %vm629_vm3, %v619_v21, 2102212464 }
  0xc6   : >> { %v639_v30 = vsel %vm629_vm3, %v625_v25, 1326507024  ;;  %v636_v34 = vsel %vm628_vm4, %v619_v21, %v635_v29  ;;  %v767_v45 = vshrl.u32 %v3481_v2, %v3712_v22  ;;  %v630_v47 = vsel %vm626_vm2, %v610_v23, %v613_v19 }
  0xc7   : >> { %v640_v44 = vsel %vm628_vm4, %v622_v24, %v639_v30  ;;  %v637_v48 = vsel %vm627_vm5, %v634_v26, %v636_v34  ;;  %v770_v50 = vshrl.u32 %v3482_v4, %v3712_v22  ;;  %v632_v55 = vsel %vm628_vm4, %v616_v20, %v631_v33 }
  0xc8   : >> { %v641_v49 = vsel %vm627_vm5, %v638_v27, %v640_v44  ;;  %v667_v53 = vand.u32 65535, %v637_v48  ;;  %v668_v54 = vshrl.u32 %v637_v48, 16  ;;  %v3749_v56 = vor.u32 %v767_v45, %v766_v31 }
  0xc9   : >> { %v645_v51 = vand.u32 65535, %v641_v49  ;;  %v646_v52 = vshrl.u32 %v641_v49, 16  ;;  %v3751_v58 = vor.u32 %v770_v50, %v769_v32  ;;  %v772_v59 = vshll.u32 %v3482_v4, %v3693_v62 }
  0xca   : >> { %v773_v3 = vshrl.u32 %v3483_v6, %v3712_v22  ;;  %v669_v7 = vmul.u32 %v667_v53, %v643_v10  ;;  %v670_v9 = vmul.u32 %v668_v54, %v643_v10  ;;  %v671_v12 = vmul.u32 %v667_v53, %v644_v15 }
  0xcb   : >> { %v647_v60 = vmul.u32 %v645_v51, %v643_v10  ;;  %v648_v63 = vmul.u32 %v646_v52, %v643_v10  ;;  %v649_v1 = vmul.u32 %v645_v51, %v644_v15  ;;  %v650_v5 = vmul.u32 %v646_v52, %v644_v15 }
  0xcc   : >> { %v672_v18 = vmul.u32 %v668_v54, %v644_v15  ;;  %v673_v20 = vshll.u32 %v670_v9, 16  ;;  %v674_v21 = vshrl.u32 %v670_v9, 16  ;;  %v675_v23 = vshll.u32 %v671_v12, 16 }
  0xcd   : >> { %v651_v13 = vshll.u32 %v648_v63, 16  ;;  %v652_v14 = vshrl.u32 %v648_v63, 16  ;;  %v653_v16 = vshll.u32 %v649_v1, 16  ;;  %v654_v19 = vshrl.u32 %v649_v1, 16 }
  0xce   : >> { %v676_v25 = vshrl.u32 %v671_v12, 16  ;;  %v775_v26 = vshll.u32 %v3483_v6, %v3693_v62  ;;  %v3486_v27 = vmov 0   ;;  %vm677_vm7 = vc.u32 %v669_v7, %v673_v20 }
  0xcf   : >> { %vm655_vm6 = vc.u32 %v647_v60, %v651_v13  ;;  %v657_v24 = vadd.s32 %v651_v13, %v647_v60  ;;  %v679_v10 = vadd.s32 %v673_v20, %v669_v7  ;;  %v776_v30 = vshrl.u32 %v3484_v8, %v3712_v22 }
  0xd0   : >> { %v656_v29 = vsel %vm655_vm6, 1, %v3486_v27  ;;  %v678_v15 = vsel %vm677_vm7, 1, %v3486_v27  ;;  %v778_v32 = vshll.u32 %v3484_v8, %v3693_v62  ;;  %v774_v44 = vor.u32 %v773_v3, %v772_v59 }
  0xd1   : >> { %v658_v31 = vadd.s32 %v656_v29, %v650_v5  ;;  %vm659_vm8 = vc.u32 %v657_v24, %v653_v16  ;;  %v680_v34 = vadd.s32 %v678_v15, %v672_v18  ;;  %vm681_vm9 = vc.u32 %v679_v10, %v675_v23 }
  0xd2   : >> { %v660_v33 = vsel %vm659_vm8, 1, %v3486_v27  ;;  %v682_v48 = vsel %vm681_vm9, 1, %v3486_v27  ;;  %v777_v49 = vor.u32 %v776_v30, %v775_v26  ;;  %v779_v50 = vshrl.u32 %v3485_v17, %v3712_v22 }
  0xd3   : >> { %v662_v45 = vadd.s32 %v660_v33, %v658_v31  ;;  %v3769_v51 = vadd.s32 %v679_v10, %v675_v23  ;;  %v684_v52 = vadd.s32 %v682_v48, %v680_v34  ;;  %vm781_vm10 = vcmp.lt.s32.totalorder %v3721_v28, 1 }
  0xd4   : >> { %vm783_vm11 = vcmp.lt.s32.totalorder %v3721_v28, 3  ;;  %v780_v53 = vor.u32 %v779_v50, %v778_v32  ;;  %vm782_vm12 = vcmp.lt.s32.totalorder %v3721_v28, 2  ;;  %vm784_vm13 = vcmp.lt.s32.totalorder %v3721_v28, 4 }
  0xd5   : >> { %v663_v62 = vadd.s32 %v662_v45, %v652_v14  ;;  %v633_v54 = vsel %vm627_vm5, %v630_v47, %v632_v55  ;;  %v685_v59 = vadd.s32 %v684_v52, %v674_v21  ;;  %v789_v60 = vsel %vm781_vm10, %v3749_v56, %v3751_v58 }
  0xd6   : >> { %v790_v63 = vsel %vm784_vm13, %v777_v49, 920167782  ;;  %v793_v5 = vsel %vm781_vm10, %v3751_v58, %v774_v44  ;;  %v798_v61 = vand.u32 65535, %v3701_v11  ;;  %v794_v7 = vsel %vm784_vm13, %v780_v53, 1326507024 }
  0xd7   : >> { %v3783_v1 = vadd.s32 %v663_v62, %v654_v19  ;;  %v791_v3 = vsel %vm783_vm11, %v774_v44, %v790_v63  ;;  %v686_v47 = vadd.s32 %v685_v59, %v676_v25  ;;  %v799_v9 = vshrl.u32 %v3701_v11, 16 }
  0xd8   : >> { %v792_v55 = vsel %vm782_vm12, %v789_v60, %v791_v3  ;;  %v687_v12 = vmul.u32 %v3689_v57, %v633_v54  ;;  %v795_v13 = vsel %vm783_vm11, %v777_v49, %v794_v7  ;;  %v765_v24 = vshrl.u32 %v3480_v0, %v3712_v22 }
  0xd9   : >> { %vm689_vm14 = vc.u32 %v3783_v1, %v3769_v51  ;;  %v822_v14 = vand.u32 65535, %v792_v55  ;;  %v690_v16 = vadd.s32 1, %v686_v47  ;;  %v796_v18 = vsel %vm782_vm12, %v793_v5, %v795_v13 }
  0xda   : >> { %v823_v19 = vshrl.u32 %v792_v55, 16  ;;  %v800_v20 = vand.u32 65535, %v796_v18  ;;  %v801_v21 = vshrl.u32 %v796_v18, 16  ;;  %v786_v33 = vsel %vm784_vm13, %v774_v44, 2102212464 }
  0xdb   : >> { %v691_v23 = vsel %vm689_vm14, %v690_v16, %v686_v47  ;;  %v826_v57 = vmul.u32 %v822_v14, %v799_v9  ;;  %v824_v30 = vmul.u32 %v822_v14, %v798_v61  ;;  %v785_v48 = vsel %vm781_vm10, %v765_v24, %v3749_v56 }
  0xdc   : >> { %v825_v25 = vmul.u32 %v823_v19, %v798_v61  ;;  %v692_v26 = vadd.s32 %v691_v23, %v687_v12  ;;  %v802_v29 = vmul.u32 %v800_v20, %v798_v61  ;;  %v803_v10 = vmul.u32 %v801_v21, %v798_v61 }
  0xdd   : >> { %v804_v31 = vmul.u32 %v800_v20, %v799_v9  ;;  %v805_v34 = vmul.u32 %v801_v21, %v799_v9  ;;  %v827_v22 = vmul.u32 %v823_v19, %v799_v9  ;;  %v830_v50 = vshll.u32 %v826_v57, 16 }
  0xde   : >> { %v828_v15 = vshll.u32 %v825_v25, 16  ;;  %v693_v32 = vadd.s32 536870912, %v692_v26  ;;  %v806_v45 = vshll.u32 %v803_v10, 16  ;;  %v787_v53 = vsel %vm783_vm11, %v3751_v58, %v786_v33 }
  0xdf   : >> { %v808_v49 = vshll.u32 %v804_v31, 16  ;;  %v807_v56 = vshrl.u32 %v803_v10, 16  ;;  %v829_v5 = vshrl.u32 %v825_v25, 16  ;;  %v809_v55 = vshrl.u32 %v804_v31, 16 }
  0xe0   : >> { %v3810_v52 = vshrl.u32 %v693_v32, 30  ;;  %vm810_vm15 = vc.u32 %v802_v29, %v806_v45  ;;  %v812_v62 = vadd.s32 %v806_v45, %v802_v29  ;;  %vm832_vm0 = vc.u32 %v824_v30, %v828_v15 }
  0xe1   : >> { %v811_v44 = vsel %vm810_vm15, 1, %v3486_v27  ;;  %v833_v54 = vsel %vm832_vm0, 1, %v3486_v27  ;;  %v834_v59 = vadd.s32 %v828_v15, %v824_v30  ;;  %v831_v9 = vshrl.u32 %v826_v57, 16 }
  0xe2   : >> { %v695_v60 = vshll.u32 %v3810_v52, 30  ;;  %v813_v63 = vadd.s32 %v811_v44, %v805_v34  ;;  %vm814_vm1 = vc.u32 %v812_v62, %v808_v49  ;;  %v835_v61 = vadd.s32 %v833_v54, %v827_v22 }
  0xe3   : >> { %v815_v3 = vsel %vm814_vm1, 1, %v3486_v27  ;;  %vm836_vm2 = vc.u32 %v834_v59, %v830_v50  ;;  %v838_v16 = vadd.s32 %v834_v59, %v830_v50  ;;  %v788_v18 = vsel %vm782_vm12, %v785_v48, %v787_v53 }
  0xe4   : >> { %v696_v47 = vsub.s32 %v692_v26, %v695_v60  ;;  %v817_v7 = vadd.s32 %v815_v3, %v813_v63  ;;  %v837_v58 = vsel %vm836_vm2, 1, %v3486_v27  ;;  %v842_v25 = vmul.u32 %v3701_v11, %v788_v18 }
  0xe5   : >> { %v839_v12 = vadd.s32 %v837_v58, %v835_v61  ;;  %v688_v57 = vadd.s32 %v3769_v51, %v3783_v1  ;;  %v718_v54 = vsub.s32 4, %v3810_v52  ;;  %vm596_vm7 = vcmp.lt.s32.totalorder %v3675_v41, 0 }
  0xe6   : >> { %vm697_vm3 = vcmp.lt.s32.totalorder %v696_v47, 0  ;;  %v698_v13 = vsub.s32 0, %v696_v47  ;;  %v818_v14 = vadd.s32 %v817_v7, %v807_v56  ;;  %vm3832_vm8 = vcmp.le.f32.partialorder %v594_v43, 0.7853982 }
  0xe7   : >> { %v840_v19 = vadd.s32 %v839_v12, %v829_v5  ;;  %v719_v5 = vsel %vm596_vm7, %v718_v54, %v3810_v52  ;;  %vm751_vm11 = vcmp.lt.s32.totalorder %v3679_v42, 0  ;;  %vm3847_vm13 = vcmp.le.f32.partialorder %v749_v46, 0.7853982 }
  0xe8   : >> { %v699_v20 = vsel %vm697_vm3, %v698_v13, %v696_v47  ;;  %v819_v21 = vadd.s32 %v818_v14, %v809_v55  ;;  %v721_v58 = vsel %vm3832_vm8, 0, %v719_v5  ;;  %vm737_vm15 = vweird.f32 %v3675_v41 }
  0xe9   : >> { %v700_v23 = vclz %v699_v20  ;;  %v841_v24 = vadd.s32 %v840_v19, %v831_v9  ;;  %vm892_vm3 = vweird.f32 %v3679_v42 }
  0xea   : >> { %vm844_vm4 = vc.u32 %v819_v21, %v838_v16  ;;  %v843_v7 = vadd.s32 %v838_v16, %v819_v21 }
  0xeb   : >> { %v3114_v26 = vadd.s32 4294967294, %v700_v23  ;;  %v845_v29 = vadd.s32 1, %v841_v24  ;;  %v738_v23 = vadd.s32 3, %v721_v58 }
  0xed   : >> { %vm3115_vm5 = vcmp.lt.s32.totalorder %v3114_v26, 0  ;;  %v846_v10 = vsel %vm844_vm4, %v845_v29, %v841_v24 }
  0xee   : >> { %v703_v30 = vsel %vm3115_vm5, 0, %v3114_v26  ;;  %v847_v31 = vadd.s32 %v846_v10, %v842_v25  ;;  %v739_v10 = vand.u32 3, %v738_v23 }
  0xef   : >> { %v704_v15 = vsub.s32 32, %v703_v30  ;;  %v705_v28 = vshll.u32 %v696_v47, %v703_v30  ;;  %v708_v32 = vsub.s32 4294967266, %v703_v30 }
  0xf0   : >> { %v848_v33 = vadd.s32 536870912, %v847_v31  ;;  %vm744_vm10 = vcmp.eq.s32.totalorder %v739_v10, 2  ;;  %vm741_vm12 = vcmp.eq.s32.totalorder %v739_v10, 0  ;;  %vm740_vm14 = vcmp.lt.s32.totalorder %v739_v10, 2 }
  0xf1   : >> { %v706_v34 = vshrl.u32 %v688_v57, %v704_v15  ;;  %v709_v45 = vadd.s32 127, %v708_v32 }
  0xf2   : >> { %v3825_v48 = vshrl.u32 %v848_v33, 30 }
  0xf3   : >> { %v707_v49 = vor.u32 %v706_v34, %v705_v28  ;;  %v710_v11 = vshll.u32 %v709_v45, 23 }
  0xf4   : >> { %v850_v22 = vshll.u32 %v3825_v48, 30 }
  0xf5   : >> { %v711_v50 = vor.u32 4788187, %v710_v11  ;;  %v714_v62 = vcvt.s32.f32 %v707_v49 }
  0xf6   : >> { %v851_v53 = vsub.s32 %v847_v31, %v850_v22  ;;  %v873_v22 = vsub.s32 4, %v3825_v48 }
  0xf7   : >> { %v712_v51 = vand.u32 2147483647, %v711_v50 }
  0xf8   : >> { %vm852_vm6 = vcmp.lt.s32.totalorder %v851_v53, 0  ;;  %v853_v1 = vsub.s32 0, %v851_v53  ;;  %v874_v54 = vsel %vm751_vm11, %v873_v22, %v3825_v48 }
  0xf9   : >> { %v715_v44 = vmul.f32 %v714_v62, %v712_v51 }
  0xfa   : >> { %v854_v59 = vsel %vm852_vm6, %v853_v1, %v851_v53 }
  0xfb   : >> { %v716_v56 = vxor.u32 2147483648, %v715_v44  ;;  %v855_v63 = vclz %v854_v59 }
  0xfd   : >> { %v717_v3 = vsel %vm596_vm7, %v716_v56, %v715_v44  ;;  %v3117_v61 = vadd.s32 4294967294, %v855_v63  ;;  %v876_v63 = vsel %vm3847_vm13, 0, %v874_v54 }
  0xfe   : >> { %v720_v47 = vsel %vm3832_vm8, %v3675_v41, %v717_v3  ;;  %v893_v48 = vadd.s32 3, %v876_v63 }
  0xff   : >> { %v722_v55 = vmul.f32 %v720_v47, %v720_v47  ;;  %vm3118_vm9 = vcmp.lt.s32.totalorder %v3117_v61, 0 }
 0x100   : >> { %v858_v43 = vsel %vm3118_vm9, 0, %v3117_v61 }
 0x101   : >> { %v723_v9 = vmul.f32 -0.001358992, %v722_v55  ;;  %v730_v12 = vmul.f32 -0.00019511016, %v722_v55  ;;  %v859_v13 = vsub.s32 32, %v858_v43  ;;  %v860_v14 = vshll.u32 %v851_v53, %v858_v43 }
 0x102   : >> { %v863_v18 = vsub.s32 4294967266, %v858_v43 }
 0x103   : >> { %v724_v19 = vadd.f32 0.041655596, %v723_v9  ;;  %v731_v20 = vadd.f32 0.008332121, %v730_v12  ;;  %v861_v52 = vshrl.u32 %v843_v7, %v859_v13 }
 0x104   : >> { %v864_v24 = vadd.s32 127, %v863_v18  ;;  %v894_v18 = vand.u32 3, %v893_v48 }
 0x105   : >> { %v725_v25 = vmul.f32 %v724_v19, %v722_v55  ;;  %v732_v26 = vmul.f32 %v731_v20, %v722_v55  ;;  %v862_v29 = vor.u32 %v861_v52, %v860_v14 }
 0x106   : >> { %v865_v16 = vshll.u32 %v864_v24, 23  ;;  %vm899_vm0 = vcmp.eq.s32.totalorder %v894_v18, 2  ;;  %vm896_vm1 = vcmp.eq.s32.totalorder %v894_v18, 0  ;;  %vm895_vm2 = vcmp.lt.s32.totalorder %v894_v18, 2 }
 0x107   : >> { %v726_v21 = vadd.f32 -0.4999988, %v725_v25  ;;  %v733_v57 = vadd.f32 -0.16666654, %v732_v26  ;;  %v869_v31 = vcvt.s32.f32 %v862_v29 }
 0x108   : >> { %v866_v30 = vor.u32 4788187, %v865_v16 }
 0x109   : >> { %v727_v15 = vmul.f32 %v726_v21, %v722_v55  ;;  %v734_v28 = vmul.f32 %v733_v57, %v722_v55 }
 0x10a   : >> { %v867_v32 = vand.u32 2147483647, %v866_v30 }
 0x10b   : >> { %v728_v33 = vadd.f32 1.0, %v727_v15  ;;  %v735_v34 = vadd.f32 1.0, %v734_v28 }
 0x10c   : >> { %v870_v45 = vmul.f32 %v869_v31, %v867_v32 }
 0x10d   : >> { %v736_v49 = vmul.f32 %v735_v34, %v720_v47  ;;  %v745_v11 = vxor.u32 2147483648, %v728_v33  ;;  %v3858_v47 = vstv %s589_s18 }
 0x10e   : >> { %v871_v62 = vxor.u32 2147483648, %v870_v45 }
 0x10f   : >> { %v742_v53 = vxor.u32 2147483648, %v736_v49  ;;  %v746_v51 = vsel %vm744_vm10, %v745_v11, %v736_v49 }
 0x110   : >> { %v872_v1 = vsel %vm751_vm11, %v871_v62, %v870_v45 }
 0x111   : >> { %v743_v44 = vsel %vm741_vm12, %v728_v33, %v742_v53  ;;  %v875_v59 = vsel %vm3847_vm13, %v3679_v42, %v872_v1 }
 0x112   : >> { %v747_v60 = vsel %vm740_vm14, %v743_v44, %v746_v51  ;;  %v877_v56 = vmul.f32 %v875_v59, %v875_v59 }
 0x113   : >> { %v748_v46 = vsel %vm737_vm15, nan, %v747_v60 }
 0x114   : >> { %v878_v3 = vmul.f32 -0.001358992, %v877_v56  ;;  %v885_v5 = vmul.f32 -0.00019511016, %v877_v56  ;;  %v904_v61 = vmul.f32 %v748_v46, %v748_v46 }
 0x116   : >> { %v879_v41 = vadd.f32 0.041655596, %v878_v3  ;;  %v886_v55 = vadd.f32 0.008332121, %v885_v5  ;;  %v906_v7 = vsub.f32 %v904_v61, %v3461_v40 }
 0x118   : >> { %v880_v58 = vmul.f32 %v879_v41, %v877_v56  ;;  %v887_v43 = vmul.f32 %v886_v55, %v877_v56  ;;  %v3862_v9 = vmul.f32 %v3858_v47, %v906_v7 }
 0x11a   : >> { %v881_v12 = vadd.f32 -0.4999988, %v880_v58  ;;  %v888_v13 = vadd.f32 -0.16666654, %v887_v43  ;;  %v3865_v14 = vmul.f32 0.33333334, %v3862_v9 }
 0x11c   : >> { %v882_v19 = vmul.f32 %v881_v12, %v877_v56  ;;  %v889_v20 = vmul.f32 %v888_v13, %v877_v56  ;;  %v3869_v52 = vadd.f32 %v3461_v40, %v3865_v14 }
 0x11e   : >> { %v883_v23 = vadd.f32 1.0, %v882_v19  ;;  %v890_v24 = vadd.f32 1.0, %v889_v20  ;;  %v3873_v25 = vadd.f32 %v3869_v52, %v3644_v35 }
 0x120   : >> { %v891_v26 = vmul.f32 %v890_v24, %v875_v59  ;;  %v900_v29 = vxor.u32 2147483648, %v883_v23  ;;  %v920_v16 = vand.u32 2139095040, %v3873_v25  ;;  %v917_v10 = vand.u32 2147483647, %v3873_v25 }
 0x122   : >> { %v897_v21 = vxor.u32 2147483648, %v891_v26  ;;  %v901_v57 = vsel %vm899_vm0, %v900_v29, %v891_v26  ;;  %v921_v30 = vshrl.u32 %v920_v16, 23  ;;  %v924_v34 = vand.u32 8388607, %v917_v10 }
 0x124   : >> { %v898_v31 = vsel %vm896_vm1, %v883_v23, %v897_v21  ;;  %v3119_v28 = vadd.s32 4294967169, %v921_v30  ;;  %v925_v42 = vor.u32 8388608, %v924_v34 }
 0x125   : >> { %v902_v15 = vsel %vm895_vm2, %v898_v31, %v901_v57 }
 0x126   : >> { %v903_v32 = vsel %vm892_vm3, nan, %v902_v15  ;;  %v927_v45 = vadd.s32 1, %v3119_v28  ;;  %v3900_v3 = vshll.u32 %v925_v42, 8 }
 0x127   : >> { %v905_v33 = vmul.f32 %v903_v32, %v903_v32 }
 0x128   : >> { %vm928_vm4 = vcmp.gt.s32.totalorder %v927_v45, 0  ;;  %v966_v24 = vand.u32 65535, %v3900_v3  ;;  %v967_v16 = vshrl.u32 %v3900_v3, 16 }
 0x129   : >> { %v907_v49 = vsub.f32 %v905_v33, %v3457_v39  ;;  %v929_v11 = vsel %vm928_vm4, %v927_v45, 0 }
 0x12a   : >> { %v931_v50 = vand.u32 31, %v929_v11  ;;  %v3884_v62 = vshrl.u32 %v929_v11, 5 }
 0x12b   : >> { %v3882_v22 = vmul.f32 %v3858_v47, %v907_v49 }
 0x12c   : >> { %v932_v51 = vsub.s32 32, %v931_v50  ;;  %v934_v1 = vshll.u32 %v3480_v0, %v931_v50  ;;  %v937_v44 = vshll.u32 %v3481_v2, %v931_v50  ;;  %v940_v54 = vshll.u32 %v3482_v4, %v931_v50 }
 0x12d   : >> { %v3887_v53 = vmul.f32 0.33333334, %v3882_v22  ;;  %v943_v59 = vshll.u32 %v3483_v6, %v931_v50  ;;  %v946_v60 = vshll.u32 %v3484_v8, %v931_v50  ;;  %vm949_vm5 = vcmp.lt.s32.totalorder %v3884_v62, 1 }
 0x12e   : >> { %v935_v46 = vshrl.u32 %v3481_v2, %v932_v51  ;;  %v938_v63 = vshrl.u32 %v3482_v4, %v932_v51  ;;  %v941_v5 = vshrl.u32 %v3483_v6, %v932_v51  ;;  %v944_v61 = vshrl.u32 %v3484_v8, %v932_v51 }
 0x12f   : >> { %v3896_v56 = vadd.f32 %v3457_v39, %v3887_v53  ;;  %v947_v41 = vshrl.u32 %v3485_v17, %v932_v51  ;;  %vm951_vm6 = vcmp.lt.s32.totalorder %v3884_v62, 3  ;;  %vm952_vm7 = vcmp.lt.s32.totalorder %v3884_v62, 4 }
 0x130   : >> { %v936_v7 = vor.u32 %v935_v46, %v934_v1  ;;  %v939_v48 = vor.u32 %v938_v63, %v937_v44  ;;  %v942_v58 = vor.u32 %v941_v5, %v940_v54  ;;  %v945_v43 = vor.u32 %v944_v61, %v943_v59 }
 0x131   : >> { %v3908_v55 = vadd.f32 %v3896_v56, %v3646_v36  ;;  %v948_v12 = vor.u32 %v947_v41, %v946_v60  ;;  %vm950_vm8 = vcmp.lt.s32.totalorder %v3884_v62, 2  ;;  %v933_v57 = vshrl.u32 %v3480_v0, %v932_v51 }
 0x132   : >> { %v957_v13 = vsel %vm949_vm5, %v936_v7, %v939_v48  ;;  %v958_v19 = vsel %vm952_vm7, %v945_v43, 920167782  ;;  %v961_v20 = vsel %vm949_vm5, %v939_v48, %v942_v58  ;;  %v954_v34 = vsel %vm952_vm7, %v942_v58, 2102212464 }
 0x133   : >> { %v1075_v18 = vand.u32 2139095040, %v3908_v55  ;;  %v962_v23 = vsel %vm952_vm7, %v948_v12, 1326507024  ;;  %v959_v26 = vsel %vm951_vm6, %v942_v58, %v958_v19  ;;  %v1072_v45 = vand.u32 2147483647, %v3908_v55 }
 0x134   : >> { %v963_v29 = vsel %vm951_vm6, %v945_v43, %v962_v23  ;;  %v960_v30 = vsel %vm950_vm8, %v957_v13, %v959_v26  ;;  %v953_v54 = vsel %vm949_vm5, %v933_v57, %v936_v7  ;;  %v955_v63 = vsel %vm951_vm6, %v939_v48, %v954_v34 }
 0x135   : >> { %v1076_v21 = vshrl.u32 %v1075_v18, 23  ;;  %v964_v31 = vsel %vm950_vm8, %v961_v20, %v963_v29  ;;  %v990_v32 = vand.u32 65535, %v960_v30  ;;  %v991_v33 = vshrl.u32 %v960_v30, 16 }
 0x136   : >> { %v968_v15 = vand.u32 65535, %v964_v31  ;;  %v969_v28 = vshrl.u32 %v964_v31, 16  ;;  %v1079_v43 = vand.u32 8388607, %v1072_v45 }
 0x137   : >> { %v3122_v50 = vadd.s32 4294967169, %v1076_v21  ;;  %v992_v51 = vmul.u32 %v990_v32, %v966_v24  ;;  %v993_v1 = vmul.u32 %v991_v33, %v966_v24  ;;  %v994_v44 = vmul.u32 %v990_v32, %v967_v16 }
 0x138   : >> { %v970_v49 = vmul.u32 %v968_v15, %v966_v24  ;;  %v971_v11 = vmul.u32 %v969_v28, %v966_v24  ;;  %v972_v42 = vmul.u32 %v968_v15, %v967_v16  ;;  %v973_v59 = vmul.u32 %v969_v28, %v967_v16 }
 0x139   : >> { %v995_v5 = vmul.u32 %v991_v33, %v967_v16  ;;  %v996_v61 = vshll.u32 %v993_v1, 16  ;;  %v998_v41 = vshll.u32 %v994_v44, 16  ;;  %v1082_v12 = vadd.s32 1, %v3122_v50 }
 0x13a   : >> { %v974_v60 = vshll.u32 %v971_v11, 16  ;;  %v976_v46 = vshll.u32 %v972_v42, 16  ;;  %v975_v13 = vshrl.u32 %v971_v11, 16  ;;  %v997_v23 = vshrl.u32 %v993_v1, 16 }
 0x13b   : >> { %vm1000_vm10 = vc.u32 %v992_v51, %v996_v61  ;;  %v1002_v7 = vadd.s32 %v996_v61, %v992_v51  ;;  %vm1083_vm12 = vcmp.gt.s32.totalorder %v1082_v12, 0  ;;  %v977_v26 = vshrl.u32 %v972_v42, 16 }
 0x13c   : >> { %vm978_vm9 = vc.u32 %v970_v49, %v974_v60  ;;  %v980_v58 = vadd.s32 %v974_v60, %v970_v49  ;;  %v1001_v20 = vsel %vm1000_vm10, 1, %v3486_v27  ;;  %v1084_v21 = vsel %vm1083_vm12, %v1082_v12, 0 }
 0x13d   : >> { %v979_v18 = vsel %vm978_vm9, 1, %v3486_v27  ;;  %v1003_v24 = vadd.s32 %v1001_v20, %v995_v5  ;;  %vm1004_vm13 = vc.u32 %v1002_v7, %v998_v41  ;;  %v999_v57 = vshrl.u32 %v994_v44, 16 }
 0x13e   : >> { %v981_v19 = vadd.s32 %v979_v18, %v973_v59  ;;  %vm982_vm11 = vc.u32 %v980_v58, %v976_v46  ;;  %v1005_v16 = vsel %vm1004_vm13, 1, %v3486_v27  ;;  %v1086_v31 = vand.u32 31, %v1084_v21 }
 0x13f   : >> { %v983_v48 = vsel %vm982_vm11, 1, %v3486_v27  ;;  %v1007_v30 = vadd.s32 %v1005_v16, %v1003_v24  ;;  %v956_v15 = vsel %vm950_vm8, %v953_v54, %v955_v63  ;;  %v3948_v32 = vadd.s32 %v1002_v7, %v998_v41 }
 0x140   : >> { %v985_v29 = vadd.s32 %v983_v48, %v981_v19  ;;  %v1080_v33 = vor.u32 8388608, %v1079_v43  ;;  %v3950_v49 = vsub.s32 32, %v1086_v31  ;;  %v1089_v11 = vshll.u32 %v3480_v0, %v1086_v31 }
 0x141   : >> { %v1008_v34 = vadd.s32 %v1007_v30, %v997_v23  ;;  %v1092_v42 = vshll.u32 %v3481_v2, %v1086_v31  ;;  %v3956_v51 = vshrl.u32 %v1084_v21, 5  ;;  %v1095_v1 = vshll.u32 %v3482_v4, %v1086_v31 }
 0x142   : >> { %v986_v28 = vadd.s32 %v985_v29, %v975_v13  ;;  %v1098_v62 = vshll.u32 %v3483_v6, %v1086_v31  ;;  %v1090_v54 = vshrl.u32 %v3481_v2, %v3950_v49  ;;  %v1093_v59 = vshrl.u32 %v3482_v4, %v3950_v49 }
 0x143   : >> { %v1009_v44 = vadd.s32 %v1008_v34, %v999_v57  ;;  %v1101_v60 = vshll.u32 %v3484_v8, %v1086_v31  ;;  %v1010_v46 = vmul.u32 %v3900_v3, %v956_v15  ;;  %v1096_v63 = vshrl.u32 %v3483_v6, %v3950_v49 }
 0x144   : >> { %v3954_v50 = vadd.s32 %v986_v28, %v977_v26  ;;  %v1099_v5 = vshrl.u32 %v3484_v8, %v3950_v49  ;;  %v3972_v41 = vor.u32 %v1090_v54, %v1089_v11  ;;  %v3974_v58 = vor.u32 %v1093_v59, %v1092_v42 }
 0x145   : >> { %v1013_v61 = vadd.s32 1, %v1009_v44  ;;  %v1102_v43 = vshrl.u32 %v3485_v17, %v3950_v49  ;;  %v1097_v12 = vor.u32 %v1096_v63, %v1095_v1  ;;  %vm1104_vm15 = vcmp.lt.s32.totalorder %v3956_v51, 1 }
 0x146   : >> { %vm1012_vm14 = vc.u32 %v3954_v50, %v3948_v32  ;;  %v1100_v13 = vor.u32 %v1099_v5, %v1098_v62  ;;  %v3979_v3 = vshll.u32 %v1080_v33, 8  ;;  %vm1106_vm0 = vcmp.lt.s32.totalorder %v3956_v51, 3 }
 0x147   : >> { %v1014_v18 = vsel %vm1012_vm14, %v1013_v61, %v1009_v44  ;;  %v1103_v7 = vor.u32 %v1102_v43, %v1101_v60  ;;  %vm1107_vm1 = vcmp.lt.s32.totalorder %v3956_v51, 4  ;;  %vm1105_vm2 = vcmp.lt.s32.totalorder %v3956_v51, 2 }
 0x148   : >> { %v1015_v19 = vadd.s32 %v1014_v18, %v1010_v46  ;;  %v1112_v20 = vsel %vm1104_vm15, %v3972_v41, %v3974_v58  ;;  %v1113_v48 = vsel %vm1107_vm1, %v1100_v13, 920167782  ;;  %v1116_v23 = vsel %vm1104_vm15, %v3974_v58, %v1097_v12 }
 0x149   : >> { %v1117_v24 = vsel %vm1107_vm1, %v1103_v7, 1326507024  ;;  %v1114_v29 = vsel %vm1106_vm0, %v1097_v12, %v1113_v48  ;;  %v1121_v21 = vand.u32 65535, %v3979_v3  ;;  %v1122_v31 = vshrl.u32 %v3979_v3, 16 }
 0x14a   : >> { %v1016_v26 = vadd.s32 536870912, %v1015_v19  ;;  %v1118_v16 = vsel %vm1106_vm0, %v1100_v13, %v1117_v24  ;;  %v1115_v57 = vsel %vm1105_vm2, %v1112_v20, %v1114_v29  ;;  %vm919_vm10 = vcmp.lt.s32.totalorder %v3873_v25, 0 }
 0x14b   : >> { %v1119_v30 = vsel %vm1105_vm2, %v1116_v23, %v1118_v16  ;;  %v1145_v34 = vand.u32 65535, %v1115_v57  ;;  %v1146_v11 = vshrl.u32 %v1115_v57, 16  ;;  %v1088_v16 = vshrl.u32 %v3480_v0, %v3950_v49 }
 0x14c   : >> { %v4005_v15 = vshrl.u32 %v1016_v26, 30  ;;  %v1123_v28 = vand.u32 65535, %v1119_v30  ;;  %v1124_v33 = vshrl.u32 %v1119_v30, 16  ;;  %vm4031_vm11 = vcmp.le.f32.partialorder %v917_v10, 0.7853982 }
 0x14d   : >> { %v1148_v54 = vmul.u32 %v1146_v11, %v1121_v21  ;;  %v1147_v5 = vmul.u32 %v1145_v34, %v1121_v21  ;;  %v1149_v61 = vmul.u32 %v1145_v34, %v1122_v31  ;;  %v1150_v7 = vmul.u32 %v1146_v11, %v1122_v31 }
 0x14e   : >> { %v1018_v42 = vshll.u32 %v4005_v15, 30  ;;  %v1125_v1 = vmul.u32 %v1123_v28, %v1121_v21  ;;  %v1126_v62 = vmul.u32 %v1124_v33, %v1121_v21  ;;  %v1127_v44 = vmul.u32 %v1123_v28, %v1122_v31 }
 0x14f   : >> { %v1128_v60 = vmul.u32 %v1124_v33, %v1122_v31  ;;  %v1151_v20 = vshll.u32 %v1148_v54, 16  ;;  %v1153_v24 = vshll.u32 %v1149_v61, 16  ;;  %v1109_v31 = vsel %vm1107_vm1, %v1097_v12, 2102212464 }
 0x150   : >> { %v1019_v59 = vsub.s32 %v1015_v19, %v1018_v42  ;;  %v1129_v46 = vshll.u32 %v1126_v62, 16  ;;  %v1131_v63 = vshll.u32 %v1127_v44, 16  ;;  %v1130_v29 = vshrl.u32 %v1126_v62, 16 }
 0x151   : >> { %vm1155_vm6 = vc.u32 %v1147_v5, %v1151_v20  ;;  %v1157_v30 = vadd.s32 %v1151_v20, %v1147_v5  ;;  %v1011_v34 = vadd.s32 %v3948_v32, %v3954_v50  ;;  %v1132_v11 = vshrl.u32 %v1127_v44, 16 }
 0x152   : >> { %vm1020_vm3 = vcmp.lt.s32.totalorder %v1019_v59, 0  ;;  %v1021_v43 = vsub.s32 0, %v1019_v59  ;;  %vm1133_vm4 = vc.u32 %v1125_v1, %v1129_v46  ;;  %v1135_v13 = vadd.s32 %v1129_v46, %v1125_v1 }
 0x153   : >> { %v1134_v18 = vsel %vm1133_vm4, 1, %v3486_v27  ;;  %v1156_v57 = vsel %vm1155_vm6, 1, %v3486_v27  ;;  %vm1159_vm7 = vc.u32 %v1157_v30, %v1153_v24  ;;  %v1108_v49 = vsel %vm1104_vm15, %v1088_v16, %v3972_v41 }
 0x154   : >> { %v1022_v48 = vsel %vm1020_vm3, %v1021_v43, %v1019_v59  ;;  %v1136_v23 = vadd.s32 %v1134_v18, %v1128_v60  ;;  %vm1137_vm5 = vc.u32 %v1135_v13, %v1131_v63  ;;  %v1158_v33 = vadd.s32 %v1156_v57, %v1150_v7 }
 0x155   : >> { %v1023_v26 = vclz %v1022_v48  ;;  %v1138_v19 = vsel %vm1137_vm5, 1, %v3486_v27  ;;  %v1152_v62 = vshrl.u32 %v1148_v54, 16  ;;  %v1160_v60 = vsel %vm1159_vm7, 1, %v3486_v27 }
 0x156   : >> { %v1140_v21 = vadd.s32 %v1138_v19, %v1136_v23  ;;  %v1110_v12 = vsel %vm1106_vm0, %v3974_v58, %v1109_v31  ;;  %v1154_v43 = vshrl.u32 %v1149_v61, 16  ;;  %v1162_v32 = vadd.s32 %v1160_v60, %v1158_v33 }
 0x157   : >> { %v3120_v28 = vadd.s32 4294967294, %v1023_v26  ;;  %v1161_v18 = vadd.s32 %v1157_v30, %v1153_v24  ;;  %v1111_v7 = vsel %vm1105_vm2, %v1108_v49, %v1110_v12  ;;  %v1041_v24 = vsub.s32 4, %v4005_v15 }
 0x158   : >> { %v1141_v42 = vadd.s32 %v1140_v21, %v1130_v29  ;;  %v1163_v41 = vadd.s32 %v1162_v32, %v1152_v62  ;;  %v1165_v26 = vmul.u32 %v3979_v3, %v1111_v7  ;;  %vm1060_vm1 = vweird.f32 %v3873_v25 }
 0x159   : >> { %vm3121_vm8 = vcmp.lt.s32.totalorder %v3120_v28, 0  ;;  %vm1074_vm2 = vcmp.lt.s32.totalorder %v3908_v55, 0  ;;  %vm1073_vm3 = vcmp.le.f32.partialorder %v1072_v45, 0.7853982  ;;  %vm1215_vm7 = vweird.f32 %v3908_v55 }
 0x15a   : >> { %v1026_v1 = vsel %vm3121_vm8, 0, %v3120_v28  ;;  %v1142_v13 = vadd.s32 %v1141_v42, %v1132_v11  ;;  %v1164_v48 = vadd.s32 %v1163_v41, %v1154_v43  ;;  %v1042_v28 = vsel %vm919_vm10, %v1041_v24, %v4005_v15 }
 0x15b   : >> { %v1027_v46 = vsub.s32 32, %v1026_v1  ;;  %v1028_v63 = vshll.u32 %v1019_v59, %v1026_v1  ;;  %v1031_v5 = vsub.s32 4294967266, %v1026_v1  ;;  %v1044_v11 = vsel %vm4031_vm11, 0, %v1042_v28 }
 0x15c   : >> { %vm1167_vm9 = vc.u32 %v1142_v13, %v1161_v18  ;;  %v1168_v29 = vadd.s32 1, %v1164_v48 }
 0x15d   : >> { %v1029_v50 = vshrl.u32 %v1011_v34, %v1027_v46  ;;  %v1032_v44 = vadd.s32 127, %v1031_v5  ;;  %v1061_v46 = vadd.s32 3, %v1044_v11 }
 0x15e   : >> { %v1169_v61 = vsel %vm1167_vm9, %v1168_v29, %v1164_v48 }
 0x15f   : >> { %v1030_v54 = vor.u32 %v1029_v50, %v1028_v63  ;;  %v1033_v20 = vshll.u32 %v1032_v44, 23  ;;  %v1170_v16 = vadd.s32 %v1169_v61, %v1165_v26  ;;  %v1062_v50 = vand.u32 3, %v1061_v46 }
 0x161   : >> { %v1034_v23 = vor.u32 4788187, %v1033_v20  ;;  %v1037_v59 = vcvt.s32.f32 %v1030_v54  ;;  %v1171_v57 = vadd.s32 536870912, %v1170_v16  ;;  %v1166_v54 = vadd.s32 %v1161_v18, %v1142_v13 }
 0x162   : >> { %vm1067_vm14 = vcmp.eq.s32.totalorder %v1062_v50, 2  ;;  %vm1064_vm15 = vcmp.eq.s32.totalorder %v1062_v50, 0  ;;  %vm1063_vm0 = vcmp.lt.s32.totalorder %v1062_v50, 2 }
 0x163   : >> { %v1035_v58 = vand.u32 2147483647, %v1034_v23  ;;  %v1172_v3 = vshrl.u32 %v1171_v57, 30 }
 0x165   : >> { %v1038_v19 = vmul.f32 %v1037_v59, %v1035_v58  ;;  %v1173_v34 = vshll.u32 %v1172_v3, 30 }
 0x167   : >> { %v1039_v21 = vxor.u32 2147483648, %v1038_v19  ;;  %v1174_v1 = vsub.s32 %v1170_v16, %v1173_v34 }
 0x169   : >> { %v1040_v30 = vsel %vm919_vm10, %v1039_v21, %v1038_v19  ;;  %vm1175_vm12 = vcmp.lt.s32.totalorder %v1174_v1, 0  ;;  %v1176_v60 = vsub.s32 0, %v1174_v1 }
 0x16a   : >> { %v1043_v31 = vsel %vm4031_vm11, %v3873_v25, %v1040_v30 }
 0x16b   : >> { %v1045_v33 = vmul.f32 %v1043_v31, %v1043_v31  ;;  %v1177_v15 = vsel %vm1175_vm12, %v1176_v60, %v1174_v1 }
 0x16c   : >> { %v1178_v12 = vclz %v1177_v15 }
 0x16d   : >> { %v1046_v42 = vmul.f32 -0.001358992, %v1045_v33  ;;  %v1053_v10 = vmul.f32 -0.00019511016, %v1045_v33 }
 0x16e   : >> { %v3123_v44 = vadd.s32 4294967294, %v1178_v12 }
 0x16f   : >> { %v1047_v49 = vadd.f32 0.041655596, %v1046_v42  ;;  %v1054_v62 = vadd.f32 0.008332121, %v1053_v10  ;;  %v1196_v10 = vsub.s32 4, %v1172_v3 }
 0x170   : >> { %vm3124_vm13 = vcmp.lt.s32.totalorder %v3123_v44, 0 }
 0x171   : >> { %v1048_v63 = vmul.f32 %v1047_v49, %v1045_v33  ;;  %v1055_v5 = vmul.f32 %v1054_v62, %v1045_v33  ;;  %v1181_v23 = vsel %vm3124_vm13, 0, %v3123_v44  ;;  %v1197_v60 = vsel %vm1074_vm2, %v1196_v10, %v1172_v3 }
 0x172   : >> { %v1182_v59 = vsub.s32 32, %v1181_v23  ;;  %v1183_v26 = vshll.u32 %v1174_v1, %v1181_v23  ;;  %v1186_v29 = vsub.s32 4294967266, %v1181_v23 }
 0x173   : >> { %v1049_v43 = vadd.f32 -0.4999988, %v1048_v63  ;;  %v1056_v32 = vadd.f32 -0.16666654, %v1055_v5  ;;  %v1199_v5 = vsel %vm1073_vm3, 0, %v1197_v60 }
 0x174   : >> { %v1184_v19 = vshrl.u32 %v1166_v54, %v1182_v59  ;;  %v1187_v16 = vadd.s32 127, %v1186_v29  ;;  %v1216_v50 = vadd.s32 3, %v1199_v5 }
 0x175   : >> { %v1050_v7 = vmul.f32 %v1049_v43, %v1045_v33  ;;  %v1057_v41 = vmul.f32 %v1056_v32, %v1045_v33 }
 0x176   : >> { %v1185_v21 = vor.u32 %v1184_v19, %v1183_v26  ;;  %v1188_v13 = vshll.u32 %v1187_v16, 23 }
 0x177   : >> { %v1051_v20 = vadd.f32 1.0, %v1050_v7  ;;  %v1058_v48 = vadd.f32 1.0, %v1057_v41 }
 0x178   : >> { %v1189_v30 = vor.u32 4788187, %v1188_v13  ;;  %v1192_v28 = vcvt.s32.f32 %v1185_v21 }
 0x179   : >> { %v1059_v58 = vmul.f32 %v1058_v48, %v1043_v31  ;;  %v1068_v61 = vxor.u32 2147483648, %v1051_v20  ;;  %v1217_v48 = vand.u32 3, %v1216_v50 }
 0x17a   : >> { %v1190_v34 = vand.u32 2147483647, %v1189_v30 }
 0x17b   : >> { %v1065_v24 = vxor.u32 2147483648, %v1059_v58  ;;  %v1069_v51 = vsel %vm1067_vm14, %v1068_v61, %v1059_v58  ;;  %vm1222_vm4 = vcmp.eq.s32.totalorder %v1217_v48, 2  ;;  %vm1219_vm6 = vcmp.eq.s32.totalorder %v1217_v48, 0 }
 0x17c   : >> { %v1193_v42 = vmul.f32 %v1192_v28, %v1190_v34  ;;  %vm1218_vm8 = vcmp.lt.s32.totalorder %v1217_v48, 2 }
 0x17d   : >> { %v1066_v18 = vsel %vm1064_vm15, %v1051_v20, %v1065_v24 }
 0x17e   : >> { %v1070_v57 = vsel %vm1063_vm0, %v1066_v18, %v1069_v51  ;;  %v1194_v1 = vxor.u32 2147483648, %v1193_v42 }
 0x17f   : >> { %v1071_v33 = vsel %vm1060_vm1, nan, %v1070_v57 }
 0x180   : >> { %v1227_v11 = vmul.f32 %v1071_v33, %v1071_v33  ;;  %v1195_v49 = vsel %vm1074_vm2, %v1194_v1, %v1193_v42 }
 0x181   : >> { %v1198_v46 = vsel %vm1073_vm3, %v3908_v55, %v1195_v49 }
 0x182   : >> { %v1229_v31 = vsub.f32 %v1227_v11, %v3869_v52  ;;  %v1200_v63 = vmul.f32 %v1198_v46, %v1198_v46 }
 0x184   : >> { %v4047_v25 = vmul.f32 %v1229_v31, %v3858_v47  ;;  %v1201_v15 = vmul.f32 -0.001358992, %v1200_v63  ;;  %v1208_v12 = vmul.f32 -0.00019511016, %v1200_v63 }
 0x186   : >> { %v1237_v62 = vadd.f32 %v3461_v40, %v4047_v25  ;;  %v1202_v43 = vadd.f32 0.041655596, %v1201_v15  ;;  %v1209_v32 = vadd.f32 0.008332121, %v1208_v12 }
 0x188   : >> { %v4053_v52 = vsub.f32 %v1237_v62, %v3865_v14  ;;  %v1203_v7 = vmul.f32 %v1202_v43, %v1200_v63  ;;  %v1210_v3 = vmul.f32 %v1209_v32, %v1200_v63 }
 0x18a   : >> { %v4057_v45 = vadd.f32 %v4053_v52, %v3644_v35  ;;  %v1204_v54 = vadd.f32 -0.4999988, %v1203_v7  ;;  %v1211_v20 = vadd.f32 -0.16666654, %v1210_v3 }
 0x18c   : >> { %v1246_v44 = vand.u32 2139095040, %v4057_v45  ;;  %v1243_v14 = vand.u32 2147483647, %v4057_v45  ;;  %v1205_v59 = vmul.f32 %v1204_v54, %v1200_v63  ;;  %v1212_v26 = vmul.f32 %v1211_v20, %v1200_v63 }
 0x18e   : >> { %v1247_v41 = vshrl.u32 %v1246_v44, 23  ;;  %v1206_v58 = vadd.f32 1.0, %v1205_v59  ;;  %v1213_v61 = vadd.f32 1.0, %v1212_v26  ;;  %v1250_v19 = vand.u32 8388607, %v1243_v14 }
 0x190   : >> { %v3125_v23 = vadd.s32 4294967169, %v1247_v41  ;;  %v1214_v16 = vmul.f32 %v1213_v61, %v1198_v46  ;;  %v1223_v24 = vxor.u32 2147483648, %v1206_v58  ;;  %v1251_v30 = vor.u32 8388608, %v1250_v19 }
 0x192   : >> { %v1253_v29 = vadd.s32 1, %v3125_v23  ;;  %v1220_v18 = vxor.u32 2147483648, %v1214_v16  ;;  %v1224_v57 = vsel %vm1222_vm4, %v1223_v24, %v1214_v16  ;;  %v4079_v32 = vshll.u32 %v1251_v30, 8 }
 0x194   : >> { %vm1254_vm5 = vcmp.gt.s32.totalorder %v1253_v29, 0  ;;  %v1221_v11 = vsel %vm1219_vm6, %v1206_v58, %v1220_v18  ;;  %v1292_v59 = vand.u32 65535, %v4079_v32  ;;  %v1293_v58 = vshrl.u32 %v4079_v32, 16 }
 0x195   : >> { %v1255_v51 = vsel %vm1254_vm5, %v1253_v29, 0  ;;  %v1225_v1 = vsel %vm1218_vm8, %v1221_v11, %v1224_v57 }
 0x196   : >> { %v4063_v21 = vshrl.u32 %v1255_v51, 5  ;;  %v1257_v13 = vand.u32 31, %v1255_v51  ;;  %v1226_v60 = vsel %vm1215_vm7, nan, %v1225_v1 }
 0x197   : >> { %v1228_v15 = vmul.f32 %v1226_v60, %v1226_v60 }
 0x198   : >> { %v1258_v28 = vsub.s32 32, %v1257_v13  ;;  %v1260_v33 = vshll.u32 %v3480_v0, %v1257_v13  ;;  %v1263_v34 = vshll.u32 %v3481_v2, %v1257_v13  ;;  %v1266_v42 = vshll.u32 %v3482_v4, %v1257_v13 }
 0x199   : >> { %v1269_v31 = vshll.u32 %v3483_v6, %v1257_v13  ;;  %v1272_v10 = vshll.u32 %v3484_v8, %v1257_v13  ;;  %vm1275_vm9 = vcmp.lt.s32.totalorder %v4063_v21, 1  ;;  %vm1277_vm10 = vcmp.lt.s32.totalorder %v4063_v21, 3 }
 0x19a   : >> { %v1261_v49 = vshrl.u32 %v3481_v2, %v1258_v28  ;;  %v1264_v62 = vshrl.u32 %v3482_v4, %v1258_v28  ;;  %v1267_v46 = vshrl.u32 %v3483_v6, %v1258_v28  ;;  %v1270_v63 = vshrl.u32 %v3484_v8, %v1258_v28 }
 0x19b   : >> { %v1273_v5 = vshrl.u32 %v3485_v17, %v1258_v28  ;;  %v1230_v3 = vsub.f32 %v1228_v15, %v3896_v56  ;;  %vm1276_vm11 = vcmp.lt.s32.totalorder %v4063_v21, 2  ;;  %vm1278_vm12 = vcmp.lt.s32.totalorder %v4063_v21, 4 }
 0x19c   : >> { %v1262_v12 = vor.u32 %v1261_v49, %v1260_v33  ;;  %v1265_v43 = vor.u32 %v1264_v62, %v1263_v34  ;;  %v1268_v50 = vor.u32 %v1267_v46, %v1266_v42  ;;  %v1271_v44 = vor.u32 %v1270_v63, %v1269_v31 }
 0x19d   : >> { %v1274_v7 = vor.u32 %v1273_v5, %v1272_v10  ;;  %v4094_v48 = vmul.f32 %v1230_v3, %v3858_v47  ;;  %v1259_v24 = vshrl.u32 %v3480_v0, %v1258_v28 }
 0x19e   : >> { %v1283_v55 = vsel %vm1275_vm9, %v1262_v12, %v1265_v43  ;;  %v1284_v41 = vsel %vm1278_vm12, %v1271_v44, 920167782  ;;  %v1287_v54 = vsel %vm1275_vm9, %v1265_v43, %v1268_v50  ;;  %v1280_v42 = vsel %vm1278_vm12, %v1268_v50, 2102212464 }
 0x19f   : >> { %v1288_v20 = vsel %vm1278_vm12, %v1274_v7, 1326507024  ;;  %v1285_v56 = vsel %vm1277_vm10, %v1268_v50, %v1284_v41  ;;  %v1238_v61 = vadd.f32 %v3457_v39, %v4094_v48  ;;  %v1279_v49 = vsel %vm1275_vm9, %v1259_v24, %v1262_v12 }
 0x1a0   : >> { %v1289_v23 = vsel %vm1277_vm10, %v1271_v44, %v1288_v20  ;;  %v1286_v26 = vsel %vm1276_vm11, %v1283_v55, %v1285_v56  ;;  %v1281_v5 = vsel %vm1277_vm10, %v1265_v43, %v1280_v42 }
 0x1a1   : >> { %v1290_v29 = vsel %vm1276_vm11, %v1287_v54, %v1289_v23  ;;  %v1316_v51 = vand.u32 65535, %v1286_v26  ;;  %v1317_v13 = vshrl.u32 %v1286_v26, 16  ;;  %v4110_v18 = vsub.f32 %v1238_v61, %v3887_v53 }
 0x1a2   : >> { %v1294_v19 = vand.u32 65535, %v1290_v29  ;;  %v1295_v16 = vshrl.u32 %v1290_v29, 16  ;;  %v1282_v61 = vsel %vm1276_vm11, %v1279_v49, %v1281_v5 }
 0x1a3   : >> { %v1318_v34 = vmul.u32 %v1316_v51, %v1292_v59  ;;  %v1319_v11 = vmul.u32 %v1317_v13, %v1292_v59  ;;  %v1320_v1 = vmul.u32 %v1316_v51, %v1293_v58  ;;  %v1321_v62 = vmul.u32 %v1317_v13, %v1293_v58 }
 0x1a4   : >> { %v1296_v57 = vmul.u32 %v1294_v19, %v1292_v59  ;;  %v1297_v30 = vmul.u32 %v1295_v16, %v1292_v59  ;;  %v1298_v33 = vmul.u32 %v1294_v19, %v1293_v58  ;;  %v1299_v31 = vmul.u32 %v1295_v16, %v1293_v58 }
 0x1a5   : >> { %v1322_v60 = vshll.u32 %v1319_v11, 16  ;;  %v4118_v53 = vadd.f32 %v4110_v18, %v3646_v36  ;;  %v1324_v63 = vshll.u32 %v1320_v1, 16  ;;  %v1323_v55 = vshrl.u32 %v1319_v11, 16 }
 0x1a6   : >> { %v1300_v10 = vshll.u32 %v1297_v30, 16  ;;  %v1302_v28 = vshll.u32 %v1298_v33, 16  ;;  %v1301_v44 = vshrl.u32 %v1297_v30, 16  ;;  %v1303_v54 = vshrl.u32 %v1298_v33, 16 }
 0x1a7   : >> { %vm1326_vm14 = vc.u32 %v1318_v34, %v1322_v60  ;;  %v1328_v50 = vadd.s32 %v1322_v60, %v1318_v34  ;;  %v1401_v43 = vand.u32 2139095040, %v4118_v53  ;;  %v1325_v23 = vshrl.u32 %v1320_v1, 16 }
 0x1a8   : >> { %vm1304_vm13 = vc.u32 %v1296_v57, %v1300_v10  ;;  %v1306_v46 = vadd.s32 %v1300_v10, %v1296_v57  ;;  %v1327_v12 = vsel %vm1326_vm14, 1, %v3486_v27  ;;  %v1398_v16 = vand.u32 2147483647, %v4118_v53 }
 0x1a9   : >> { %v1305_v15 = vsel %vm1304_vm13, 1, %v3486_v27  ;;  %v1329_v41 = vadd.s32 %v1327_v12, %v1321_v62  ;;  %vm1330_vm0 = vc.u32 %v1328_v50, %v1324_v63  ;;  %v4127_v29 = vadd.s32 %v1328_v50, %v1324_v63 }
 0x1aa   : >> { %v1307_v7 = vadd.s32 %v1305_v15, %v1299_v31  ;;  %vm1308_vm15 = vc.u32 %v1306_v46, %v1302_v28  ;;  %v1331_v56 = vsel %vm1330_vm0, 1, %v3486_v27  ;;  %v1402_v58 = vshrl.u32 %v1401_v43, 23 }
 0x1ab   : >> { %v1309_v3 = vsel %vm1308_vm15, 1, %v3486_v27  ;;  %v1333_v59 = vadd.s32 %v1331_v56, %v1329_v41  ;;  %v1336_v57 = vmul.u32 %v4079_v32, %v1282_v61  ;;  %v1405_v34 = vand.u32 8388607, %v1398_v16 }
 0x1ac   : >> { %v1311_v20 = vadd.s32 %v1309_v3, %v1307_v7  ;;  %v3128_v51 = vadd.s32 4294967169, %v1402_v58  ;;  %vm4210_vm13 = vcmp.le.f32.partialorder %v1243_v14, 0.7853982  ;;  %vm1245_vm14 = vcmp.lt.s32.totalorder %v4057_v45, 0 }
 0x1ad   : >> { %v1334_v19 = vadd.s32 %v1333_v59, %v1323_v55  ;;  %v1406_v10 = vor.u32 8388608, %v1405_v34 }
 0x1ae   : >> { %v1312_v26 = vadd.s32 %v1311_v20, %v1301_v44  ;;  %v1408_v30 = vadd.s32 1, %v3128_v51 }
 0x1af   : >> { %v1335_v13 = vadd.s32 %v1334_v19, %v1325_v23  ;;  %v4160_v3 = vshll.u32 %v1406_v10, 8 }
 0x1b0   : >> { %v4132_v24 = vadd.s32 %v1312_v26, %v1303_v54  ;;  %vm1409_vm2 = vcmp.gt.s32.totalorder %v1408_v30, 0 }
 0x1b1   : >> { %v1339_v33 = vadd.s32 1, %v1335_v13  ;;  %v1410_v11 = vsel %vm1409_vm2, %v1408_v30, 0  ;;  %v1448_v34 = vshrl.u32 %v4160_v3, 16 }
 0x1b2   : >> { %vm1338_vm1 = vc.u32 %v4132_v24, %v4127_v29  ;;  %v1412_v31 = vand.u32 31, %v1410_v11  ;;  %v4139_v1 = vshrl.u32 %v1410_v11, 5 }
 0x1b3   : >> { %v1340_v21 = vsel %vm1338_vm1, %v1339_v33, %v1335_v13 }
 0x1b4   : >> { %v1341_v42 = vadd.s32 %v1340_v21, %v1336_v57  ;;  %v4141_v28 = vsub.s32 32, %v1412_v31  ;;  %v1415_v32 = vshll.u32 %v3480_v0, %v1412_v31  ;;  %v1418_v62 = vshll.u32 %v3481_v2, %v1412_v31 }
 0x1b5   : >> { %v1421_v60 = vshll.u32 %v3482_v4, %v1412_v31  ;;  %v1424_v46 = vshll.u32 %v3483_v6, %v1412_v31  ;;  %v1427_v63 = vshll.u32 %v3484_v8, %v1412_v31  ;;  %vm1430_vm3 = vcmp.lt.s32.totalorder %v4139_v1, 1 }
 0x1b6   : >> { %v1342_v49 = vadd.s32 536870912, %v1341_v42  ;;  %v1416_v15 = vshrl.u32 %v3481_v2, %v4141_v28  ;;  %v1419_v50 = vshrl.u32 %v3482_v4, %v4141_v28  ;;  %v1422_v44 = vshrl.u32 %v3483_v6, %v4141_v28 }
 0x1b7   : >> { %v1425_v7 = vshrl.u32 %v3484_v8, %v4141_v28  ;;  %v1428_v12 = vshrl.u32 %v3485_v17, %v4141_v28  ;;  %vm1432_vm4 = vcmp.lt.s32.totalorder %v4139_v1, 3  ;;  %vm1431_vm5 = vcmp.lt.s32.totalorder %v4139_v1, 2 }
 0x1b8   : >> { %v4148_v5 = vshrl.u32 %v1342_v49, 30  ;;  %v4163_v41 = vor.u32 %v1416_v15, %v1415_v32  ;;  %v4165_v54 = vor.u32 %v1419_v50, %v1418_v62  ;;  %v1423_v20 = vor.u32 %v1422_v44, %v1421_v60 }
 0x1b9   : >> { %v1426_v56 = vor.u32 %v1425_v7, %v1424_v46  ;;  %v1429_v43 = vor.u32 %v1428_v12, %v1427_v63  ;;  %vm1433_vm6 = vcmp.lt.s32.totalorder %v4139_v1, 4  ;;  %v1447_v57 = vand.u32 65535, %v4160_v3 }
 0x1ba   : >> { %v1344_v55 = vshll.u32 %v4148_v5, 30  ;;  %v1438_v59 = vsel %vm1430_vm3, %v4163_v41, %v4165_v54  ;;  %v1442_v51 = vsel %vm1430_vm3, %v4165_v54, %v1423_v20  ;;  %v1337_v15 = vadd.s32 %v4127_v29, %v4132_v24 }
 0x1bb   : >> { %v1439_v26 = vsel %vm1433_vm6, %v1426_v56, 920167782  ;;  %v1443_v13 = vsel %vm1433_vm6, %v1429_v43, 1326507024 }
 0x1bc   : >> { %v1345_v23 = vsub.s32 %v1341_v42, %v1344_v55  ;;  %v1440_v61 = vsel %vm1432_vm4, %v1423_v20, %v1439_v26  ;;  %v1444_v33 = vsel %vm1432_vm4, %v1426_v56, %v1443_v13  ;;  %v1414_v13 = vshrl.u32 %v3480_v0, %v4141_v28 }
 0x1bd   : >> { %v1441_v19 = vsel %vm1431_vm5, %v1438_v59, %v1440_v61  ;;  %v1445_v42 = vsel %vm1431_vm5, %v1442_v51, %v1444_v33 }
 0x1be   : >> { %vm1346_vm7 = vcmp.lt.s32.totalorder %v1345_v23, 0  ;;  %v1347_v58 = vsub.s32 0, %v1345_v23  ;;  %v1472_v21 = vshrl.u32 %v1441_v19, 16  ;;  %v1449_v31 = vand.u32 65535, %v1445_v42 }
 0x1bf   : >> { %v1450_v10 = vshrl.u32 %v1445_v42, 16  ;;  %v1471_v49 = vand.u32 65535, %v1441_v19 }
 0x1c0   : >> { %v1348_v30 = vsel %vm1346_vm7, %v1347_v58, %v1345_v23  ;;  %v1451_v62 = vmul.u32 %v1449_v31, %v1447_v57  ;;  %v1453_v46 = vmul.u32 %v1449_v31, %v1448_v34  ;;  %v1474_v63 = vmul.u32 %v1472_v21, %v1447_v57 }
 0x1c1   : >> { %v1349_v11 = vclz %v1348_v30  ;;  %v1452_v60 = vmul.u32 %v1450_v10, %v1447_v57  ;;  %v1473_v12 = vmul.u32 %v1471_v49, %v1447_v57  ;;  %v1475_v59 = vmul.u32 %v1471_v49, %v1448_v34 }
 0x1c2   : >> { %v1457_v7 = vshll.u32 %v1453_v46, 16  ;;  %v1454_v26 = vmul.u32 %v1450_v10, %v1448_v34  ;;  %v1477_v61 = vshll.u32 %v1474_v63, 16  ;;  %v1476_v24 = vmul.u32 %v1472_v21, %v1448_v34 }
 0x1c3   : >> { %v3126_v32 = vadd.s32 4294967294, %v1349_v11  ;;  %v1455_v44 = vshll.u32 %v1452_v60, 16  ;;  %v1479_v57 = vshll.u32 %v1475_v59, 16  ;;  %v1456_v11 = vshrl.u32 %v1452_v60, 16 }
 0x1c4   : >> { %vm1481_vm11 = vc.u32 %v1473_v12, %v1477_v61  ;;  %v1483_v28 = vadd.s32 %v1477_v61, %v1473_v12  ;;  %v1478_v21 = vshrl.u32 %v1474_v63, 16  ;;  %vm1399_vm7 = vcmp.le.f32.partialorder %v1398_v16, 0.7853982 }
 0x1c5   : >> { %vm3127_vm8 = vcmp.lt.s32.totalorder %v3126_v32, 0  ;;  %vm1459_vm9 = vc.u32 %v1451_v62, %v1455_v44  ;;  %v1461_v58 = vadd.s32 %v1455_v44, %v1451_v62  ;;  %v1458_v62 = vshrl.u32 %v1453_v46, 16 }
 0x1c6   : >> { %v1352_v50 = vsel %vm3127_vm8, 0, %v3126_v32  ;;  %v1460_v29 = vsel %vm1459_vm9, 1, %v3486_v27  ;;  %v1482_v32 = vsel %vm1481_vm11, 1, %v3486_v27  ;;  %vm1485_vm12 = vc.u32 %v1483_v28, %v1479_v57 }
 0x1c7   : >> { %v1353_v55 = vsub.s32 32, %v1352_v50  ;;  %v1354_v56 = vshll.u32 %v1345_v23, %v1352_v50  ;;  %v1357_v43 = vsub.s32 4294967266, %v1352_v50  ;;  %vm1463_vm10 = vc.u32 %v1461_v58, %v1457_v7 }
 0x1c8   : >> { %v1435_v23 = vsel %vm1433_vm6, %v1423_v20, 2102212464  ;;  %v1462_v42 = vadd.s32 %v1460_v29, %v1454_v26  ;;  %v1464_v31 = vsel %vm1463_vm10, 1, %v3486_v27  ;;  %v1484_v50 = vadd.s32 %v1482_v32, %v1476_v24 }
 0x1c9   : >> { %v1355_v19 = vshrl.u32 %v1337_v15, %v1353_v55  ;;  %v1358_v51 = vadd.s32 127, %v1357_v43  ;;  %v1434_v20 = vsel %vm1430_vm3, %v1414_v13, %v4163_v41  ;;  %v1436_v60 = vsel %vm1432_vm4, %v4165_v54, %v1435_v23 }
 0x1ca   : >> { %v1466_v15 = vadd.s32 %v1464_v31, %v1462_v42  ;;  %v1486_v7 = vsel %vm1485_vm12, 1, %v3486_v27  ;;  %v1487_v41 = vadd.s32 %v1483_v28, %v1479_v57  ;;  %v1367_v26 = vsub.s32 4, %v4148_v5 }
 0x1cb   : >> { %v1356_v30 = vor.u32 %v1355_v19, %v1354_v56  ;;  %v1359_v33 = vshll.u32 %v1358_v51, 23  ;;  %v1480_v56 = vshrl.u32 %v1475_v59, 16  ;;  %v1488_v12 = vadd.s32 %v1486_v7, %v1484_v50 }
 0x1cc   : >> { %v1467_v44 = vadd.s32 %v1466_v15, %v1456_v11  ;;  %v1437_v54 = vsel %vm1431_vm5, %v1434_v20, %v1436_v60  ;;  %v1368_v51 = vsel %vm1245_vm14, %v1367_v26, %v4148_v5  ;;  %vm1386_vm4 = vweird.f32 %v4057_v45 }
 0x1cd   : >> { %v1360_v10 = vor.u32 4788187, %v1359_v33  ;;  %v1363_v49 = vcvt.s32.f32 %v1356_v30  ;;  %v1489_v58 = vadd.s32 %v1488_v12, %v1478_v21  ;;  %v1491_v19 = vmul.u32 %v4160_v3, %v1437_v54 }
 0x1ce   : >> { %v1468_v63 = vadd.s32 %v1467_v44, %v1458_v62  ;;  %v1370_v1 = vsel %vm4210_vm13, 0, %v1368_v51  ;;  %vm1400_vm6 = vcmp.lt.s32.totalorder %v4118_v53, 0 }
 0x1cf   : >> { %v1361_v34 = vand.u32 2147483647, %v1360_v10  ;;  %v1490_v59 = vadd.s32 %v1489_v58, %v1480_v56 }
 0x1d0   : >> { %vm1493_vm15 = vc.u32 %v1468_v63, %v1487_v41  ;;  %v1492_v58 = vadd.s32 %v1487_v41, %v1468_v63 }
 0x1d1   : >> { %v1364_v55 = vmul.f32 %v1363_v49, %v1361_v34  ;;  %v1494_v29 = vadd.s32 1, %v1490_v59  ;;  %v1387_v49 = vadd.s32 3, %v1370_v1 }
 0x1d3   : >> { %v1365_v43 = vxor.u32 2147483648, %v1364_v55  ;;  %v1495_v33 = vsel %vm1493_vm15, %v1494_v29, %v1490_v59  ;;  %v1388_v50 = vand.u32 3, %v1387_v49 }
 0x1d4   : >> { %v1496_v23 = vadd.s32 %v1495_v33, %v1491_v19 }
 0x1d5   : >> { %v1366_v61 = vsel %vm1245_vm14, %v1365_v43, %v1364_v55  ;;  %vm1393_vm1 = vcmp.eq.s32.totalorder %v1388_v50, 2  ;;  %vm1390_vm2 = vcmp.eq.s32.totalorder %v1388_v50, 0  ;;  %vm1389_vm3 = vcmp.lt.s32.totalorder %v1388_v50, 2 }
 0x1d6   : >> { %v1369_v14 = vsel %vm4210_vm13, %v4057_v45, %v1366_v61  ;;  %v1497_v42 = vadd.s32 536870912, %v1496_v23  ;;  %v1563_v45 = vadd.f32 %v3461_v40, %v3862_v9  ;;  %vm1541_vm13 = vweird.f32 %v4118_v53 }
 0x1d7   : >> { %v1371_v13 = vmul.f32 %v1369_v14, %v1369_v14 }
 0x1d8   : >> { %v1498_v32 = vshrl.u32 %v1497_v42, 30  ;;  %v1565_v42 = vsub.f32 %v1563_v45, %v4047_v25 }
 0x1d9   : >> { %v1372_v24 = vmul.f32 -0.001358992, %v1371_v13  ;;  %v1379_v30 = vmul.f32 -0.00019511016, %v1371_v13 }
 0x1da   : >> { %v1499_v62 = vshll.u32 %v1498_v32, 30 }
 0x1db   : >> { %v1373_v57 = vadd.f32 0.041655596, %v1372_v24  ;;  %v1380_v11 = vadd.f32 0.008332121, %v1379_v30 }
 0x1dc   : >> { %v1500_v34 = vsub.s32 %v1496_v23, %v1499_v62 }
 0x1dd   : >> { %v1374_v31 = vmul.f32 %v1373_v57, %v1371_v13  ;;  %v1381_v10 = vmul.f32 %v1380_v11, %v1371_v13  ;;  %v1522_v11 = vsub.s32 4, %v1498_v32 }
 0x1de   : >> { %vm1501_vm0 = vcmp.lt.s32.totalorder %v1500_v34, 0  ;;  %v1502_v60 = vsub.s32 0, %v1500_v34 }
 0x1df   : >> { %v1375_v3 = vadd.f32 -0.4999988, %v1374_v31  ;;  %v1382_v28 = vadd.f32 -0.16666654, %v1381_v10  ;;  %v1523_v10 = vsel %vm1400_vm6, %v1522_v11, %v1498_v32 }
 0x1e0   : >> { %v1503_v55 = vsel %vm1501_vm0, %v1502_v60, %v1500_v34  ;;  %v1525_v62 = vsel %vm1399_vm7, 0, %v1523_v10 }
 0x1e1   : >> { %v1376_v5 = vmul.f32 %v1375_v3, %v1371_v13  ;;  %v1383_v15 = vmul.f32 %v1382_v28, %v1371_v13  ;;  %v1504_v12 = vclz %v1503_v55 }
 0x1e3   : >> { %v1377_v21 = vadd.f32 1.0, %v1376_v5  ;;  %v1384_v20 = vadd.f32 1.0, %v1383_v15  ;;  %v3129_v26 = vadd.s32 4294967294, %v1504_v12 }
 0x1e5   : >> { %v1385_v44 = vmul.f32 %v1384_v20, %v1369_v14  ;;  %v1394_v7 = vxor.u32 2147483648, %v1377_v21  ;;  %vm3130_vm5 = vcmp.lt.s32.totalorder %v3129_v26, 0 }
 0x1e6   : >> { %v1507_v61 = vsel %vm3130_vm5, 0, %v3129_v26 }
 0x1e7   : >> { %v1391_v56 = vxor.u32 2147483648, %v1385_v44  ;;  %v1395_v46 = vsel %vm1393_vm1, %v1394_v7, %v1385_v44  ;;  %v1508_v59 = vsub.s32 32, %v1507_v61  ;;  %v1509_v19 = vshll.u32 %v1500_v34, %v1507_v61 }
 0x1e8   : >> { %v1512_v51 = vsub.s32 4294967266, %v1507_v61  ;;  %v1542_v34 = vadd.s32 3, %v1525_v62 }
 0x1e9   : >> { %v1392_v43 = vsel %vm1390_vm2, %v1377_v21, %v1391_v56  ;;  %v1510_v13 = vshrl.u32 %v1492_v58, %v1508_v59 }
 0x1ea   : >> { %v1396_v54 = vsel %vm1389_vm3, %v1392_v43, %v1395_v46  ;;  %v1513_v29 = vadd.s32 127, %v1512_v51  ;;  %v1543_v55 = vand.u32 3, %v1542_v34 }
 0x1eb   : >> { %v1397_v14 = vsel %vm1386_vm4, nan, %v1396_v54  ;;  %v1511_v24 = vor.u32 %v1510_v13, %v1509_v19 }
 0x1ec   : >> { %v1514_v30 = vshll.u32 %v1513_v29, 23  ;;  %v1553_v33 = vmul.f32 %v1397_v14, %v1397_v14  ;;  %vm1544_vm9 = vcmp.lt.s32.totalorder %v1543_v55, 2  ;;  %vm1545_vm10 = vcmp.eq.s32.totalorder %v1543_v55, 0 }
 0x1ed   : >> { %v1518_v23 = vcvt.s32.f32 %v1511_v24  ;;  %vm1548_vm11 = vcmp.eq.s32.totalorder %v1543_v55, 2 }
 0x1ee   : >> { %v1515_v1 = vor.u32 4788187, %v1514_v30  ;;  %v1555_v57 = vsub.f32 %v1553_v33, %v4053_v52 }
 0x1f0   : >> { %v1516_v63 = vand.u32 2147483647, %v1515_v1  ;;  %v4230_v41 = vmul.f32 %v1555_v57, %v3858_v47 }
 0x1f2   : >> { %v1519_v31 = vmul.f32 %v1518_v23, %v1516_v63  ;;  %v4235_v49 = vadd.f32 %v1565_v42, %v4230_v41 }
 0x1f4   : >> { %v1520_v52 = vxor.u32 2147483648, %v1519_v31  ;;  %v4241_v3 = vadd.f32 %v4235_v49, %v3644_v35 }
 0x1f6   : >> { %v1521_v28 = vsel %vm1400_vm6, %v1520_v52, %v1519_v31  ;;  %v1574_v15 = vand.u32 2139095040, %v4241_v3  ;;  %v1571_v32 = vand.u32 2147483647, %v4241_v3 }
 0x1f7   : >> { %v1524_v5 = vsel %vm1399_vm7, %v4118_v53, %v1521_v28 }
 0x1f8   : >> { %v1526_v50 = vmul.f32 %v1524_v5, %v1524_v5  ;;  %v1575_v21 = vshrl.u32 %v1574_v15, 23  ;;  %v1578_v56 = vand.u32 8388607, %v1571_v32 }
 0x1fa   : >> { %v1527_v20 = vmul.f32 -0.001358992, %v1526_v50  ;;  %v1534_v60 = vmul.f32 -0.00019511016, %v1526_v50  ;;  %v3131_v44 = vadd.s32 4294967169, %v1575_v21  ;;  %v1579_v61 = vor.u32 8388608, %v1578_v56 }
 0x1fc   : >> { %v1528_v16 = vadd.f32 0.041655596, %v1527_v20  ;;  %v1535_v7 = vadd.f32 0.008332121, %v1534_v60  ;;  %v1581_v12 = vadd.s32 1, %v3131_v44  ;;  %v4258_v42 = vshll.u32 %v1579_v61, 8 }
 0x1fd   : >> { %v1564_v44 = vadd.f32 %v3457_v39, %v3882_v22 }
 0x1fe   : >> { %v1529_v46 = vmul.f32 %v1528_v16, %v1526_v50  ;;  %v1536_v43 = vmul.f32 %v1535_v7, %v1526_v50  ;;  %vm1582_vm8 = vcmp.gt.s32.totalorder %v1581_v12, 0 }
 0x1ff   : >> { %v1583_v58 = vsel %vm1582_vm8, %v1581_v12, 0 }
 0x200   : >> { %v1530_v26 = vadd.f32 -0.4999988, %v1529_v46  ;;  %v1537_v54 = vadd.f32 -0.16666654, %v1536_v43  ;;  %v1585_v59 = vand.u32 31, %v1583_v58  ;;  %v4248_v14 = vshrl.u32 %v1583_v58, 5 }
 0x201   : >> { %v1620_v46 = vand.u32 65535, %v4258_v42  ;;  %v1621_v58 = vshrl.u32 %v4258_v42, 16 }
 0x202   : >> { %v1531_v19 = vmul.f32 %v1530_v26, %v1526_v50  ;;  %v1538_v51 = vmul.f32 %v1537_v54, %v1526_v50  ;;  %v1586_v13 = vsub.s32 32, %v1585_v59  ;;  %v1588_v29 = vshll.u32 %v3480_v0, %v1585_v59 }
 0x203   : >> { %v1591_v24 = vshll.u32 %v3481_v2, %v1585_v59  ;;  %v1594_v30 = vshll.u32 %v3482_v4, %v1585_v59  ;;  %v1597_v23 = vshll.u32 %v3483_v6, %v1585_v59  ;;  %v1600_v57 = vshll.u32 %v3484_v8, %v1585_v59 }
 0x204   : >> { %v1532_v33 = vadd.f32 1.0, %v1531_v19  ;;  %v1539_v1 = vadd.f32 1.0, %v1538_v51  ;;  %v1589_v11 = vshrl.u32 %v3481_v2, %v1586_v13  ;;  %v1592_v45 = vshrl.u32 %v3482_v4, %v1586_v13 }
 0x205   : >> { %v1595_v63 = vshrl.u32 %v3483_v6, %v1586_v13  ;;  %v1598_v52 = vshrl.u32 %v3484_v8, %v1586_v13  ;;  %v1601_v28 = vshrl.u32 %v3485_v17, %v1586_v13  ;;  %vm1603_vm12 = vcmp.lt.s32.totalorder %v4248_v14, 1 }
 0x206   : >> { %v1540_v31 = vmul.f32 %v1539_v1, %v1524_v5  ;;  %v1549_v10 = vxor.u32 2147483648, %v1532_v33  ;;  %v1590_v62 = vor.u32 %v1589_v11, %v1588_v29  ;;  %v4262_v15 = vor.u32 %v1592_v45, %v1591_v24 }
 0x207   : >> { %v1596_v50 = vor.u32 %v1595_v63, %v1594_v30  ;;  %v1599_v20 = vor.u32 %v1598_v52, %v1597_v23  ;;  %v1602_v60 = vor.u32 %v1601_v28, %v1600_v57  ;;  %vm1604_vm14 = vcmp.lt.s32.totalorder %v4248_v14, 2 }
 0x208   : >> { %v1546_v34 = vxor.u32 2147483648, %v1540_v31  ;;  %v1550_v21 = vsel %vm1548_vm11, %v1549_v10, %v1540_v31  ;;  %vm1605_vm15 = vcmp.lt.s32.totalorder %v4248_v14, 3  ;;  %vm1606_vm0 = vcmp.lt.s32.totalorder %v4248_v14, 4 }
 0x209   : >> { %v1611_v16 = vsel %vm1603_vm12, %v1590_v62, %v4262_v15  ;;  %v1612_v7 = vsel %vm1606_vm0, %v1599_v20, 920167782  ;;  %v1615_v12 = vsel %vm1603_vm12, %v4262_v15, %v1596_v50  ;;  %v1616_v54 = vsel %vm1606_vm0, %v1602_v60, 1326507024 }
 0x20a   : >> { %v1547_v5 = vsel %vm1545_vm10, %v1532_v33, %v1546_v34  ;;  %v1613_v56 = vsel %vm1605_vm15, %v1596_v50, %v1612_v7  ;;  %v1617_v61 = vsel %vm1605_vm15, %v1599_v20, %v1616_v54  ;;  %v1566_v24 = vsub.f32 %v1564_v44, %v4094_v48 }
 0x20b   : >> { %v1551_v53 = vsel %vm1544_vm9, %v1547_v5, %v1550_v21  ;;  %v1614_v26 = vsel %vm1604_vm14, %v1611_v16, %v1613_v56  ;;  %v1618_v51 = vsel %vm1604_vm14, %v1615_v12, %v1617_v61  ;;  %v1587_v1 = vshrl.u32 %v3480_v0, %v1586_v13 }
 0x20c   : >> { %v1552_v43 = vsel %vm1541_vm13, nan, %v1551_v53  ;;  %v1644_v59 = vand.u32 65535, %v1614_v26  ;;  %v1645_v19 = vshrl.u32 %v1614_v26, 16  ;;  %v1622_v30 = vand.u32 65535, %v1618_v51 }
 0x20d   : >> { %v1554_v55 = vmul.f32 %v1552_v43, %v1552_v43  ;;  %v1623_v33 = vshrl.u32 %v1618_v51, 16  ;;  %v1607_v5 = vsel %vm1603_vm12, %v1587_v1, %v1590_v62  ;;  %v1608_v16 = vsel %vm1606_vm0, %v1596_v50, 2102212464 }
 0x20e   : >> { %v1646_v23 = vmul.u32 %v1644_v59, %v1620_v46  ;;  %v1647_v57 = vmul.u32 %v1645_v19, %v1620_v46  ;;  %v1648_v11 = vmul.u32 %v1644_v59, %v1621_v58  ;;  %v1624_v63 = vmul.u32 %v1622_v30, %v1620_v46 }
 0x20f   : >> { %v1556_v29 = vsub.f32 %v1554_v55, %v4110_v18  ;;  %v1625_v31 = vmul.u32 %v1623_v33, %v1620_v46  ;;  %v1626_v10 = vmul.u32 %v1622_v30, %v1621_v58  ;;  %v1627_v18 = vmul.u32 %v1623_v33, %v1621_v58 }
 0x210   : >> { %v1650_v52 = vshll.u32 %v1647_v57, 16  ;;  %v1649_v21 = vmul.u32 %v1645_v19, %v1621_v58  ;;  %v1652_v60 = vshll.u32 %v1648_v11, 16  ;;  %v1651_v54 = vshrl.u32 %v1647_v57, 16 }
 0x211   : >> { %v4298_v45 = vmul.f32 %v1556_v29, %v3858_v47  ;;  %v1628_v34 = vshll.u32 %v1625_v31, 16  ;;  %v1630_v20 = vshll.u32 %v1626_v10, 16  ;;  %v1629_v12 = vshrl.u32 %v1625_v31, 16 }
 0x212   : >> { %vm1654_vm1 = vc.u32 %v1646_v23, %v1650_v52  ;;  %v1656_v56 = vadd.s32 %v1650_v52, %v1646_v23  ;;  %v1609_v58 = vsel %vm1605_vm15, %v4262_v15, %v1608_v16  ;;  %v1631_v50 = vshrl.u32 %v1626_v10, 16 }
 0x213   : >> { %v4301_v28 = vadd.f32 %v1566_v24, %v4298_v45  ;;  %vm1632_vm2 = vc.u32 %v1624_v63, %v1628_v34  ;;  %v1634_v44 = vadd.s32 %v1628_v34, %v1624_v63  ;;  %v1655_v53 = vsel %vm1654_vm1, 1, %v3486_v27 }
 0x214   : >> { %v1633_v7 = vsel %vm1632_vm2, 1, %v3486_v27  ;;  %v1657_v43 = vadd.s32 %v1655_v53, %v1649_v21  ;;  %vm1658_vm4 = vc.u32 %v1656_v56, %v1652_v60  ;;  %v1653_v59 = vshrl.u32 %v1648_v11, 16 }
 0x215   : >> { %v4305_v13 = vadd.f32 %v4301_v28, %v3646_v36  ;;  %v1635_v46 = vadd.s32 %v1633_v7, %v1627_v18  ;;  %vm1636_vm3 = vc.u32 %v1634_v44, %v1630_v20  ;;  %v1659_v61 = vsel %vm1658_vm4, 1, %v3486_v27 }
 0x216   : >> { %v1637_v26 = vsel %vm1636_vm3, 1, %v3486_v27  ;;  %v1661_v19 = vadd.s32 %v1659_v61, %v1657_v43  ;;  %v4319_v24 = vadd.s32 %v1656_v56, %v1652_v60  ;;  %v1610_v33 = vsel %vm1604_vm14, %v1607_v5, %v1609_v58 }
 0x217   : >> { %v1729_v62 = vand.u32 2139095040, %v4305_v13  ;;  %v1639_v55 = vadd.s32 %v1637_v26, %v1635_v46  ;;  %v1726_v30 = vand.u32 2147483647, %v4305_v13  ;;  %v1664_v31 = vmul.u32 %v4258_v42, %v1610_v33 }
 0x218   : >> { %v1662_v1 = vadd.s32 %v1661_v19, %v1651_v54  ;;  %vm1573_vm1 = vcmp.lt.s32.totalorder %v4241_v3, 0  ;;  %vm4406_vm2 = vcmp.le.f32.partialorder %v1571_v32, 0.7853982 }
 0x219   : >> { %v1730_v51 = vshrl.u32 %v1729_v62, 23  ;;  %v1640_v29 = vadd.s32 %v1639_v55, %v1629_v12  ;;  %v1733_v11 = vand.u32 8388607, %v1726_v30 }
 0x21a   : >> { %v1663_v15 = vadd.s32 %v1662_v1, %v1653_v59 }
 0x21b   : >> { %v3134_v23 = vadd.s32 4294967169, %v1730_v51  ;;  %v4324_v57 = vadd.s32 %v1640_v29, %v1631_v50  ;;  %v1734_v21 = vor.u32 8388608, %v1733_v11 }
 0x21c   : >> { %v1667_v10 = vadd.s32 1, %v1663_v15 }
 0x21d   : >> { %v1736_v63 = vadd.s32 1, %v3134_v23  ;;  %vm1666_vm5 = vc.u32 %v4324_v57, %v4319_v24  ;;  %v4357_v50 = vshll.u32 %v1734_v21, 8 }
 0x21e   : >> { %v1668_v18 = vsel %vm1666_vm5, %v1667_v10, %v1663_v15 }
 0x21f   : >> { %vm1737_vm6 = vcmp.gt.s32.totalorder %v1736_v63, 0  ;;  %v1669_v34 = vadd.s32 %v1668_v18, %v1664_v31  ;;  %v1775_v1 = vand.u32 65535, %v4357_v50  ;;  %v1776_v15 = vshrl.u32 %v4357_v50, 16 }
 0x220   : >> { %v1738_v52 = vsel %vm1737_vm6, %v1736_v63, 0 }
 0x221   : >> { %v1740_v14 = vand.u32 31, %v1738_v52  ;;  %v4331_v20 = vshrl.u32 %v1738_v52, 5  ;;  %v1670_v16 = vadd.s32 536870912, %v1669_v34 }
 0x223   : >> { %v4333_v60 = vsub.s32 32, %v1740_v14  ;;  %v1743_v5 = vshll.u32 %v3480_v0, %v1740_v14  ;;  %v1746_v42 = vshll.u32 %v3481_v2, %v1740_v14  ;;  %v1749_v44 = vshll.u32 %v3482_v4, %v1740_v14 }
 0x224   : >> { %v1752_v7 = vshll.u32 %v3483_v6, %v1740_v14  ;;  %v1755_v53 = vshll.u32 %v3484_v8, %v1740_v14  ;;  %v4346_v43 = vshrl.u32 %v1670_v16, 30  ;;  %vm1758_vm7 = vcmp.lt.s32.totalorder %v4331_v20, 1 }
 0x225   : >> { %v1744_v56 = vshrl.u32 %v3481_v2, %v4333_v60  ;;  %v1747_v12 = vshrl.u32 %v3482_v4, %v4333_v60  ;;  %v1750_v46 = vshrl.u32 %v3483_v6, %v4333_v60  ;;  %v1753_v26 = vshrl.u32 %v3484_v8, %v4333_v60 }
 0x226   : >> { %v1756_v54 = vshrl.u32 %v3485_v17, %v4333_v60  ;;  %v1672_v4 = vshll.u32 %v4346_v43, 30  ;;  %vm1760_vm8 = vcmp.lt.s32.totalorder %v4331_v20, 3  ;;  %vm1759_vm9 = vcmp.lt.s32.totalorder %v4331_v20, 2 }
 0x227   : >> { %v4353_v62 = vor.u32 %v1744_v56, %v1743_v5  ;;  %v4355_v58 = vor.u32 %v1747_v12, %v1746_v42  ;;  %v1751_v2 = vor.u32 %v1750_v46, %v1749_v44  ;;  %v1754_v6 = vor.u32 %v1753_v26, %v1752_v7 }
 0x228   : >> { %v1757_v55 = vor.u32 %v1756_v54, %v1755_v53  ;;  %vm1761_vm10 = vcmp.lt.s32.totalorder %v4331_v20, 4  ;;  %v1673_v17 = vsub.s32 %v1669_v34, %v1672_v4  ;;  %v1665_v53 = vadd.s32 %v4319_v24, %v4324_v57 }
 0x229   : >> { %v1766_v8 = vsel %vm1758_vm7, %v4353_v62, %v4355_v58  ;;  %v1767_v61 = vsel %vm1761_vm10, %v1754_v6, 920167782  ;;  %v1770_v19 = vsel %vm1758_vm7, %v4355_v58, %v1751_v2 }
 0x22a   : >> { %v1768_v59 = vsel %vm1760_vm8, %v1751_v2, %v1767_v61  ;;  %v1771_v51 = vsel %vm1761_vm10, %v1757_v55, 1326507024  ;;  %vm1674_vm11 = vcmp.lt.s32.totalorder %v1673_v17, 0  ;;  %v1675_v29 = vsub.s32 0, %v1673_v17 }
 0x22b   : >> { %v1769_v33 = vsel %vm1759_vm9, %v1766_v8, %v1768_v59  ;;  %v1772_v23 = vsel %vm1760_vm8, %v1754_v6, %v1771_v51  ;;  %v1742_v51 = vshrl.u32 %v3480_v0, %v4333_v60 }
 0x22c   : >> { %v1800_v63 = vshrl.u32 %v1769_v33, 16  ;;  %v1676_v31 = vsel %vm1674_vm11, %v1675_v29, %v1673_v17  ;;  %v1773_v11 = vsel %vm1759_vm9, %v1770_v19, %v1772_v23  ;;  %v1799_v10 = vand.u32 65535, %v1769_v33 }
 0x22d   : >> { %v1677_v52 = vclz %v1676_v31  ;;  %v1777_v18 = vand.u32 65535, %v1773_v11  ;;  %v1778_v14 = vshrl.u32 %v1773_v11, 16  ;;  %vm4432_vm11 = vcmp.le.f32.partialorder %v1726_v30, 0.7853982 }
 0x22e   : >> { %v1802_v34 = vmul.u32 %v1800_v63, %v1775_v1  ;;  %v1801_v16 = vmul.u32 %v1799_v10, %v1775_v1  ;;  %v1803_v26 = vmul.u32 %v1799_v10, %v1776_v15  ;;  %v1804_v55 = vmul.u32 %v1800_v63, %v1776_v15 }
 0x22f   : >> { %v3132_v21 = vadd.s32 4294967294, %v1677_v52  ;;  %v1780_v5 = vmul.u32 %v1778_v14, %v1775_v1  ;;  %v1781_v42 = vmul.u32 %v1777_v18, %v1776_v15  ;;  %v1779_v44 = vmul.u32 %v1777_v18, %v1775_v1 }
 0x230   : >> { %v1805_v7 = vshll.u32 %v1802_v34, 16  ;;  %v1782_v8 = vmul.u32 %v1778_v14, %v1776_v15  ;;  %v1807_v57 = vshll.u32 %v1803_v26, 16  ;;  %v1806_v18 = vshrl.u32 %v1802_v34, 16 }
 0x231   : >> { %vm3133_vm12 = vcmp.lt.s32.totalorder %v3132_v21, 0  ;;  %v1783_v56 = vshll.u32 %v1780_v5, 16  ;;  %v1785_v46 = vshll.u32 %v1781_v42, 16  ;;  %v1784_v23 = vshrl.u32 %v1780_v5, 16 }
 0x232   : >> { %v1680_v12 = vsel %vm3133_vm12, 0, %v3132_v21  ;;  %vm1809_vm14 = vc.u32 %v1801_v16, %v1805_v7  ;;  %v1811_v31 = vadd.s32 %v1805_v7, %v1801_v16  ;;  %v1786_v0 = vshrl.u32 %v1781_v42, 16 }
 0x233   : >> { %v1681_v54 = vsub.s32 32, %v1680_v12  ;;  %v1682_v4 = vshll.u32 %v1673_v17, %v1680_v12  ;;  %v1685_v6 = vsub.s32 4294967266, %v1680_v12  ;;  %vm1787_vm13 = vc.u32 %v1779_v44, %v1783_v56 }
 0x234   : >> { %v1789_v61 = vadd.s32 %v1783_v56, %v1779_v44  ;;  %v1788_v24 = vsel %vm1787_vm13, 1, %v3486_v27  ;;  %v1810_v29 = vsel %vm1809_vm14, 1, %v3486_v27  ;;  %v1763_v17 = vsel %vm1761_vm10, %v1751_v2, 2102212464 }
 0x235   : >> { %v1683_v59 = vshrl.u32 %v1665_v53, %v1681_v54  ;;  %v1686_v19 = vadd.s32 127, %v1685_v6  ;;  %v1790_v15 = vadd.s32 %v1788_v24, %v1782_v8  ;;  %v1812_v11 = vadd.s32 %v1810_v29, %v1804_v55 }
 0x236   : >> { %vm1791_vm15 = vc.u32 %v1789_v61, %v1785_v46  ;;  %vm1813_vm0 = vc.u32 %v1811_v31, %v1807_v57  ;;  %v1762_v21 = vsel %vm1758_vm7, %v1742_v51, %v4353_v62  ;;  %v1764_v2 = vsel %vm1760_vm8, %v4355_v58, %v1763_v17 }
 0x237   : >> { %v1684_v33 = vor.u32 %v1683_v59, %v1682_v4  ;;  %v1687_v1 = vshll.u32 %v1686_v19, 23  ;;  %v1792_v63 = vsel %vm1791_vm15, 1, %v3486_v27  ;;  %v1814_v5 = vsel %vm1813_vm0, 1, %v3486_v27 }
 0x238   : >> { %v1794_v60 = vadd.s32 %v1792_v63, %v1790_v15  ;;  %v1808_v16 = vshrl.u32 %v1803_v26, 16  ;;  %v1816_v7 = vadd.s32 %v1814_v5, %v1812_v11  ;;  %v1815_v53 = vadd.s32 %v1811_v31, %v1807_v57 }
 0x239   : >> { %v1688_v10 = vor.u32 4788187, %v1687_v1  ;;  %v1691_v52 = vcvt.s32.f32 %v1684_v33  ;;  %v1695_v34 = vsub.s32 4, %v4346_v43  ;;  %v1765_v56 = vsel %vm1759_vm9, %v1762_v21, %v1764_v2 }
 0x23a   : >> { %v1795_v44 = vadd.s32 %v1794_v60, %v1784_v23  ;;  %v1817_v62 = vadd.s32 %v1816_v7, %v1806_v18  ;;  %v1819_v54 = vmul.u32 %v4357_v50, %v1765_v56  ;;  %vm1714_vm8 = vweird.f32 %v4241_v3 }
 0x23b   : >> { %v1689_v14 = vand.u32 2147483647, %v1688_v10  ;;  %v1696_v4 = vsel %vm1573_vm1, %v1695_v34, %v4346_v43  ;;  %vm1728_vm10 = vcmp.lt.s32.totalorder %v4305_v13, 0  ;;  %vm1869_vm15 = vweird.f32 %v4305_v13 }
 0x23c   : >> { %v1796_v12 = vadd.s32 %v1795_v44, %v1786_v0  ;;  %v1818_v46 = vadd.s32 %v1817_v62, %v1808_v16  ;;  %v1698_v32 = vsel %vm4406_vm2, 0, %v1696_v4  ;;  %v1233_v16 = vmul.f32 3.0, %v4047_v25 }
 0x23d   : >> { %v1692_v42 = vmul.f32 %v1691_v52, %v1689_v14  ;;  %v1715_v50 = vadd.s32 3, %v1698_v32  ;;  %vm2960_vm0 = vcmask (%p581_p7), 15360  }
 0x23e   : >> { %vm1821_vm3 = vc.u32 %v1796_v12, %v1815_v53  ;;  %v1822_v6 = vadd.s32 1, %v1818_v46  ;;  %v1820_v34 = vadd.s32 %v1815_v53, %v1796_v12 }
 0x23f   : >> { %v1693_v27 = vxor.u32 2147483648, %v1692_v42  ;;  %v1716_v15 = vand.u32 3, %v1715_v50  ;;  %v1893_v50 = vstv %s4422_s22 }
 0x240   : >> { %v1823_v8 = vsel %vm1821_vm3, %v1822_v6, %v1818_v46 }
 0x241   : >> { %v1694_v26 = vsel %vm1573_vm1, %v1693_v27, %v1692_v42  ;;  %v1824_v19 = vadd.s32 %v1823_v8, %v1819_v54  ;;  %vm1721_vm5 = vcmp.eq.s32.totalorder %v1716_v15, 2  ;;  %vm1718_vm6 = vcmp.eq.s32.totalorder %v1716_v15, 0 }
 0x242   : >> { %v1697_v20 = vsel %vm4406_vm2, %v4241_v3, %v1694_v26  ;;  %vm1717_vm7 = vcmp.lt.s32.totalorder %v1716_v15, 2  ;;  %v1235_v26 = vadd.f32 %v1233_v16, %v3862_v9  ;;  %v1559_v54 = vmul.f32 3.0, %v4230_v41 }
 0x243   : >> { %v1699_v55 = vmul.f32 %v1697_v20, %v1697_v20  ;;  %v1825_v57 = vadd.s32 536870912, %v1824_v19 }
 0x244   : >> { %v1561_v3 = vadd.f32 %v1559_v54, %v1235_v26 }
 0x245   : >> { %v1700_v61 = vmul.f32 -0.001358992, %v1699_v55  ;;  %v1707_v59 = vmul.f32 -0.00019511016, %v1699_v55  ;;  %v1826_v43 = vshrl.u32 %v1825_v57, 30 }
 0x247   : >> { %v1701_v51 = vadd.f32 0.041655596, %v1700_v61  ;;  %v1708_v24 = vadd.f32 0.008332121, %v1707_v59  ;;  %v1827_v23 = vshll.u32 %v1826_v43, 30  ;;  %v1850_v59 = vsub.s32 4, %v1826_v43 }
 0x249   : >> { %v1702_v29 = vmul.f32 %v1701_v51, %v1699_v55  ;;  %v1709_v33 = vmul.f32 %v1708_v24, %v1699_v55  ;;  %v1828_v11 = vsub.s32 %v1824_v19, %v1827_v23  ;;  %v1999_v19 = vld [vmem:[#allocation8 + $0x300] sm:$0xff] (%p581_p7) }
 0x24b   : >> { %v1703_v1 = vadd.f32 -0.4999988, %v1702_v29  ;;  %v1710_v17 = vadd.f32 -0.16666654, %v1709_v33  ;;  %vm1829_vm4 = vcmp.lt.s32.totalorder %v1828_v11, 0  ;;  %v1830_v0 = vsub.s32 0, %v1828_v11 }
 0x24c   : >> { %v1851_v29 = vsel %vm1728_vm10, %v1850_v59, %v1826_v43  ;;  %v2135_v59 = vld [vmem:[#allocation8 + $0x740] sm:$0xff] (%p581_p7) }
 0x24d   : >> { %v1704_v63 = vmul.f32 %v1703_v1, %v1699_v55  ;;  %v1711_v31 = vmul.f32 %v1710_v17, %v1699_v55  ;;  %v1831_v14 = vsel %vm1829_vm4, %v1830_v0, %v1828_v11  ;;  %v1894_v1 = vmul.f32 %v3461_v40, %v1893_v50 }
 0x24e   : >> { %v1832_v21 = vclz %v1831_v14  ;;  %v1898_v17 = vstv %s4426_s27 }
 0x24f   : >> { %v1705_v10 = vadd.f32 1.0, %v1704_v63  ;;  %v1712_v52 = vadd.f32 1.0, %v1711_v31  ;;  %v1896_v30 = vadd.f32 %v3453_v38, %v1894_v1  ;;  %v1853_v63 = vsel %vm4432_vm11, 0, %v1851_v29  ;;  %v2120_v29 = vld [vmem:[#allocation8 + $0x6c8] sm:$0xff] (%p581_p7) }
 0x250   : >> { %v3135_v44 = vadd.s32 4294967294, %v1832_v21  ;;  %v1870_v0 = vadd.s32 3, %v1853_v63  ;;  %v1984_v1 = vld [vmem:[#allocation8 + $0x288] sm:$0xff] (%p581_p7)  ;;  %v2103_v63 = vld [vmem:[#allocation8 + $0x640] sm:$0xff] (%p581_p7) }
 0x251   : >> { %v1713_v60 = vmul.f32 %v1712_v52, %v1697_v20  ;;  %v1722_v18 = vxor.u32 2147483648, %v1705_v10 }
 0x252   : >> { %vm3136_vm9 = vcmp.lt.s32.totalorder %v3135_v44, 0 }
 0x253   : >> { %v1719_v2 = vxor.u32 2147483648, %v1713_v60  ;;  %v1723_v5 = vsel %vm1721_vm5, %v1722_v18, %v1713_v60  ;;  %v1835_v56 = vsel %vm3136_vm9, 0, %v3135_v44 }
 0x254   : >> { %v1836_v62 = vsub.s32 32, %v1835_v56  ;;  %v1837_v58 = vshll.u32 %v1828_v11, %v1835_v56  ;;  %v1840_v27 = vsub.s32 4294967266, %v1835_v56 }
 0x255   : >> { %v1720_v7 = vsel %vm1718_vm6, %v1705_v10, %v1719_v2 }
 0x256   : >> { %v1724_v42 = vsel %vm1717_vm7, %v1720_v7, %v1723_v5  ;;  %v1838_v4 = vshrl.u32 %v1820_v34, %v1836_v62  ;;  %v1841_v20 = vadd.s32 127, %v1840_v27  ;;  %v1234_v34 = vmul.f32 3.0, %v4094_v48 }
 0x257   : >> { %v1725_v46 = vsel %vm1714_vm8, nan, %v1724_v42  ;;  %v1560_v27 = vmul.f32 3.0, %v4298_v45  ;;  %v2024_v45 = vld [vmem:[#allocation8 + $0x3c8] sm:$0xff] (%p581_p7) }
 0x258   : >> { %v1839_v25 = vor.u32 %v1838_v4, %v1837_v58  ;;  %v1842_v6 = vshll.u32 %v1841_v20, 23  ;;  %v1881_v55 = vmul.f32 %v1725_v46, %v1725_v46  ;;  %v1236_v58 = vadd.f32 %v1234_v34, %v3882_v22  ;;  %2217 = vmatpush.msra.mxu2 (%p581_p7), %v2024_v45  ;;  %v2072_v34 = vld [vmem:[#allocation8 + $0x548] sm:$0xff] (%p581_p7) }
 0x259   : > { %v1904_v45 = vld [vmem:[#allocation8 + $0x8] sm:$0xff] (%p581_p7) }
 0x25a   : >> { %v1843_v53 = vor.u32 4788187, %v1842_v6  ;;  %v1846_v12 = vcvt.s32.f32 %v1839_v25  ;;  %v1883_v8 = vsub.f32 %v1881_v55, %v4235_v49  ;;  %v1562_v4 = vadd.f32 %v1560_v27, %v1236_v58  ;;  %v2064_v58 = vld [vmem:[#allocation8 + $0x508] sm:$0xff] (%p581_p7)  ;;  %v1927_v27 = vld [vmem:[#allocation8 + $0xc0] sm:$0xff] (%p581_p7) }
 0x25b   : >> { %v1895_v6 = vmul.f32 %v3457_v39, %v1893_v50  ;;  %v2119_v50 = vld [vmem:[#allocation8 + $0x6c0] sm:$0xff] (%p581_p7) }
 0x25c   : >> { %v1844_v32 = vand.u32 2147483647, %v1843_v53  ;;  %v1885_v9 = vmul.f32 %v1883_v8, %v3858_v47  ;;  %v2151_v53 = vld [vmem:[#allocation8 + $0x7c0] sm:$0xff] (%p581_p7)  ;;  %v2152_v8 = vld [vmem:[#allocation8 + $0x7c8] sm:$0xff] (%p581_p7) }
 0x25d   : > { %2197 = vmatpush.msra.mxu1 (%p581_p7), %v2151_v53  ;;  %2237 = vmatpush.msra.mxu3 (%p581_p7), %v2152_v8  ;;  %v2026_v53 = vld [vmem:[#allocation8 + $0x3d8] sm:$0xff] (%p581_p7)  ;;  %v2032_v8 = vld [vmem:[#allocation8 + $0x408] sm:$0xff] (%p581_p7) }
 0x25e   : >> { %v1847_v41 = vmul.f32 %v1846_v12, %v1844_v32  ;;  %v1887_v61 = vadd.f32 %v1885_v9, %v1561_v3  ;;  %v2016_v12 = vld [vmem:[#allocation8 + $0x388] sm:$0xff] (%p581_p7)  ;;  %v2007_v32 = vld [vmem:[#allocation8 + $0x340] sm:$0xff] (%p581_p7) }
 0x25f   : > { %v2143_v9 = vld [vmem:[#allocation8 + $0x780] sm:$0xff] (%p581_p7)  ;;  %2218 = vmatpush.msra.mxu2 (%p581_p7), %v2016_v12 }
 0x260   : >> { %v1848_v51 = vxor.u32 2147483648, %v1847_v41  ;;  %v1889_v24 = vmul.f32 0.125, %v1887_v61  ;;  %v2144_v61 = vld [vmem:[#allocation8 + $0x788] sm:$0xff] (%p581_p7)  ;;  %2198 = vmatpush.msra.mxu1 (%p581_p7), %v2143_v9  ;;  %v2031_v12 = vld [vmem:[#allocation8 + $0x400] sm:$0xff] (%p581_p7)  ;;  %v2153_v9 = vld [vmem:[#allocation8 + $0x7d0] sm:$0xff] (%p581_p7) }
 0x261   : > { %2238 = vmatpush.msra.mxu3 (%p581_p7), %v2144_v61  ;;  %v2154_v61 = vld [vmem:[#allocation8 + $0x7d8] sm:$0xff] (%p581_p7) }
 0x262   : >> { %v1849_v49 = vsel %vm1728_vm10, %v1848_v51, %v1847_v41  ;;  %v1891_v57 = vadd.f32 %v3461_v40, %v1889_v24   ;;  %v1871_v40 = vand.u32 3, %v1870_v0  ;;  %v2008_v41 = vld [vmem:[#allocation8 + $0x348] sm:$0xff] (%p581_p7)  ;;  %v2127_v51 = vld [vmem:[#allocation8 + $0x700] sm:$0xff] (%p581_p7)  ;;  %2199 = vmatpush.msra.mxu1 (%p581_p7), %v2135_v59  ;;  %v2009_v59 = vld [vmem:[#allocation8 + $0x350] sm:$0xff] (%p581_p7) }
 0x263   : >> { %v1852_v33 = vsel %vm4432_vm11, %v4305_v13, %v1849_v49  ;;  %v1897_v13 = vadd.f32 %v3449_v37, %v1895_v6  ;;  %2219 = vmatpush.msra.mxu2 (%p581_p7), %v2008_v41  ;;  %v2128_v24 = vld [vmem:[#allocation8 + $0x708] sm:$0xff] (%p581_p7)  ;;  %v1991_v49 = vld [vmem:[#allocation8 + $0x2c0] sm:$0xff] (%p581_p7)  ;;  %v2018_v41 = vld [vmem:[#allocation8 + $0x398] sm:$0xff] (%p581_p7) }
 0x264   : >> { %v1854_v23 = vmul.f32 %v1852_v33, %v1852_v33  ;;  %v1899_v15 = vmul.f32 %v1898_v17, %v1891_v57  ;;  %vm1876_vm12 = vcmp.eq.s32.totalorder %v1871_v40, 2  ;;  %vm1873_vm13 = vcmp.eq.s32.totalorder %v1871_v40, 0  ;;  %2200 = vmatpush.msra.mxu1 (%p581_p7), %v2127_v51  ;;  %v2096_v0 = vld [vmem:[#allocation8 + $0x608] sm:$0xff] (%p581_p7)  ;;  %v1911_v6 = vld [vmem:[#allocation8 + $0x40] sm:$0xff] (%p581_p7)  ;;  %v2001_v51 = vld [vmem:[#allocation8 + $0x310] sm:$0xff] (%p581_p7) }
 0x265   : >> { %vm1872_vm14 = vcmp.lt.s32.totalorder %v1871_v40, 2  ;;  %v4597_v40 = vmov %v1891_v57  ;;  %v1992_v57 = vld [vmem:[#allocation8 + $0x2c8] sm:$0xff] (%p581_p7) }
 0x266   : >> { %v1855_v31 = vmul.f32 -0.001358992, %v1854_v23  ;;  %v1862_v11 = vmul.f32 -0.00019511016, %v1854_v23  ;;  %v4446_v38 = vadd.f32 %v1899_v15, %v1896_v30   ;;  %2201 = vmatpush.msra.mxu1 (%p581_p7), %v2119_v50  ;;  %v1975_v15 = vld [vmem:[#allocation8 + $0x240] sm:$0xff] (%p581_p7)  ;;  %v1976_v30 = vld [vmem:[#allocation8 + $0x248] sm:$0xff] (%p581_p7) }
 0x267   : > { %v1951_v40 = vld [vmem:[#allocation8 + $0x180] sm:$0xff] (%p581_p7)  ;;  %v1993_v50 = vld [vmem:[#allocation8 + $0x2d0] sm:$0xff] (%p581_p7) }
 0x268   : >> { %v4593_v10 = vmov %v4446_v38  ;;  %v1856_v52 = vadd.f32 0.041655596, %v1855_v31  ;;  %v1863_v43 = vadd.f32 0.008332121, %v1862_v11  ;;  %v2104_v31 = vld [vmem:[#allocation8 + $0x648] sm:$0xff] (%p581_p7)  ;;  %v1967_v11 = vld [vmem:[#allocation8 + $0x200] sm:$0xff] (%p581_p7) }
 0x26a   : >> { %v1857_v60 = vmul.f32 %v1856_v52, %v1854_v23  ;;  %v1864_v18 = vmul.f32 %v1863_v43, %v1854_v23  ;;  %v1968_v52 = vld [vmem:[#allocation8 + $0x208] sm:$0xff] (%p581_p7)  ;;  %v2095_v43 = vld [vmem:[#allocation8 + $0x600] sm:$0xff] (%p581_p7) }
 0x26c   : >> { %v1858_v14 = vadd.f32 -0.4999988, %v1857_v60  ;;  %v1865_v21 = vadd.f32 -0.16666654, %v1864_v18  ;;  %v1959_v60 = vld [vmem:[#allocation8 + $0x1c0] sm:$0xff] (%p581_p7)  ;;  %v1960_v18 = vld [vmem:[#allocation8 + $0x1c8] sm:$0xff] (%p581_p7) }
 0x26e   : >> { %v1859_v2 = vmul.f32 %v1858_v14, %v1854_v23  ;;  %v1866_v5 = vmul.f32 %v1865_v21, %v1854_v23  ;;  %v2112_v23 = vld [vmem:[#allocation8 + $0x688] sm:$0xff] (%p581_p7)  ;;  %v2087_v14 = vld [vmem:[#allocation8 + $0x5c0] sm:$0xff] (%p581_p7) }
 0x26f   : > { %v2088_v21 = vld [vmem:[#allocation8 + $0x5c8] sm:$0xff] (%p581_p7) }
 0x270   : >> { %v1860_v44 = vadd.f32 1.0, %v1859_v2  ;;  %v1867_v16 = vadd.f32 1.0, %v1866_v5  ;;  %v1952_v2 = vld [vmem:[#allocation8 + $0x188] sm:$0xff] (%p581_p7)  ;;  %v2079_v5 = vld [vmem:[#allocation8 + $0x580] sm:$0xff] (%p581_p7) }
 0x272   : >> { %v1868_v7 = vmul.f32 %v1867_v16, %v1852_v33  ;;  %v1877_v42 = vxor.u32 2147483648, %v1860_v44  ;;  %v1983_v33 = vld [vmem:[#allocation8 + $0x280] sm:$0xff] (%p581_p7) }
 0x273   : > { %v1943_v16 = vld [vmem:[#allocation8 + $0x140] sm:$0xff] (%p581_p7) }
 0x274   : >> { %v1874_v38 = vxor.u32 2147483648, %v1868_v7  ;;  %v1878_v56 = vsel %vm1876_vm12, %v1877_v42, %v1868_v7  ;;  %v1944_v7 = vld [vmem:[#allocation8 + $0x148] sm:$0xff] (%p581_p7)  ;;  %v2071_v42 = vld [vmem:[#allocation8 + $0x540] sm:$0xff] (%p581_p7) }
 0x276   : >> { %v1875_v62 = vsel %vm1873_vm13, %v1860_v44, %v1874_v38  ;;  %v4596_v38 = vmov %v4593_v10  ;;  %v2080_v44 = vld [vmem:[#allocation8 + $0x588] sm:$0xff] (%p581_p7) }
 0x277   : >> { %v1879_v46 = vsel %vm1872_vm14, %v1875_v62, %v1878_v56  ;;  %v1935_v38 = vld [vmem:[#allocation8 + $0x100] sm:$0xff] (%p581_p7)  ;;  %v1936_v56 = vld [vmem:[#allocation8 + $0x108] sm:$0xff] (%p581_p7) }
 0x278   : >> { %v1880_v26 = vsel %vm1869_vm15, nan, %v1879_v46  ;;  %v2063_v62 = vld [vmem:[#allocation8 + $0x500] sm:$0xff] (%p581_p7)  ;;  %v1928_v46 = vld [vmem:[#allocation8 + $0xc8] sm:$0xff] (%p581_p7) }
 0x279   : >> { %v1882_v54 = vmul.f32 %v1880_v26, %v1880_v26  ;;  %v2055_v26 = vld [vmem:[#allocation8 + $0x4c0] sm:$0xff] (%p581_p7) }
 0x27b   : >> { %v1884_v20 = vsub.f32 %v1882_v54, %v4301_v28  ;;  %v2015_v28 = vld [vmem:[#allocation8 + $0x380] sm:$0xff] (%p581_p7)  ;;  %v2056_v54 = vld [vmem:[#allocation8 + $0x4c8] sm:$0xff] (%p581_p7) }
 0x27d   : >> { %v1886_v25 = vmul.f32 %v1884_v20, %v3858_v47  ;;  %v2023_v47 = vld [vmem:[#allocation8 + $0x3c0] sm:$0xff] (%p581_p7)  ;;  %v1920_v20 = vld [vmem:[#allocation8 + $0x88] sm:$0xff] (%p581_p7) }
 0x27e   : > { %2177 = vmatpush.msra.mxu0 (%p581_p7), %v2023_v47  ;;  %v1903_v47 = vld [vmem:[#allocation8] sm:$0xff] (%p581_p7) }
 0x27f   : >> { %v1888_v48 = vadd.f32 %v1886_v25, %v1562_v4  ;;  %v1919_v4 = vld [vmem:[#allocation8 + $0x80] sm:$0xff] (%p581_p7) }
 0x280   : > { %2178 = vmatpush.msra.mxu0 (%p581_p7), %v2015_v28  ;;  %v2047_v25 = vld [vmem:[#allocation8 + $0x480] sm:$0xff] (%p581_p7)  ;;  %v2025_v28 = vld [vmem:[#allocation8 + $0x3d0] sm:$0xff] (%p581_p7) }
 0x281   : >> { %v1890_v55 = vmul.f32 0.125, %v1888_v48  ;;  %v2048_v48 = vld [vmem:[#allocation8 + $0x488] sm:$0xff] (%p581_p7) }
 0x282   : > { %2179 = vmatpush.msra.mxu0 (%p581_p7), %v2007_v32  ;;  %v2017_v32 = vld [vmem:[#allocation8 + $0x390] sm:$0xff] (%p581_p7) }
 0x283   : >> { %v1892_v39 = vadd.f32 %v3457_v39, %v1890_v55   ;;  %v1912_v55 = vld [vmem:[#allocation8 + $0x48] sm:$0xff] (%p581_p7) }
 0x284   : > { %2180 = vmatpush.msra.mxu0 (%p581_p7), %v1999_v19  ;;  %v2145_v19 = vld [vmem:[#allocation8 + $0x790] sm:$0xff] (%p581_p7) }
 0x285   : >> { %v1900_v3 = vmul.f32 %v1898_v17, %v1892_v39  ;;  %v2136_v39 = vld [vmem:[#allocation8 + $0x748] sm:$0xff] (%p581_p7)  ;;  %v2111_v17 = vld [vmem:[#allocation8 + $0x680] sm:$0xff] (%p581_p7) }
 0x286   : > { %583 = sbr.rel (!%p581_p7) target bundleno = 176 (0xb0), region = 135  ;;  %2239 = vmatpush.msra.mxu3 (%p581_p7), %v2136_v39  ;;  %2181 = vmatpush.msra.mxu0 (%p581_p7), %v1991_v49  ;;  %v2146_v39 = vld [vmem:[#allocation8 + $0x798] sm:$0xff] (%p581_p7) }
 0x287   : >> { %v4457_v37 = vadd.f32 %v1900_v3, %v1897_v13   ;;  %2202 = vmatpush.msra.mxu1 (%p581_p7), %v2111_v17  ;;  %v2039_v13 = vld [vmem:[#allocation8 + $0x440] sm:$0xff] (%p581_p7)  ;;  %v2040_v3 = vld [vmem:[#allocation8 + $0x448] sm:$0xff] (%p581_p7)  ;;  %v2002_v49 = vld [vmem:[#allocation8 + $0x318] sm:$0xff] (%p581_p7) }
 0x288   : > { %2240 = vmatpush.msra.mxu3 (%p581_p7), %v2128_v24  ;;  %2182 = vmatpush.msra.mxu0 (%p581_p7), %v1983_v33  ;;  %v2137_v24 = vld [vmem:[#allocation8 + $0x750] sm:$0xff] (%p581_p7)  ;;  %v1994_v33 = vld [vmem:[#allocation8 + $0x2d8] sm:$0xff] (%p581_p7) }
 0x289   : >> { %v4594_v22 = vmov %v4457_v37  ;;  %2203 = vmatpush.msra.mxu1 (%p581_p7), %v2103_v63  ;;  %v1985_v17 = vld [vmem:[#allocation8 + $0x290] sm:$0xff] (%p581_p7) }
 0x28a   : >> { %v4595_v37 = vmov %v4594_v22  ;;  %2241 = vmatpush.msra.mxu3 (%p581_p7), %v2120_v29  ;;  %2183 = vmatpush.msra.mxu0 (%p581_p7), %v1975_v15  ;;  %v2129_v29 = vld [vmem:[#allocation8 + $0x710] sm:$0xff] (%p581_p7)  ;;  %v1986_v15 = vld [vmem:[#allocation8 + $0x298] sm:$0xff] (%p581_p7) }
 0x28b   : > { %v2000_v37 = vld [vmem:[#allocation8 + $0x308] sm:$0xff]  ;;  %2204 = vmatpush.msra.mxu1 %v2095_v43  ;;  %v1977_v63 = vld [vmem:[#allocation8 + $0x250] sm:$0xff] }
 0x28c   : > { %2220 = vmatpush.msra.mxu2 %v2000_v37  ;;  %2242 = vmatpush.msra.mxu3 %v2112_v23  ;;  %v2010_v37 = vld [vmem:[#allocation8 + $0x358] sm:$0xff]  ;;  %v2121_v23 = vld [vmem:[#allocation8 + $0x6d0] sm:$0xff] }
 0x28d   : > { %2184 = vmatpush.msra.mxu0 %v1967_v11  ;;  %2205 = vmatpush.msra.mxu1 %v2087_v14  ;;  %v1978_v11 = vld [vmem:[#allocation8 + $0x258] sm:$0xff]  ;;  %v1969_v43 = vld [vmem:[#allocation8 + $0x210] sm:$0xff] }
 0x28e   : > { %2221 = vmatpush.msra.mxu2 %v1992_v57  ;;  %2243 = vmatpush.msra.mxu3 %v2104_v31  ;;  %v2138_v57 = vld [vmem:[#allocation8 + $0x758] sm:$0xff]  ;;  %v2113_v31 = vld [vmem:[#allocation8 + $0x690] sm:$0xff] }
 0x28f   : > { %2185 = vmatpush.msra.mxu0 %v1959_v60  ;;  %2206 = vmatpush.msra.mxu1 %v2079_v5  ;;  %v1970_v60 = vld [vmem:[#allocation8 + $0x218] sm:$0xff]  ;;  %v1961_v14 = vld [vmem:[#allocation8 + $0x1d0] sm:$0xff] }
 0x290   : > { %2222 = vmatpush.msra.mxu2 %v1984_v1  ;;  %2244 = vmatpush.msra.mxu3 %v2096_v0  ;;  %v2130_v1 = vld [vmem:[#allocation8 + $0x718] sm:$0xff]  ;;  %v2105_v0 = vld [vmem:[#allocation8 + $0x650] sm:$0xff] }
 0x291   : > { %2186 = vmatpush.msra.mxu0 %v1951_v40  ;;  %2207 = vmatpush.msra.mxu1 %v2071_v42  ;;  %v1962_v40 = vld [vmem:[#allocation8 + $0x1d8] sm:$0xff]  ;;  %v1953_v5 = vld [vmem:[#allocation8 + $0x190] sm:$0xff] }
 0x292   : > { %2223 = vmatpush.msra.mxu2 %v1976_v30  ;;  %2245 = vmatpush.msra.mxu3 %v2088_v21  ;;  %v2122_v30 = vld [vmem:[#allocation8 + $0x6d8] sm:$0xff]  ;;  %v2097_v21 = vld [vmem:[#allocation8 + $0x610] sm:$0xff] }
 0x293   : > { %2187 = vmatpush.msra.mxu0 %v1943_v16  ;;  %2208 = vmatpush.msra.mxu1 %v2063_v62  ;;  %v1954_v16 = vld [vmem:[#allocation8 + $0x198] sm:$0xff]  ;;  %v1945_v42 = vld [vmem:[#allocation8 + $0x150] sm:$0xff] }
 0x294   : > { %2224 = vmatpush.msra.mxu2 %v1968_v52  ;;  %2246 = vmatpush.msra.mxu3 %v2080_v44  ;;  %v2114_v52 = vld [vmem:[#allocation8 + $0x698] sm:$0xff]  ;;  %v2089_v44 = vld [vmem:[#allocation8 + $0x5d0] sm:$0xff] }
 0x295   : > { %2188 = vmatpush.msra.mxu0 %v1935_v38  ;;  %2209 = vmatpush.msra.mxu1 %v2055_v26  ;;  %v1946_v38 = vld [vmem:[#allocation8 + $0x158] sm:$0xff]  ;;  %v1937_v62 = vld [vmem:[#allocation8 + $0x110] sm:$0xff] }
 0x296   : > { %2225 = vmatpush.msra.mxu2 %v1960_v18  ;;  %2247 = vmatpush.msra.mxu3 %v2072_v34  ;;  %v2106_v18 = vld [vmem:[#allocation8 + $0x658] sm:$0xff]  ;;  %v2081_v34 = vld [vmem:[#allocation8 + $0x590] sm:$0xff] }
 0x297   : > { %2189 = vmatpush.msra.mxu0 %v1927_v27  ;;  %2210 = vmatpush.msra.mxu1 %v2047_v25  ;;  %v1938_v27 = vld [vmem:[#allocation8 + $0x118] sm:$0xff]  ;;  %v1929_v26 = vld [vmem:[#allocation8 + $0xd0] sm:$0xff] }
 0x298   : > { %2226 = vmatpush.msra.mxu2 %v1952_v2  ;;  %2248 = vmatpush.msra.mxu3 %v2064_v58  ;;  %v2098_v2 = vld [vmem:[#allocation8 + $0x618] sm:$0xff]  ;;  %v2073_v58 = vld [vmem:[#allocation8 + $0x550] sm:$0xff] }
 0x299   : > { %2190 = vmatpush.msra.mxu0 %v1919_v4  ;;  %2211 = vmatpush.msra.mxu1 %v2039_v13  ;;  %v1930_v4 = vld [vmem:[#allocation8 + $0xd8] sm:$0xff]  ;;  %v1921_v25 = vld [vmem:[#allocation8 + $0x90] sm:$0xff] }
 0x29a   : > { %2227 = vmatpush.msra.mxu2 %v1944_v7  ;;  %2249 = vmatpush.msra.mxu3 %v2056_v54  ;;  %v2090_v7 = vld [vmem:[#allocation8 + $0x5d8] sm:$0xff]  ;;  %v2065_v54 = vld [vmem:[#allocation8 + $0x510] sm:$0xff] }
 0x29b   : > { %2191 = vmatpush.msra.mxu0 %v1911_v6  ;;  %2212 = vmatpush.msra.mxu1 %v2031_v12  ;;  %v1922_v6 = vld [vmem:[#allocation8 + $0x98] sm:$0xff]  ;;  %v1913_v13 = vld [vmem:[#allocation8 + $0x50] sm:$0xff] }
 0x29c   : > { %2228 = vmatpush.msra.mxu2 %v1936_v56  ;;  %2250 = vmatpush.msra.mxu3 %v2048_v48  ;;  %v2082_v56 = vld [vmem:[#allocation8 + $0x598] sm:$0xff]  ;;  %v2057_v48 = vld [vmem:[#allocation8 + $0x4d0] sm:$0xff] }
 0x29d   : > { %2192 = vmatpush.msra.mxu0 %v1903_v47  ;;  %2277 = vmatpush.msrb.mxu1 %v2153_v9  ;;  %v1914_v47 = vld [vmem:[#allocation8 + $0x58] sm:$0xff]  ;;  %v2028_v9 = vld [vmem:[#allocation8 + $0x3e8] sm:$0xff] }
 0x29e   : > { %2229 = vmatpush.msra.mxu2 %v1928_v46  ;;  %2251 = vmatpush.msra.mxu3 %v2040_v3  ;;  %v2074_v46 = vld [vmem:[#allocation8 + $0x558] sm:$0xff]  ;;  %v2049_v3 = vld [vmem:[#allocation8 + $0x490] sm:$0xff] }
 0x29f   : > { %2257 = vmatpush.msrb.mxu0 %v2025_v28  ;;  %2278 = vmatpush.msrb.mxu1 %v2145_v19  ;;  %v1905_v28 = vld [vmem:[#allocation8 + $0x10] sm:$0xff]  ;;  %v1906_v12 = vld [vmem:[#allocation8 + $0x18] sm:$0xff]  ;;  %v2155_v19 = vld [vmem:[#allocation8 + $0x7e0] sm:$0xff] }
 0x2a0   : > { %2230 = vmatpush.msra.mxu2 %v1920_v20  ;;  %2252 = vmatpush.msra.mxu3 %v2032_v8  ;;  %v2066_v20 = vld [vmem:[#allocation8 + $0x518] sm:$0xff] }
 0x2a1   : > { %2258 = vmatpush.msrb.mxu0 %v2017_v32  ;;  %2279 = vmatpush.msrb.mxu1 %v2137_v24  ;;  %v2042_v8 = vld [vmem:[#allocation8 + $0x458] sm:$0xff]  ;;  %v2027_v32 = vld [vmem:[#allocation8 + $0x3e0] sm:$0xff] }
 0x2a2   : > { %2231 = vmatpush.msra.mxu2 %v1912_v55  ;;  %2317 = vmatpush.msrb.mxu3 %v2154_v61  ;;  %v2058_v55 = vld [vmem:[#allocation8 + $0x4d8] sm:$0xff]  ;;  %v2147_v24 = vld [vmem:[#allocation8 + $0x7a0] sm:$0xff] }
 0x2a3   : > { %2259 = vmatpush.msrb.mxu0 %v2009_v59  ;;  %2280 = vmatpush.msrb.mxu1 %v2129_v29  ;;  %v2034_v61 = vld [vmem:[#allocation8 + $0x418] sm:$0xff]  ;;  %v2019_v59 = vld [vmem:[#allocation8 + $0x3a0] sm:$0xff] }
 0x2a4   : > { %2232 = vmatpush.msra.mxu2 %v1904_v45  ;;  %2318 = vmatpush.msrb.mxu3 %v2146_v39  ;;  %v2050_v45 = vld [vmem:[#allocation8 + $0x498] sm:$0xff]  ;;  %v2156_v39 = vld [vmem:[#allocation8 + $0x7e8] sm:$0xff]  ;;  %v2139_v29 = vld [vmem:[#allocation8 + $0x760] sm:$0xff] }
 0x2a5   : > { %2260 = vmatpush.msrb.mxu0 %v2001_v51  ;;  %2281 = vmatpush.msrb.mxu1 %v2121_v23  ;;  %v2011_v51 = vld [vmem:[#allocation8 + $0x360] sm:$0xff] }
 0x2a6   : > { %2297 = vmatpush.msrb.mxu2 %v2026_v53  ;;  %2319 = vmatpush.msrb.mxu3 %v2138_v57  ;;  %v2041_v53 = vld [vmem:[#allocation8 + $0x450] sm:$0xff]  ;;  %v2148_v57 = vld [vmem:[#allocation8 + $0x7a8] sm:$0xff]  ;;  %v2131_v23 = vld [vmem:[#allocation8 + $0x720] sm:$0xff] }
 0x2a7   : > { %2261 = vmatpush.msrb.mxu0 %v1993_v50  ;;  %2282 = vmatpush.msrb.mxu1 %v2113_v31  ;;  %v2003_v50 = vld [vmem:[#allocation8 + $0x320] sm:$0xff] }
 0x2a8   : > { %2298 = vmatpush.msrb.mxu2 %v2018_v41  ;;  %2320 = vmatpush.msrb.mxu3 %v2130_v1  ;;  %v2033_v41 = vld [vmem:[#allocation8 + $0x410] sm:$0xff]  ;;  %v2140_v1 = vld [vmem:[#allocation8 + $0x768] sm:$0xff]  ;;  %v2123_v31 = vld [vmem:[#allocation8 + $0x6e0] sm:$0xff] }
 0x2a9   : > { %2262 = vmatpush.msrb.mxu0 %v1985_v17  ;;  %2283 = vmatpush.msrb.mxu1 %v2105_v0  ;;  %v1995_v17 = vld [vmem:[#allocation8 + $0x2e0] sm:$0xff] }
 0x2aa   : > { %2299 = vmatpush.msrb.mxu2 %v2010_v37  ;;  %2321 = vmatpush.msrb.mxu3 %v2122_v30  ;;  %v2020_v37 = vld [vmem:[#allocation8 + $0x3a8] sm:$0xff]  ;;  %v2115_v0 = vld [vmem:[#allocation8 + $0x6a0] sm:$0xff] }
 0x2ab   : > { %2263 = vmatpush.msrb.mxu0 %v1977_v63  ;;  %2284 = vmatpush.msrb.mxu1 %v2097_v21  ;;  %v2132_v30 = vld [vmem:[#allocation8 + $0x728] sm:$0xff]  ;;  %v1987_v63 = vld [vmem:[#allocation8 + $0x2a0] sm:$0xff] }
 0x2ac   : > { %2300 = vmatpush.msrb.mxu2 %v2002_v49  ;;  %2322 = vmatpush.msrb.mxu3 %v2114_v52  ;;  %v2012_v49 = vld [vmem:[#allocation8 + $0x368] sm:$0xff]  ;;  %v2107_v21 = vld [vmem:[#allocation8 + $0x660] sm:$0xff] }
 0x2ad   : > { %2264 = vmatpush.msrb.mxu0 %v1969_v43  ;;  %2285 = vmatpush.msrb.mxu1 %v2089_v44  ;;  %v2124_v52 = vld [vmem:[#allocation8 + $0x6e8] sm:$0xff]  ;;  %v1979_v43 = vld [vmem:[#allocation8 + $0x260] sm:$0xff] }
 0x2ae   : > { %2301 = vmatpush.msrb.mxu2 %v1994_v33  ;;  %2323 = vmatpush.msrb.mxu3 %v2106_v18  ;;  %v2004_v33 = vld [vmem:[#allocation8 + $0x328] sm:$0xff]  ;;  %v2099_v44 = vld [vmem:[#allocation8 + $0x620] sm:$0xff] }
 0x2af   : > { %2265 = vmatpush.msrb.mxu0 %v1961_v14  ;;  %2286 = vmatpush.msrb.mxu1 %v2081_v34  ;;  %v2116_v18 = vld [vmem:[#allocation8 + $0x6a8] sm:$0xff]  ;;  %v1971_v14 = vld [vmem:[#allocation8 + $0x220] sm:$0xff] }
 0x2b0   : > { %2302 = vmatpush.msrb.mxu2 %v1986_v15  ;;  %2324 = vmatpush.msrb.mxu3 %v2098_v2  ;;  %v1996_v15 = vld [vmem:[#allocation8 + $0x2e8] sm:$0xff]  ;;  %v2091_v34 = vld [vmem:[#allocation8 + $0x5e0] sm:$0xff] }
 0x2b1   : > { %2266 = vmatpush.msrb.mxu0 %v1953_v5  ;;  %2287 = vmatpush.msrb.mxu1 %v2073_v58  ;;  %v2108_v2 = vld [vmem:[#allocation8 + $0x668] sm:$0xff]  ;;  %v1963_v5 = vld [vmem:[#allocation8 + $0x1e0] sm:$0xff] }
 0x2b2   : > { %2303 = vmatpush.msrb.mxu2 %v1978_v11  ;;  %2325 = vmatpush.msrb.mxu3 %v2090_v7  ;;  %v1988_v11 = vld [vmem:[#allocation8 + $0x2a8] sm:$0xff]  ;;  %v2083_v58 = vld [vmem:[#allocation8 + $0x5a0] sm:$0xff] }
 0x2b3   : > { %2267 = vmatpush.msrb.mxu0 %v1945_v42  ;;  %2233 = vmatmul.f32.vlgmr.msra.gmra.mxu2 %v3644_v35  ;;  %v2100_v7 = vld [vmem:[#allocation8 + $0x628] sm:$0xff]  ;;  %v1955_v42 = vld [vmem:[#allocation8 + $0x1a0] sm:$0xff] }
 0x2b4   : > { %2304 = vmatpush.msrb.mxu2 %v1970_v60  ;;  %2326 = vmatpush.msrb.mxu3 %v2082_v56  ;;  %v1980_v60 = vld [vmem:[#allocation8 + $0x268] sm:$0xff] }
 0x2b5   : > { %2268 = vmatpush.msrb.mxu0 %v1937_v62  ;;  %2288 = vmatpush.msrb.mxu1 %v2065_v54  ;;  %v2092_v56 = vld [vmem:[#allocation8 + $0x5e8] sm:$0xff]  ;;  %v1947_v62 = vld [vmem:[#allocation8 + $0x160] sm:$0xff] }
 0x2b6   : > { %2305 = vmatpush.msrb.mxu2 %v1962_v40  ;;  %2327 = vmatpush.msrb.mxu3 %v2074_v46  ;;  %v1972_v40 = vld [vmem:[#allocation8 + $0x228] sm:$0xff]  ;;  %v2075_v54 = vld [vmem:[#allocation8 + $0x560] sm:$0xff] }
 0x2b7   : > { %2193 = vmatmul.f32.vlgmr.msra.gmra.mxu0 %v3644_v35  ;;  %2213 = vmatmul.f32.vlgmr.msra.gmra.mxu1 %v3646_v36  ;;  %v2084_v46 = vld [vmem:[#allocation8 + $0x5a8] sm:$0xff] }
 0x2b8   : > { %2306 = vmatpush.msrb.mxu2 %v1954_v16  ;;  %2269 = vmatpush.msrb.mxu0 %v1929_v26  ;;  %v1964_v16 = vld [vmem:[#allocation8 + $0x1e8] sm:$0xff]  ;;  %v1939_v26 = vld [vmem:[#allocation8 + $0x120] sm:$0xff] }
 0x2b9   : > { %2328 = vmatpush.msrb.mxu3 %v2066_v20  ;;  %2289 = vmatpush.msrb.mxu1 %v2057_v48  ;;  %v2076_v20 = vld [vmem:[#allocation8 + $0x568] sm:$0xff]  ;;  %v2067_v48 = vld [vmem:[#allocation8 + $0x520] sm:$0xff] }
 0x2ba   : > { %2307 = vmatpush.msrb.mxu2 %v1946_v38  ;;  %2253 = vmatmul.f32.vlgmr.msra.gmra.mxu3 %v3646_v36  ;;  %v1956_v38 = vld [vmem:[#allocation8 + $0x1a8] sm:$0xff] }
 0x2bb   : > { %2270 = vmatpush.msrb.mxu0 %v1921_v25  ;;  %2329 = vmatpush.msrb.mxu3 %v2058_v55  ;;  %v1931_v25 = vld [vmem:[#allocation8 + $0xe0] sm:$0xff]  ;;  %v2068_v55 = vld [vmem:[#allocation8 + $0x528] sm:$0xff] }
 0x2bc   : > { %2308 = vmatpush.msrb.mxu2 %v1938_v27  ;;  %2290 = vmatpush.msrb.mxu1 %v2049_v3  ;;  %v1948_v27 = vld [vmem:[#allocation8 + $0x168] sm:$0xff]  ;;  %v2059_v3 = vld [vmem:[#allocation8 + $0x4e0] sm:$0xff] }
 0x2bd   : > { %2271 = vmatpush.msrb.mxu0 %v1913_v13  ;;  %2330 = vmatpush.msrb.mxu3 %v2050_v45  ;;  %v1923_v13 = vld [vmem:[#allocation8 + $0xa0] sm:$0xff]  ;;  %v2060_v45 = vld [vmem:[#allocation8 + $0x4e8] sm:$0xff] }
 0x2be   : > { %2309 = vmatpush.msrb.mxu2 %v1930_v4  ;;  %2291 = vmatpush.msrb.mxu1 %v2041_v53  ;;  %v1940_v4 = vld [vmem:[#allocation8 + $0x128] sm:$0xff]  ;;  %v2051_v53 = vld [vmem:[#allocation8 + $0x4a0] sm:$0xff] }
 0x2bf   : > { %2272 = vmatpush.msrb.mxu0 %v1905_v28  ;;  %2331 = vmatpush.msrb.mxu3 %v2042_v8  ;;  %v1915_v28 = vld [vmem:[#allocation8 + $0x60] sm:$0xff]  ;;  %v2052_v8 = vld [vmem:[#allocation8 + $0x4a8] sm:$0xff] }
 0x2c0   : > { %2310 = vmatpush.msrb.mxu2 %v1922_v6  ;;  %2273 = vmatmul.f32.vlgmr.msrb.gmra.mxu0 %v3644_v35  ;;  %v1932_v6 = vld [vmem:[#allocation8 + $0xe8] sm:$0xff] }
 0x2c1   : > { %2337 = vmatpush.msra.mxu0 %v2027_v32  ;;  %2292 = vmatpush.msrb.mxu1 %v2033_v41  ;;  %v1907_v32 = vld [vmem:[#allocation8 + $0x20] sm:$0xff]  ;;  %v1908_v41 = vld [vmem:[#allocation8 + $0x28] sm:$0xff] }
 0x2c2   : > { %2311 = vmatpush.msrb.mxu2 %v1914_v47  ;;  %2332 = vmatpush.msrb.mxu3 %v2034_v61  ;;  %v1924_v47 = vld [vmem:[#allocation8 + $0xa8] sm:$0xff] }
 0x2c3   : > { %2293 = vmatmul.f32.vlgmr.msrb.gmra.mxu1 %v3646_v36  ;;  %2333 = vmatmul.f32.vlgmr.msrb.gmra.mxu3 %v3646_v36  ;;  %v2044_v61 = vld [vmem:[#allocation8 + $0x468] sm:$0xff] }
 0x2c4   : > { %2312 = vmatpush.msrb.mxu2 %v1906_v12  ;;  %2338 = vmatpush.msra.mxu0 %v2019_v59  ;;  %v1916_v12 = vld [vmem:[#allocation8 + $0x68] sm:$0xff]  ;;  %v2029_v59 = vld [vmem:[#allocation8 + $0x3f0] sm:$0xff] }
 0x2c5   : > { %2313 = vmatmul.f32.vlgmr.msrb.gmra.mxu2 %v3644_v35  ;;  %2357 = vmatpush.msra.mxu1 %v2155_v19  ;;  %v2030_v19 = vld [vmem:[#allocation8 + $0x3f8] sm:$0xff] }
 0x2c6   : > { %2377 = vmatpush.msra.mxu2 %v2028_v9  ;;  %2397 = vmatpush.msra.mxu3 %v2156_v39  ;;  %v2043_v9 = vld [vmem:[#allocation8 + $0x460] sm:$0xff]  ;;  %v2036_v39 = vld [vmem:[#allocation8 + $0x428] sm:$0xff] }
 0x2c7   : > { %2339 = vmatpush.msra.mxu0 %v2011_v51  ;;  %2358 = vmatpush.msra.mxu1 %v2147_v24  ;;  %v2021_v51 = vld [vmem:[#allocation8 + $0x3b0] sm:$0xff] }
 0x2c8   : > { %2378 = vmatpush.msra.mxu2 %v2020_v37  ;;  %2398 = vmatpush.msra.mxu3 %v2148_v57  ;;  %v2035_v37 = vld [vmem:[#allocation8 + $0x420] sm:$0xff]  ;;  %v2157_v24 = vld [vmem:[#allocation8 + $0x7f0] sm:$0xff]  ;;  %v2158_v57 = vld [vmem:[#allocation8 + $0x7f8] sm:$0xff] }
 0x2c9   : > { %2340 = vmatpush.msra.mxu0 %v2003_v50  ;;  %2359 = vmatpush.msra.mxu1 %v2139_v29  ;;  %v2013_v50 = vld [vmem:[#allocation8 + $0x370] sm:$0xff] }
 0x2ca   : > { %2379 = vmatpush.msra.mxu2 %v2012_v49  ;;  %2399 = vmatpush.msra.mxu3 %v2140_v1  ;;  %v2022_v49 = vld [vmem:[#allocation8 + $0x3b8] sm:$0xff]  ;;  %v2149_v29 = vld [vmem:[#allocation8 + $0x7b0] sm:$0xff] }
 0x2cb   : > { %2341 = vmatpush.msra.mxu0 %v1995_v17  ;;  %2360 = vmatpush.msra.mxu1 %v2131_v23  ;;  %v2150_v1 = vld [vmem:[#allocation8 + $0x7b8] sm:$0xff]  ;;  %v2005_v17 = vld [vmem:[#allocation8 + $0x330] sm:$0xff] }
 0x2cc   : > { %2380 = vmatpush.msra.mxu2 %v2004_v33  ;;  %2400 = vmatpush.msra.mxu3 %v2132_v30  ;;  %v2014_v33 = vld [vmem:[#allocation8 + $0x378] sm:$0xff]  ;;  %v2141_v23 = vld [vmem:[#allocation8 + $0x770] sm:$0xff] }
 0x2cd   : > { %2342 = vmatpush.msra.mxu0 %v1987_v63  ;;  %2361 = vmatpush.msra.mxu1 %v2123_v31  ;;  %v2142_v30 = vld [vmem:[#allocation8 + $0x778] sm:$0xff]  ;;  %v1997_v63 = vld [vmem:[#allocation8 + $0x2f0] sm:$0xff] }
 0x2ce   : > { %2381 = vmatpush.msra.mxu2 %v1996_v15  ;;  %2401 = vmatpush.msra.mxu3 %v2124_v52  ;;  %v2006_v15 = vld [vmem:[#allocation8 + $0x338] sm:$0xff]  ;;  %v2133_v31 = vld [vmem:[#allocation8 + $0x730] sm:$0xff] }
 0x2cf   : > { %2343 = vmatpush.msra.mxu0 %v1979_v43  ;;  %2362 = vmatpush.msra.mxu1 %v2115_v0  ;;  %v2134_v52 = vld [vmem:[#allocation8 + $0x738] sm:$0xff]  ;;  %v1989_v43 = vld [vmem:[#allocation8 + $0x2b0] sm:$0xff] }
 0x2d0   : > { %2382 = vmatpush.msra.mxu2 %v1988_v11  ;;  %2402 = vmatpush.msra.mxu3 %v2116_v18  ;;  %v1998_v11 = vld [vmem:[#allocation8 + $0x2f8] sm:$0xff]  ;;  %v2125_v0 = vld [vmem:[#allocation8 + $0x6f0] sm:$0xff] }
 0x2d1   : > { %2344 = vmatpush.msra.mxu0 %v1971_v14  ;;  %2363 = vmatpush.msra.mxu1 %v2107_v21  ;;  %v2126_v18 = vld [vmem:[#allocation8 + $0x6f8] sm:$0xff]  ;;  %v1981_v14 = vld [vmem:[#allocation8 + $0x270] sm:$0xff] }
 0x2d2   : > { %2383 = vmatpush.msra.mxu2 %v1980_v60  ;;  %2403 = vmatpush.msra.mxu3 %v2108_v2  ;;  %v1990_v60 = vld [vmem:[#allocation8 + $0x2b8] sm:$0xff]  ;;  %v2117_v21 = vld [vmem:[#allocation8 + $0x6b0] sm:$0xff] }
 0x2d3   : > { %2345 = vmatpush.msra.mxu0 %v1963_v5  ;;  %2364 = vmatpush.msra.mxu1 %v2099_v44  ;;  %v2118_v2 = vld [vmem:[#allocation8 + $0x6b8] sm:$0xff]  ;;  %v1973_v5 = vld [vmem:[#allocation8 + $0x230] sm:$0xff] }
 0x2d4   : > { %2384 = vmatpush.msra.mxu2 %v1972_v40  ;;  %2404 = vmatpush.msra.mxu3 %v2100_v7  ;;  %v1982_v40 = vld [vmem:[#allocation8 + $0x278] sm:$0xff]  ;;  %v2109_v44 = vld [vmem:[#allocation8 + $0x670] sm:$0xff] }
 0x2d5   : > { %2346 = vmatpush.msra.mxu0 %v1955_v42  ;;  %2365 = vmatpush.msra.mxu1 %v2091_v34  ;;  %v2110_v7 = vld [vmem:[#allocation8 + $0x678] sm:$0xff]  ;;  %v1965_v42 = vld [vmem:[#allocation8 + $0x1f0] sm:$0xff] }
 0x2d6   : > { %2385 = vmatpush.msra.mxu2 %v1964_v16  ;;  %2405 = vmatpush.msra.mxu3 %v2092_v56  ;;  %v1974_v16 = vld [vmem:[#allocation8 + $0x238] sm:$0xff]  ;;  %v2101_v34 = vld [vmem:[#allocation8 + $0x630] sm:$0xff] }
 0x2d7   : > { %2347 = vmatpush.msra.mxu0 %v1947_v62  ;;  %2366 = vmatpush.msra.mxu1 %v2083_v58  ;;  %v2102_v56 = vld [vmem:[#allocation8 + $0x638] sm:$0xff]  ;;  %v1957_v62 = vld [vmem:[#allocation8 + $0x1b0] sm:$0xff] }
 0x2d8   : > { %2386 = vmatpush.msra.mxu2 %v1956_v38  ;;  %2406 = vmatpush.msra.mxu3 %v2084_v46  ;;  %v1966_v38 = vld [vmem:[#allocation8 + $0x1f8] sm:$0xff]  ;;  %v2093_v58 = vld [vmem:[#allocation8 + $0x5f0] sm:$0xff] }
 0x2d9   : > { %2348 = vmatpush.msra.mxu0 %v1939_v26  ;;  %2367 = vmatpush.msra.mxu1 %v2075_v54  ;;  %v2094_v46 = vld [vmem:[#allocation8 + $0x5f8] sm:$0xff]  ;;  %v1949_v26 = vld [vmem:[#allocation8 + $0x170] sm:$0xff] }
 0x2da   : > { %2387 = vmatpush.msra.mxu2 %v1948_v27  ;;  %2407 = vmatpush.msra.mxu3 %v2076_v20  ;;  %v1958_v27 = vld [vmem:[#allocation8 + $0x1b8] sm:$0xff]  ;;  %v2085_v54 = vld [vmem:[#allocation8 + $0x5b0] sm:$0xff] }
 0x2db   : > { %2349 = vmatpush.msra.mxu0 %v1931_v25  ;;  %2368 = vmatpush.msra.mxu1 %v2067_v48  ;;  %v2086_v20 = vld [vmem:[#allocation8 + $0x5b8] sm:$0xff]  ;;  %v1941_v25 = vld [vmem:[#allocation8 + $0x130] sm:$0xff] }
 0x2dc   : > { %2388 = vmatpush.msra.mxu2 %v1940_v4  ;;  %2408 = vmatpush.msra.mxu3 %v2068_v55  ;;  %v1950_v4 = vld [vmem:[#allocation8 + $0x178] sm:$0xff]  ;;  %v2077_v48 = vld [vmem:[#allocation8 + $0x570] sm:$0xff] }
 0x2dd   : > { %2350 = vmatpush.msra.mxu0 %v1923_v13  ;;  %2369 = vmatpush.msra.mxu1 %v2059_v3  ;;  %v2078_v55 = vld [vmem:[#allocation8 + $0x578] sm:$0xff]  ;;  %v1933_v13 = vld [vmem:[#allocation8 + $0xf0] sm:$0xff] }
 0x2de   : > { %2389 = vmatpush.msra.mxu2 %v1932_v6  ;;  %2409 = vmatpush.msra.mxu3 %v2060_v45  ;;  %v1942_v6 = vld [vmem:[#allocation8 + $0x138] sm:$0xff]  ;;  %v2069_v3 = vld [vmem:[#allocation8 + $0x530] sm:$0xff] }
 0x2df   : > { %2351 = vmatpush.msra.mxu0 %v1915_v28  ;;  %2370 = vmatpush.msra.mxu1 %v2051_v53  ;;  %v2070_v45 = vld [vmem:[#allocation8 + $0x538] sm:$0xff]  ;;  %v1925_v28 = vld [vmem:[#allocation8 + $0xb0] sm:$0xff] }
 0x2e0   : > { %2390 = vmatpush.msra.mxu2 %v1924_v47  ;;  %2410 = vmatpush.msra.mxu3 %v2052_v8  ;;  %v1934_v47 = vld [vmem:[#allocation8 + $0xf8] sm:$0xff]  ;;  %v2061_v53 = vld [vmem:[#allocation8 + $0x4f0] sm:$0xff] }
 0x2e1   : > { %2352 = vmatpush.msra.mxu0 %v1907_v32  ;;  %2371 = vmatpush.msra.mxu1 %v2043_v9  ;;  %v2062_v8 = vld [vmem:[#allocation8 + $0x4f8] sm:$0xff]  ;;  %v1917_v32 = vld [vmem:[#allocation8 + $0x70] sm:$0xff] }
 0x2e2   : > { %2391 = vmatpush.msra.mxu2 %v1916_v12  ;;  %2411 = vmatpush.msra.mxu3 %v2044_v61  ;;  %v1926_v12 = vld [vmem:[#allocation8 + $0xb8] sm:$0xff]  ;;  %v2053_v9 = vld [vmem:[#allocation8 + $0x4b0] sm:$0xff] }
 0x2e3   : > { %2353 = vmatmul.f32.vlgmr.msra.gmra.mxu0 %v3644_v35  ;;  %2372 = vmatpush.msra.mxu1 %v2035_v37  ;;  %v2054_v61 = vld [vmem:[#allocation8 + $0x4b8] sm:$0xff] }
 0x2e4   : > { %2392 = vmatpush.msra.mxu2 %v1908_v41  ;;  %2417 = vmatpush.msrb.mxu0 %v2029_v59  ;;  %v1918_v41 = vld [vmem:[#allocation8 + $0x78] sm:$0xff]  ;;  %v1909_v59 = vld [vmem:[#allocation8 + $0x30] sm:$0xff] }
 0x2e5   : > { %2393 = vmatmul.f32.vlgmr.msra.gmra.mxu2 %v3644_v35  ;;  %2412 = vmatpush.msra.mxu3 %v2036_v39  ;;  %v1910_v37 = vld [vmem:[#allocation8 + $0x38] sm:$0xff] }
 0x2e6   : > { %2457 = vmatpush.msrb.mxu2 %v2030_v19  ;;  %2373 = vmatmul.f32.vlgmr.msra.gmra.mxu1 %v3646_v36  ;;  %v2045_v19 = vld [vmem:[#allocation8 + $0x470] sm:$0xff]  ;;  %v2046_v39 = vld [vmem:[#allocation8 + $0x478] sm:$0xff] }
 0x2e7   : > { %2413 = vmatmul.f32.vlgmr.msra.gmra.mxu3 %v3646_v36  ;;  %2418 = vmatpush.msrb.mxu0 %v2021_v51  ;;  %v2037_v51 = vld [vmem:[#allocation8 + $0x430] sm:$0xff] }
 0x2e8   : > { %2437 = vmatpush.msrb.mxu1 %v2157_v24  ;;  %2458 = vmatpush.msrb.mxu2 %v2022_v49  ;;  %v2038_v24 = vld [vmem:[#allocation8 + $0x438] sm:$0xff] }
 0x2e9   : > { %2477 = vmatpush.msrb.mxu3 %v2158_v57  ;;  %2419 = vmatpush.msrb.mxu0 %v2013_v50  ;;  %v2568_v49 = vld [vmem:[#allocation9 + $0x78] sm:$0xff] }
 0x2ea   : > { %2438 = vmatpush.msrb.mxu1 %v2149_v29  ;;  %2459 = vmatpush.msrb.mxu2 %v2014_v33  ;;  %v2584_v57 = vld [vmem:[#allocation9 + $0xf8] sm:$0xff]  ;;  %v2567_v29 = vld [vmem:[#allocation9 + $0x70] sm:$0xff] }
 0x2eb   : > { %2478 = vmatpush.msrb.mxu3 %v2150_v1  ;;  %2420 = vmatpush.msrb.mxu0 %v2005_v17  ;;  %v2600_v50 = vld [vmem:[#allocation9 + $0x178] sm:$0xff]  ;;  %v2583_v33 = vld [vmem:[#allocation9 + $0xf0] sm:$0xff]  ;;  %v2566_v17 = vld [vmem:[#allocation9 + $0x68] sm:$0xff] }
 0x2ec   : > { %2439 = vmatpush.msrb.mxu1 %v2141_v23  ;;  %2460 = vmatpush.msrb.mxu2 %v2006_v15  ;;  %v2599_v1 = vld [vmem:[#allocation9 + $0x170] sm:$0xff]  ;;  %v2582_v23 = vld [vmem:[#allocation9 + $0xe8] sm:$0xff]  ;;  %v2581_v15 = vld [vmem:[#allocation9 + $0xe0] sm:$0xff] }
 0x2ed   : > { %2479 = vmatpush.msrb.mxu3 %v2142_v30  ;;  %2421 = vmatpush.msrb.mxu0 %v1997_v63  ;;  %v2598_v30 = vld [vmem:[#allocation9 + $0x168] sm:$0xff]  ;;  %v2580_v63 = vld [vmem:[#allocation9 + $0xd8] sm:$0xff] }
 0x2ee   : > { %2440 = vmatpush.msrb.mxu1 %v2133_v31  ;;  %2461 = vmatpush.msrb.mxu2 %v1998_v11  ;;  %v2597_v31 = vld [vmem:[#allocation9 + $0x160] sm:$0xff]  ;;  %v2616_v11 = vld [vmem:[#allocation9 + $0x1f8] sm:$0xff] }
 0x2ef   : > { %2480 = vmatpush.msrb.mxu3 %v2134_v52  ;;  %2422 = vmatpush.msrb.mxu0 %v1989_v43  ;;  %v2563_v52 = vld [vmem:[#allocation9 + $0x50] sm:$0xff] }
 0x2f0   : > { %2441 = vmatpush.msrb.mxu1 %v2125_v0  ;;  %2462 = vmatpush.msrb.mxu2 %v1990_v60  ;;  %v2579_v43 = vld [vmem:[#allocation9 + $0xd0] sm:$0xff]  ;;  %v2596_v0 = vld [vmem:[#allocation9 + $0x158] sm:$0xff] }
 0x2f1   : > { %2481 = vmatpush.msrb.mxu3 %v2126_v18  ;;  %2423 = vmatpush.msrb.mxu0 %v1981_v14  ;;  %v2615_v60 = vld [vmem:[#allocation9 + $0x1f0] sm:$0xff]  ;;  %v2562_v18 = vld [vmem:[#allocation9 + $0x48] sm:$0xff] }
 0x2f2   : > { %2442 = vmatpush.msrb.mxu1 %v2117_v21  ;;  %2463 = vmatpush.msrb.mxu2 %v1982_v40  ;;  %v2578_v14 = vld [vmem:[#allocation9 + $0xc8] sm:$0xff]  ;;  %v2595_v21 = vld [vmem:[#allocation9 + $0x150] sm:$0xff] }
 0x2f3   : > { %2482 = vmatpush.msrb.mxu3 %v2118_v2  ;;  %2424 = vmatpush.msrb.mxu0 %v1973_v5  ;;  %v2614_v40 = vld [vmem:[#allocation9 + $0x1e8] sm:$0xff]  ;;  %v2561_v2 = vld [vmem:[#allocation9 + $0x40] sm:$0xff] }
 0x2f4   : > { %2443 = vmatpush.msrb.mxu1 %v2109_v44  ;;  %2464 = vmatpush.msrb.mxu2 %v1974_v16  ;;  %v2577_v5 = vld [vmem:[#allocation9 + $0xc0] sm:$0xff]  ;;  %v2594_v44 = vld [vmem:[#allocation9 + $0x148] sm:$0xff] }
 0x2f5   : > { %2483 = vmatpush.msrb.mxu3 %v2110_v7  ;;  %2425 = vmatpush.msrb.mxu0 %v1965_v42  ;;  %v2613_v16 = vld [vmem:[#allocation9 + $0x1e0] sm:$0xff]  ;;  %v2560_v7 = vld [vmem:[#allocation9 + $0x38] sm:$0xff] }
 0x2f6   : > { %2444 = vmatpush.msrb.mxu1 %v2101_v34  ;;  %2465 = vmatpush.msrb.mxu2 %v1966_v38  ;;  %v2576_v42 = vld [vmem:[#allocation9 + $0xb8] sm:$0xff]  ;;  %v2593_v34 = vld [vmem:[#allocation9 + $0x140] sm:$0xff] }
 0x2f7   : > { %2484 = vmatpush.msrb.mxu3 %v2102_v56  ;;  %2426 = vmatpush.msrb.mxu0 %v1957_v62  ;;  %v2612_v38 = vld [vmem:[#allocation9 + $0x1d8] sm:$0xff]  ;;  %v2559_v56 = vld [vmem:[#allocation9 + $0x30] sm:$0xff] }
 0x2f8   : > { %2445 = vmatpush.msrb.mxu1 %v2093_v58  ;;  %2466 = vmatpush.msrb.mxu2 %v1958_v27  ;;  %v2575_v62 = vld [vmem:[#allocation9 + $0xb0] sm:$0xff]  ;;  %v2592_v58 = vld [vmem:[#allocation9 + $0x138] sm:$0xff] }
 0x2f9   : > { %2485 = vmatpush.msrb.mxu3 %v2094_v46  ;;  %2427 = vmatpush.msrb.mxu0 %v1949_v26  ;;  %v2611_v27 = vld [vmem:[#allocation9 + $0x1d0] sm:$0xff]  ;;  %v2558_v46 = vld [vmem:[#allocation9 + $0x28] sm:$0xff] }
 0x2fa   : > { %2446 = vmatpush.msrb.mxu1 %v2085_v54  ;;  %2467 = vmatpush.msrb.mxu2 %v1950_v4  ;;  %v2574_v26 = vld [vmem:[#allocation9 + $0xa8] sm:$0xff]  ;;  %v2591_v54 = vld [vmem:[#allocation9 + $0x130] sm:$0xff] }
 0x2fb   : > { %2486 = vmatpush.msrb.mxu3 %v2086_v20  ;;  %2428 = vmatpush.msrb.mxu0 %v1941_v25  ;;  %v2610_v4 = vld [vmem:[#allocation9 + $0x1c8] sm:$0xff]  ;;  %v2557_v20 = vld [vmem:[#allocation9 + $0x20] sm:$0xff] }
 0x2fc   : > { %2447 = vmatpush.msrb.mxu1 %v2077_v48  ;;  %2468 = vmatpush.msrb.mxu2 %v1942_v6  ;;  %v2573_v25 = vld [vmem:[#allocation9 + $0xa0] sm:$0xff]  ;;  %v2590_v48 = vld [vmem:[#allocation9 + $0x128] sm:$0xff] }
 0x2fd   : > { %2487 = vmatpush.msrb.mxu3 %v2078_v55  ;;  %2429 = vmatpush.msrb.mxu0 %v1933_v13  ;;  %v2609_v6 = vld [vmem:[#allocation9 + $0x1c0] sm:$0xff]  ;;  %v2556_v55 = vld [vmem:[#allocation9 + $0x18] sm:$0xff] }
 0x2fe   : > { %2448 = vmatpush.msrb.mxu1 %v2069_v3  ;;  %2469 = vmatpush.msrb.mxu2 %v1934_v47  ;;  %v2572_v13 = vld [vmem:[#allocation9 + $0x98] sm:$0xff]  ;;  %v2589_v3 = vld [vmem:[#allocation9 + $0x120] sm:$0xff] }
 0x2ff   : > { %2488 = vmatpush.msrb.mxu3 %v2070_v45  ;;  %2430 = vmatpush.msrb.mxu0 %v1925_v28  ;;  %v4491_v47 = vld [vmem:[%s4568_s7] sm:$0xff]  ;;  %v2608_v45 = vld [vmem:[#allocation9 + $0x1b8] sm:$0xff]  ;;  %v2555_v28 = vld [vmem:[#allocation9 + $0x10] sm:$0xff] }
 0x300   : > { %2449 = vmatpush.msrb.mxu1 %v2061_v53  ;;  %2470 = vmatpush.msrb.mxu2 %v1926_v12  ;;  %v2571_v53 = vld [vmem:[#allocation9 + $0x90] sm:$0xff]  ;;  %v2588_v12 = vld [vmem:[#allocation9 + $0x118] sm:$0xff] }
 0x301   : > { %2489 = vmatpush.msrb.mxu3 %v2062_v8  ;;  %2431 = vmatpush.msrb.mxu0 %v1917_v32  ;;  %v2607_v8 = vld [vmem:[#allocation9 + $0x1b0] sm:$0xff]  ;;  %v2161_v32 = vperm.slane %v4491_v47, 0 }
 0x302   : > { %2450 = vmatpush.msrb.mxu1 %v2053_v9  ;;  %2471 = vmatpush.msrb.mxu2 %v1918_v41  ;;  %v2554_v9 = vld [vmem:[#allocation9 + $0x8] sm:$0xff] }
 0x303   : > { %2490 = vmatpush.msrb.mxu3 %v2054_v61  ;;  %2432 = vmatpush.msrb.mxu0 %v1909_v59  ;;  %v2570_v41 = vld [vmem:[#allocation9 + $0x88] sm:$0xff]  ;;  %v2587_v61 = vld [vmem:[#allocation9 + $0x110] sm:$0xff] }
 0x304   : > { %2451 = vmatpush.msrb.mxu1 %v2045_v19  ;;  %2472 = vmatpush.msrb.mxu2 %v1910_v37  ;;  %v2606_v59 = vld [vmem:[#allocation9 + $0x1a8] sm:$0xff]  ;;  %v2553_v19 = vld [vmem:[#allocation9] sm:$0xff] }
 0x305   : > { %2491 = vmatpush.msrb.mxu3 %v2046_v39  ;;  %2433 = vmatmul.f32.vlgmr.msrb.gmra.mxu0 %v3644_v35  ;;  %v2569_v37 = vld [vmem:[#allocation9 + $0x80] sm:$0xff]  ;;  %v2586_v39 = vld [vmem:[#allocation9 + $0x108] sm:$0xff] }
 0x306   : > { %2473 = vmatmul.f32.vlgmr.msrb.gmra.mxu2 %v3644_v35  ;;  %2452 = vmatpush.msrb.mxu1 %v2037_v51  ;;  %v2565_v35 = vld [vmem:[#allocation9 + $0x60] sm:$0xff] }
 0x307   : > { %2492 = vmatpush.msrb.mxu3 %v2038_v24  ;;  %2453 = vmatmul.f32.vlgmr.msrb.gmra.mxu1 %v3646_v36  ;;  %v2605_v24 = vld [vmem:[#allocation9 + $0x1a0] sm:$0xff] }
 0x308   : > { %2493 = vmatmul.f32.vlgmr.msrb.gmra.mxu3 %v3646_v36  ;;  %2681 = vmatpush.msra.mxu0 %v2568_v49  ;;  %v2564_v36 = vld [vmem:[#allocation9 + $0x58] sm:$0xff] }
 0x309   : > { %2701 = vmatpush.msra.mxu1 %v2584_v57  ;;  %2721 = vmatpush.msra.mxu2 %v2600_v50  ;;  %v2585_v57 = vld [vmem:[#allocation9 + $0x100] sm:$0xff]  ;;  %v2604_v50 = vld [vmem:[#allocation9 + $0x198] sm:$0xff] }
 0x30a   : > { %2682 = vmatpush.msra.mxu0 %v2567_v29  ;;  %2741 = vmatpush.msra.mxu3 %v2616_v11  ;;  %v2632_v29 = vld [vmem:[#allocation9 + $0x278] sm:$0xff] }
 0x30b   : > { %2702 = vmatpush.msra.mxu1 %v2583_v33  ;;  %2722 = vmatpush.msra.mxu2 %v2599_v1  ;;  %v2603_v33 = vld [vmem:[#allocation9 + $0x190] sm:$0xff] }
 0x30c   : > { %2683 = vmatpush.msra.mxu0 %v2566_v17  ;;  %2742 = vmatpush.msra.mxu3 %v2615_v60  ;;  %v2162_v17 = vperm.slane %v4491_v47, 1  ;;  %v2163_v60 = vperm.slane %v4491_v47, 2 }
 0x30d   : > { %2703 = vmatpush.msra.mxu1 %v2582_v23  ;;  %2723 = vmatpush.msra.mxu2 %v2598_v30  ;;  %v2631_v23 = vld [vmem:[#allocation9 + $0x270] sm:$0xff]  ;;  %v2648_v30 = vld [vmem:[#allocation9 + $0x2f8] sm:$0xff] }
 0x30e   : > { %2684 = vmatpush.msra.mxu0 %v2565_v35  ;;  %2743 = vmatpush.msra.mxu3 %v2614_v40  ;;  %v2628_v40 = vld [vmem:[#allocation9 + $0x258] sm:$0xff] }
 0x30f   : > { %2704 = vmatpush.msra.mxu1 %v2581_v15  ;;  %2724 = vmatpush.msra.mxu2 %v2597_v31  ;;  %v2602_v15 = vld [vmem:[#allocation9 + $0x188] sm:$0xff] }
 0x310   : > { %2685 = vmatpush.msra.mxu0 %v2564_v36  ;;  %2744 = vmatpush.msra.mxu3 %v2613_v16  ;;  %v2630_v36 = vld [vmem:[#allocation9 + $0x268] sm:$0xff] }
 0x311   : > { %2705 = vmatpush.msra.mxu1 %v2580_v63  ;;  %2725 = vmatpush.msra.mxu2 %v2596_v0  ;;  %v2647_v63 = vld [vmem:[#allocation9 + $0x2f0] sm:$0xff] }
 0x312   : > { %2686 = vmatpush.msra.mxu0 %v2563_v52  ;;  %2745 = vmatpush.msra.mxu3 %v2612_v38  ;;  %v2601_v52 = vld [vmem:[#allocation9 + $0x180] sm:$0xff] }
 0x313   : > { %2706 = vmatpush.msra.mxu1 %v2579_v43  ;;  %2726 = vmatpush.msra.mxu2 %v2595_v21  ;;  %v2646_v43 = vld [vmem:[#allocation9 + $0x2e8] sm:$0xff] }
 0x314   : > { %2687 = vmatpush.msra.mxu0 %v2562_v18  ;;  %2746 = vmatpush.msra.mxu3 %v2611_v27  ;;  %v2629_v18 = vld [vmem:[#allocation9 + $0x260] sm:$0xff] }
 0x315   : > { %2707 = vmatpush.msra.mxu1 %v2578_v14  ;;  %2727 = vmatpush.msra.mxu2 %v2594_v44 }
 0x316   : > { %2688 = vmatpush.msra.mxu0 %v2561_v2  ;;  %2747 = vmatpush.msra.mxu3 %v2610_v4 }
 0x317   : > { %2708 = vmatpush.msra.mxu1 %v2577_v5  ;;  %2728 = vmatpush.msra.mxu2 %v2593_v34 }
 0x318   : > { %2689 = vmatpush.msra.mxu0 %v2560_v7  ;;  %2748 = vmatpush.msra.mxu3 %v2609_v6  ;;  %v2627_v7 = vld [vmem:[#allocation9 + $0x250] sm:$0xff]  ;;  %v2644_v6 = vld [vmem:[#allocation9 + $0x2d8] sm:$0xff] }
 0x319   : > { %2709 = vmatpush.msra.mxu1 %v2576_v42  ;;  %2729 = vmatpush.msra.mxu2 %v2592_v58  ;;  %v2645_v58 = vld [vmem:[#allocation9 + $0x2e0] sm:$0xff] }
 0x31a   : > { %2690 = vmatpush.msra.mxu0 %v2559_v56  ;;  %2749 = vmatpush.msra.mxu3 %v2608_v45  ;;  %v2164_v56 = vperm.slane %v4491_v47, 3 }
 0x31b   : > { %2710 = vmatpush.msra.mxu1 %v2575_v62  ;;  %2730 = vmatpush.msra.mxu2 %v2591_v54  ;;  %v2626_v62 = vld [vmem:[#allocation9 + $0x248] sm:$0xff] }
 0x31c   : > { %2691 = vmatpush.msra.mxu0 %v2558_v46  ;;  %2750 = vmatpush.msra.mxu3 %v2607_v8 }
 0x31d   : > { %2711 = vmatpush.msra.mxu1 %v2574_v26  ;;  %2731 = vmatpush.msra.mxu2 %v2590_v48  ;;  %v2625_v48 = vld [vmem:[#allocation9 + $0x240] sm:$0xff] }
 0x31e   : > { %2692 = vmatpush.msra.mxu0 %v2557_v20  ;;  %2751 = vmatpush.msra.mxu3 %v2606_v59 }
 0x31f   : > { %2712 = vmatpush.msra.mxu1 %v2573_v25  ;;  %2732 = vmatpush.msra.mxu2 %v2589_v3 }
 0x320   : > { %2693 = vmatpush.msra.mxu0 %v2556_v55  ;;  %2752 = vmatpush.msra.mxu3 %v2605_v24 }
 0x321   : > { %2713 = vmatpush.msra.mxu1 %v2572_v13  ;;  %2733 = vmatpush.msra.mxu2 %v2588_v12 }
 0x322   : > { %2694 = vmatpush.msra.mxu0 %v2555_v28  ;;  %2753 = vmatpush.msra.mxu3 %v2604_v50  ;;  %v2624_v28 = vld [vmem:[#allocation9 + $0x238] sm:$0xff]  ;;  %v2621_v50 = vld [vmem:[#allocation9 + $0x220] sm:$0xff] }
 0x323   : > { %2714 = vmatpush.msra.mxu1 %v2571_v53  ;;  %2734 = vmatpush.msra.mxu2 %v2587_v61  ;;  %v2643_v53 = vld [vmem:[#allocation9 + $0x2d0] sm:$0xff]  ;;  %v2642_v61 = vld [vmem:[#allocation9 + $0x2c8] sm:$0xff] }
 0x324   : > { %2695 = vmatpush.msra.mxu0 %v2554_v9  ;;  %2754 = vmatpush.msra.mxu3 %v2603_v33 }
 0x325   : > { %2715 = vmatpush.msra.mxu1 %v2570_v41  ;;  %2735 = vmatpush.msra.mxu2 %v2586_v39  ;;  %v2623_v41 = vld [vmem:[#allocation9 + $0x230] sm:$0xff]  ;;  %v2622_v39 = vld [vmem:[#allocation9 + $0x228] sm:$0xff] }
 0x326   : > { %2696 = vmatpush.msra.mxu0 %v2553_v19  ;;  %2755 = vmatpush.msra.mxu3 %v2602_v15 }
 0x327   : > { %2716 = vmatpush.msra.mxu1 %v2569_v37  ;;  %2736 = vmatpush.msra.mxu2 %v2585_v57 }
 0x328   : > { %2761 = vmatpush.msrb.mxu0 %v2632_v29  ;;  %2756 = vmatpush.msra.mxu3 %v2601_v52  ;;  %v2640_v29 = vld [vmem:[#allocation9 + $0x2b8] sm:$0xff] }
 0x329   : > { %2781 = vmatpush.msrb.mxu1 %v2648_v30  ;;  %v2619_v30 = vld [vmem:[#allocation9 + $0x210] sm:$0xff] }
 0x32a   : > { %2762 = vmatpush.msrb.mxu0 %v2631_v23  ;;  %v2639_v23 = vld [vmem:[#allocation9 + $0x2b0] sm:$0xff] }
 0x32b   : > { %2782 = vmatpush.msrb.mxu1 %v2647_v63 }
 0x32c   : > { %2763 = vmatpush.msrb.mxu0 %v2630_v36  ;;  %v2638_v36 = vld [vmem:[#allocation9 + $0x2a8] sm:$0xff] }
 0x32d   : > { %2783 = vmatpush.msrb.mxu1 %v2646_v43  ;;  %v2617_v43 = vld [vmem:[#allocation9 + $0x200] sm:$0xff] }
 0x32e   : > { %2764 = vmatpush.msrb.mxu0 %v2629_v18 }
 0x32f   : > { %2784 = vmatpush.msrb.mxu1 %v2645_v58 }
 0x330   : > { %2765 = vmatpush.msrb.mxu0 %v2628_v40  ;;  %v2634_v40 = vld [vmem:[#allocation9 + $0x288] sm:$0xff] }
 0x331   : > { %2785 = vmatpush.msrb.mxu1 %v2644_v6  ;;  %v2675_v6 = vld [vmem:[#allocation9 + $0x3d0] sm:$0xff] }
 0x332   : > { %2766 = vmatpush.msrb.mxu0 %v2627_v7  ;;  %v2660_v7 = vld [vmem:[#allocation9 + $0x358] sm:$0xff] }
 0x333   : > { %2786 = vmatpush.msrb.mxu1 %v2643_v53  ;;  %v2674_v53 = vld [vmem:[#allocation9 + $0x3c8] sm:$0xff] }
 0x334   : > { %v2194_v51 = vpop.f32.mrf.mxu0  ;;  %v2214_v1 = vpop.f32.mrf.mxu1  ;;  %2767 = vmatpush.msrb.mxu0 %v2626_v62 }
 0x335   : > { %v2195_v49 = vadd.f32 %v2194_v51, %v2161_v32  ;;  %2787 = vmatpush.msrb.mxu1 %v2642_v61  ;;  %v2641_v51 = vld [vmem:[#allocation9 + $0x2c0] sm:$0xff] }
 0x336   : > { %v2234_v11 = vpop.f32.mrf.mxu2  ;;  %2768 = vmatpush.msrb.mxu0 %v2625_v48  ;;  %v2656_v48 = vld [vmem:[#allocation9 + $0x338] sm:$0xff]  ;;  %v2673_v61 = vld [vmem:[#allocation9 + $0x3c0] sm:$0xff] }
 0x337   : > { %v2215_v35 = vadd.f32 %v2214_v1, %v2195_v49  ;;  %v2235_v0 = vadd.f32 %v2234_v11, %v2162_v17  ;;  %2788 = vmatpush.msrb.mxu1 %v2641_v51  ;;  %v2620_v17 = vld [vmem:[#allocation9 + $0x218] sm:$0xff]  ;;  %v2637_v11 = vld [vmem:[#allocation9 + $0x2a0] sm:$0xff] }
 0x338   : > { %2769 = vmatpush.msrb.mxu0 %v2624_v28  ;;  %v2655_v28 = vld [vmem:[#allocation9 + $0x330] sm:$0xff]  ;;  %v2653_v51 = vld [vmem:[#allocation9 + $0x320] sm:$0xff] }
 0x339   : > { %v2497_v31 = vmax.f32 %v2215_v35, 0.0  ;;  %2789 = vmatpush.msrb.mxu1 %v2640_v29  ;;  %v2871_v29 = vld [vmem:[#allocation11 + $0xe8] sm:$0xff] }
 0x33a   : > { %2770 = vmatpush.msrb.mxu0 %v2623_v41  ;;  %v2654_v41 = vld [vmem:[#allocation9 + $0x328] sm:$0xff] }
 0x33b   : > { %v2505_v14 = vrot.slane %v2497_v31, 4  ;;  %2790 = vmatpush.msrb.mxu1 %v2639_v23 }
 0x33c   : > { %2771 = vmatpush.msrb.mxu0 %v2622_v39  ;;  %v2872_v39 = vld [vmem:[#allocation11 + $0xf0] sm:$0xff] }
 0x33d   : > { %v2254_v21 = vpop.f32.mrf.mxu3  ;;  %v2506_v2 = vmax.f32 %v2497_v31, %v2505_v14  ;;  %v2274_v44 = vpop.f32.mrf.mxu0  ;;  %2791 = vmatpush.msrb.mxu1 %v2638_v36  ;;  %v2618_v31 = vld [vmem:[#allocation9 + $0x208] sm:$0xff]  ;;  %v2635_v14 = vld [vmem:[#allocation9 + $0x290] sm:$0xff] }
 0x33e   : > { %v2255_v5 = vadd.f32 %v2254_v21, %v2235_v0  ;;  %v2275_v16 = vadd.f32 %v2274_v44, %v2163_v60  ;;  %2772 = vmatpush.msrb.mxu0 %v2621_v50  ;;  %v2636_v0 = vld [vmem:[#allocation9 + $0x298] sm:$0xff]  ;;  %v2663_v21 = vld [vmem:[#allocation9 + $0x370] sm:$0xff]  ;;  %v2661_v44 = vld [vmem:[#allocation9 + $0x360] sm:$0xff] }
 0x33f   : > { %v2507_v42 = vrot.slane %v2506_v2, 2  ;;  %2792 = vmatpush.msrb.mxu1 %v2637_v11  ;;  %v2664_v60 = vld [vmem:[#allocation9 + $0x378] sm:$0xff]  ;;  %v2670_v36 = vld [vmem:[#allocation9 + $0x3a8] sm:$0xff] }
 0x340   : > { %v2498_v34 = vmax.f32 %v2255_v5, 0.0  ;;  %v2294_v38 = vpop.f32.mrf.mxu1  ;;  %2773 = vmatpush.msrb.mxu0 %v2620_v17  ;;  %2801 = vmatpush.msrb.mxu2 %v2664_v60  ;;  %v2633_v5 = vld [vmem:[#allocation9 + $0x280] sm:$0xff]  ;;  %v2853_v17 = vld [vmem:[#allocation11 + $0x58] sm:$0xff]  ;;  %v2851_v60 = vld [vmem:[#allocation11 + $0x48] sm:$0xff] }
 0x341   : > { %v2508_v27 = vmax.f32 %v2506_v2, %v2507_v42  ;;  %v2295_v26 = vadd.f32 %v2294_v38, %v2275_v16  ;;  %2793 = vmatpush.msrb.mxu1 %v2636_v0  ;;  %v2662_v2 = vld [vmem:[#allocation9 + $0x368] sm:$0xff]  ;;  %v2680_v16 = vld [vmem:[#allocation9 + $0x3f8] sm:$0xff]  ;;  %v2679_v42 = vld [vmem:[#allocation9 + $0x3f0] sm:$0xff]  ;;  %v2165_v38 = vperm.slane %v4491_v47, 4 }
 0x342   : > { %v2511_v46 = vrot.slane %v2498_v34, 4  ;;  %2774 = vmatpush.msrb.mxu0 %v2619_v30  ;;  %2802 = vmatpush.msrb.mxu2 %v2663_v21  ;;  %v2651_v30 = vld [vmem:[#allocation9 + $0x310] sm:$0xff]  ;;  %v2669_v0 = vld [vmem:[#allocation9 + $0x3a0] sm:$0xff] }
 0x343   : > { %v2509_v54 = vrot.slane %v2508_v27, 1  ;;  %v2499_v20 = vmax.f32 %v2295_v26, 0.0  ;;  %2794 = vmatpush.msrb.mxu1 %v2635_v14  ;;  %2821 = vmatpush.msrb.mxu3 %v2680_v16  ;;  %v2868_v21 = vld [vmem:[#allocation11 + $0xd0] sm:$0xff]  ;;  %v2867_v16 = vld [vmem:[#allocation11 + $0xc8] sm:$0xff] }
 0x344   : > { %v2512_v4 = vmax.f32 %v2498_v34, %v2511_v46  ;;  %2775 = vmatpush.msrb.mxu0 %v2618_v31  ;;  %2803 = vmatpush.msrb.mxu2 %v2662_v2  ;;  %v2678_v34 = vld [vmem:[#allocation9 + $0x3e8] sm:$0xff]  ;;  %v2677_v46 = vld [vmem:[#allocation9 + $0x3e0] sm:$0xff]  ;;  %v2668_v2 = vld [vmem:[#allocation9 + $0x398] sm:$0xff] }
 0x345   : > { %v2510_v13 = vmax.f32 %v2508_v27, %v2509_v54  ;;  %v2517_v45 = vrot.slane %v2499_v20, 4  ;;  %2795 = vmatpush.msrb.mxu1 %v2634_v40  ;;  %2822 = vmatpush.msrb.mxu3 %v2679_v42  ;;  %v2658_v27 = vld [vmem:[#allocation9 + $0x348] sm:$0xff]  ;;  %v2166_v54 = vperm.slane %v4491_v47, 5  ;;  %v2649_v40 = vld [vmem:[#allocation9 + $0x300] sm:$0xff]  ;;  %v2849_v42 = vld [vmem:[#allocation11 + $0x38] sm:$0xff] }
 0x346   : > { %v2513_v3 = vrot.slane %v2512_v4, 2  ;;  %v2334_v12 = vpop.f32.mrf.mxu3  ;;  %2776 = vmatpush.msrb.mxu0 %v2617_v43  ;;  %2804 = vmatpush.msrb.mxu2 %v2661_v44  ;;  %v2650_v43 = vld [vmem:[#allocation9 + $0x308] sm:$0xff] }
 0x347   : > { %v2518_v32 = vmax.f32 %v2499_v20, %v2517_v45  ;;  %2697 = vmatmul.f32.vlgmr.msra.gmra.mxu0 %v2510_v13  ;;  %2796 = vmatpush.msrb.mxu1 %v2633_v5  ;;  %v2676_v20 = vld [vmem:[#allocation9 + $0x3d8] sm:$0xff]  ;;  %v2850_v5 = vld [vmem:[#allocation11 + $0x40] sm:$0xff] }
 0x348   : > { %v2314_v25 = vpop.f32.mrf.mxu2  ;;  %v2514_v8 = vmax.f32 %v2512_v4, %v2513_v3  ;;  %2805 = vmatpush.msrb.mxu2 %v2660_v7  ;;  %2823 = vmatpush.msrb.mxu3 %v2678_v34  ;;  %v2657_v4 = vld [vmem:[#allocation9 + $0x340] sm:$0xff]  ;;  %v2667_v7 = vld [vmem:[#allocation9 + $0x390] sm:$0xff] }
 0x349   : > { %v2315_v55 = vadd.f32 %v2314_v25, %v2164_v56  ;;  %v2519_v19 = vrot.slane %v2518_v32, 2  ;;  %v2659_v56 = vld [vmem:[#allocation9 + $0x350] sm:$0xff]  ;;  %v2866_v34 = vld [vmem:[#allocation11 + $0xc0] sm:$0xff] }
 0x34a   : > { %v2515_v59 = vrot.slane %v2514_v8, 1  ;;  %2806 = vmatpush.msrb.mxu2 %v2659_v56  ;;  %2824 = vmatpush.msrb.mxu3 %v2677_v46  ;;  %v2666_v56 = vld [vmem:[#allocation9 + $0x388] sm:$0xff]  ;;  %v2665_v46 = vld [vmem:[#allocation9 + $0x380] sm:$0xff] }
 0x34b   : > { %v2335_v9 = vadd.f32 %v2334_v12, %v2315_v55  ;;  %v2520_v49 = vmax.f32 %v2518_v32, %v2519_v19  ;;  %v2857_v55 = vld [vmem:[#allocation11 + $0x78] sm:$0xff]  ;;  %v2856_v12 = vld [vmem:[#allocation11 + $0x70] sm:$0xff] }
 0x34c   : > { %v2516_v24 = vmax.f32 %v2514_v8, %v2515_v59  ;;  %2807 = vmatpush.msrb.mxu2 %v2658_v27  ;;  %2825 = vmatpush.msrb.mxu3 %v2676_v20  ;;  %v2873_v32 = vld [vmem:[#allocation11 + $0xf8] sm:$0xff]  ;;  %v2855_v59 = vld [vmem:[#allocation11 + $0x68] sm:$0xff] }
 0x34d   : > { %v2500_v37 = vmax.f32 %v2335_v9, 0.0  ;;  %v2521_v33 = vrot.slane %v2520_v49, 1  ;;  %2874 = vmatpush.msra.mxu0 %v2857_v55  ;;  %v2865_v27 = vld [vmem:[#allocation11 + $0xb8] sm:$0xff]  ;;  %v2863_v20 = vld [vmem:[#allocation11 + $0xa8] sm:$0xff]  ;;  %v2844_v55 = vld [vmem:[#allocation11 + $0x10] sm:$0xff] }
 0x34e   : > { %2717 = vmatmul.f32.vlgmr.msra.gmra.mxu1 %v2516_v24  ;;  %2808 = vmatpush.msrb.mxu2 %v2657_v4  ;;  %v2672_v24 = vld [vmem:[#allocation9 + $0x3b8] sm:$0xff]  ;;  %v2846_v4 = vld [vmem:[#allocation11 + $0x20] sm:$0xff] }
 0x34f   : > { %v2523_v57 = vrot.slane %v2500_v37, 4  ;;  %v2522_v35 = vmax.f32 %v2520_v49, %v2521_v33  ;;  %2826 = vmatpush.msrb.mxu3 %v2675_v6  ;;  %2875 = vmatpush.msra.mxu0 %v2856_v12  ;;  %v2854_v49 = vld [vmem:[#allocation11 + $0x60] sm:$0xff]  ;;  %v2652_v33 = vld [vmem:[#allocation9 + $0x318] sm:$0xff]  ;;  %v2167_v6 = vperm.slane %v4491_v47, 6 }
 0x350   : > { %2809 = vmatpush.msrb.mxu2 %v2656_v48  ;;  %2894 = vmatpush.msra.mxu1 %v2873_v32  ;;  %v2862_v48 = vld [vmem:[#allocation11 + $0xa0] sm:$0xff]  ;;  %v2859_v32 = vld [vmem:[#allocation11 + $0x88] sm:$0xff] }
 0x351   : > { %v2524_v1 = vmax.f32 %v2500_v37, %v2523_v57  ;;  %2737 = vmatmul.f32.vlgmr.msra.gmra.mxu2 %v2522_v35  ;;  %2827 = vmatpush.msrb.mxu3 %v2674_v53  ;;  %v2842_v12 = vld [vmem:[#allocation11] sm:$0xff] }
 0x352   : > { %2810 = vmatpush.msrb.mxu2 %v2655_v28  ;;  %2876 = vmatpush.msra.mxu0 %v2855_v59  ;;  %v2860_v28 = vld [vmem:[#allocation11 + $0x90] sm:$0xff] }
 0x353   : > { %v2525_v15 = vrot.slane %v2524_v1, 2  ;;  %2828 = vmatpush.msrb.mxu3 %v2673_v61  ;;  %2895 = vmatpush.msra.mxu1 %v2872_v39  ;;  %v2858_v61 = vld [vmem:[#allocation11 + $0x80] sm:$0xff] }
 0x354   : > { %2811 = vmatpush.msrb.mxu2 %v2654_v41  ;;  %2877 = vmatpush.msra.mxu0 %v2854_v49  ;;  %v2168_v41 = vperm.slane %v4491_v47, 7 }
 0x355   : > { %v2526_v63 = vmax.f32 %v2524_v1, %v2525_v15  ;;  %2829 = vmatpush.msrb.mxu3 %v2672_v24  ;;  %2896 = vmatpush.msra.mxu1 %v2871_v29  ;;  %v2671_v1 = vld [vmem:[#allocation9 + $0x3b0] sm:$0xff]  ;;  %v2870_v15 = vld [vmem:[#allocation11 + $0xe0] sm:$0xff] }
 0x356   : > { %2812 = vmatpush.msrb.mxu2 %v2653_v51  ;;  %2878 = vmatpush.msra.mxu0 %v2853_v17 }
 0x357   : > { %v2527_v52 = vrot.slane %v2526_v63, 1  ;;  %2830 = vmatpush.msrb.mxu3 %v2671_v1  ;;  %2897 = vmatpush.msra.mxu1 %v2870_v15 }
 0x358   : > { %2813 = vmatpush.msrb.mxu2 %v2652_v33 }
 0x359   : > { %v2528_v18 = vmax.f32 %v2526_v63, %v2527_v52  ;;  %v2852_v63 = vld [vmem:[#allocation11 + $0x50] sm:$0xff]  ;;  %2831 = vmatpush.msrb.mxu3 %v2670_v36  ;;  %v2869_v52 = vld [vmem:[#allocation11 + $0xd8] sm:$0xff]  ;;  %v2933_v36 = vld [vmem:[%s4572_s11 + $0x68] sm:$0xff] }
 0x35a   : > { %2814 = vmatpush.msrb.mxu2 %v2651_v30  ;;  %2879 = vmatpush.msra.mxu0 %v2852_v63  ;;  %v2935_v30 = vld [vmem:[%s4572_s11 + $0x78] sm:$0xff]  ;;  %v2932_v63 = vld [vmem:[%s4572_s11 + $0x60] sm:$0xff] }
 0x35b   : > { %2757 = vmatmul.f32.vlgmr.msra.gmra.mxu3 %v2528_v18  ;;  %2898 = vmatpush.msra.mxu1 %v2869_v52  ;;  %v2929_v52 = vld [vmem:[%s4572_s11 + $0x48] sm:$0xff] }
 0x35c   : > { %2815 = vmatpush.msrb.mxu2 %v2650_v43  ;;  %2832 = vmatpush.msrb.mxu3 %v2669_v0  ;;  %v2928_v43 = vld [vmem:[%s4572_s11 + $0x40] sm:$0xff]  ;;  %v2927_v0 = vld [vmem:[%s4572_s11 + $0x38] sm:$0xff] }
 0x35d   : > { %2880 = vmatpush.msra.mxu0 %v2851_v60  ;;  %2899 = vmatpush.msra.mxu1 %v2868_v21  ;;  %v2926_v60 = vld [vmem:[%s4572_s11 + $0x30] sm:$0xff]  ;;  %v2923_v21 = vld [vmem:[%s4572_s11 + $0x18] sm:$0xff] }
 0x35e   : > { %2816 = vmatpush.msrb.mxu2 %v2649_v40  ;;  %2833 = vmatpush.msrb.mxu3 %v2668_v2  ;;  %v2922_v40 = vld [vmem:[%s4572_s11 + $0x10] sm:$0xff]  ;;  %v2921_v2 = vld [vmem:[%s4572_s11 + $0x8] sm:$0xff] }
 0x35f   : > { %2881 = vmatpush.msra.mxu0 %v2850_v5  ;;  %2900 = vmatpush.msra.mxu1 %v2867_v16  ;;  %v2920_v5 = vld [vmem:[%s4572_s11] sm:$0xff] }
 0x360   : > { %v2354_v62 = vpop.f32.mrf.mxu0  ;;  %2834 = vmatpush.msrb.mxu3 %v2667_v7  ;;  %2940 = vmatpush.msra.mxu2 %v2935_v30 }
 0x361   : > { %v2355_v58 = vadd.f32 %v2354_v62, %v2165_v38  ;;  %2882 = vmatpush.msra.mxu0 %v2849_v42  ;;  %v2848_v62 = vld [vmem:[#allocation11 + $0x30] sm:$0xff]  ;;  %2901 = vmatpush.msra.mxu1 %v2866_v34 }
 0x362   : > { %2835 = vmatpush.msrb.mxu3 %v2666_v56 }
 0x363   : > { %v2374_v26 = vpop.f32.mrf.mxu1  ;;  %2883 = vmatpush.msra.mxu0 %v2848_v62  ;;  %2902 = vmatpush.msra.mxu1 %v2865_v27 }
 0x364   : > { %v2375_v25 = vadd.f32 %v2374_v26, %v2355_v58  ;;  %v2847_v26 = vld [vmem:[#allocation11 + $0x28] sm:$0xff]  ;;  %2836 = vmatpush.msrb.mxu3 %v2665_v46 }
 0x365   : > { %2884 = vmatpush.msra.mxu0 %v2847_v26 }
 0x366   : > { %v2501_v13 = vmax.f32 %v2375_v25, 0.0  ;;  %v2845_v25 = vld [vmem:[#allocation11 + $0x18] sm:$0xff] }
 0x367   : > { %2885 = vmatpush.msra.mxu0 %v2846_v4 }
 0x368   : > { %v2394_v3 = vpop.f32.mrf.mxu2  ;;  %v2529_v8 = vrot.slane %v2501_v13, 4 }
 0x369   : > { %v2395_v45 = vadd.f32 %v2394_v3, %v2166_v54  ;;  %v2864_v54 = vld [vmem:[#allocation11 + $0xb0] sm:$0xff]  ;;  %2886 = vmatpush.msra.mxu0 %v2845_v25  ;;  %v2843_v3 = vld [vmem:[#allocation11 + $0x8] sm:$0xff] }
 0x36a   : > { %v2414_v9 = vpop.f32.mrf.mxu3  ;;  %v2530_v19 = vmax.f32 %v2501_v13, %v2529_v8  ;;  %2903 = vmatpush.msra.mxu1 %v2864_v54  ;;  %v2861_v13 = vld [vmem:[#allocation11 + $0x98] sm:$0xff] }
 0x36b   : > { %v2415_v37 = vadd.f32 %v2414_v9, %v2395_v45  ;;  %2887 = vmatpush.msra.mxu0 %v2844_v55 }
 0x36c   : > { %v2531_v57 = vrot.slane %v2530_v19, 2  ;;  %2904 = vmatpush.msra.mxu1 %v2863_v20 }
 0x36d   : > { %v2502_v50 = vmax.f32 %v2415_v37, 0.0  ;;  %2888 = vmatpush.msra.mxu0 %v2843_v3 }
 0x36e   : > { %v2532_v23 = vmax.f32 %v2530_v19, %v2531_v57  ;;  %2905 = vmatpush.msra.mxu1 %v2862_v48 }
 0x36f   : > { %v2535_v35 = vrot.slane %v2502_v50, 4  ;;  %2889 = vmatpush.msra.mxu0 %v2842_v12 }
 0x370   : > { %v2533_v31 = vrot.slane %v2532_v23, 1  ;;  %2906 = vmatpush.msra.mxu1 %v2861_v13  ;;  %v3266_v13 = vld [vmem:[%s4571_s10] ss:$0 sm:$0xff] }
 0x371   : > { %v2536_v11 = vmax.f32 %v2502_v50, %v2535_v35 }
 0x372   : > { %v2534_v18 = vmax.f32 %v2532_v23, %v2533_v31  ;;  %2907 = vmatpush.msra.mxu1 %v2860_v28  ;;  %v2931_v31 = vld [vmem:[%s4572_s11 + $0x58] sm:$0xff] }
 0x373   : > { %v2537_v14 = vrot.slane %v2536_v11, 2 }
 0x374   : > { %2777 = vmatmul.f32.vlgmr.msrb.gmra.mxu0 %v2534_v18  ;;  %2908 = vmatpush.msra.mxu1 %v2859_v32  ;;  %v2925_v18 = vld [vmem:[%s4572_s11 + $0x28] sm:$0xff] }
 0x375   : > { %v2538_v44 = vmax.f32 %v2536_v11, %v2537_v14  ;;  %v2930_v11 = vld [vmem:[%s4572_s11 + $0x50] sm:$0xff]  ;;  %v2924_v14 = vld [vmem:[%s4572_s11 + $0x20] sm:$0xff] }
 0x376   : > { %2909 = vmatpush.msra.mxu1 %v2858_v61 }
 0x377   : > { %v2539_v38 = vrot.slane %v2538_v44, 1 }
 0x379   : > { %v2540_v58 = vmax.f32 %v2538_v44, %v2539_v38 }
 0x37b   : > { %2797 = vmatmul.f32.vlgmr.msrb.gmra.mxu1 %v2540_v58 }
 0x37c   : > { %2890 = vmatmul.f32.vlgmr.msra.gmra.mxu0 %v4593_v10 }
 0x382   : > { %v2434_v45 = vpop.f32.mrf.mxu0 }
 0x383   : > { %v2435_v53 = vadd.f32 %v2434_v45, %v2167_v6  ;;  %2910 = vmatmul.f32.vlgmr.msra.gmra.mxu1 %v4594_v22  ;;  %v2934_v22 = vld [vmem:[%s4572_s11 + $0x70] sm:$0xff] }
 0x384   : > { %v2454_v8 = vpop.f32.mrf.mxu1  ;;  %2941 = vmatpush.msra.mxu2 %v2934_v22 }
 0x385   : > { %v2455_v9 = vadd.f32 %v2454_v8, %v2435_v53  ;;  %v3267_v53 = vld [vmem:[%s4573_s12] ss:$0 sm:$0xff] }
 0x386   : > { %2942 = vmatpush.msra.mxu2 %v2933_v36 }
 0x387   : > { %v2503_v59 = vmax.f32 %v2455_v9, 0.0 }
 0x388   : > { %2943 = vmatpush.msra.mxu2 %v2932_v63 }
 0x389   : > { %v2474_v19 = vpop.f32.mrf.mxu2  ;;  %v2541_v37 = vrot.slane %v2503_v59, 4 }
 0x38a   : > { %v2475_v39 = vadd.f32 %v2474_v19, %v2168_v41  ;;  %2944 = vmatpush.msra.mxu2 %v2931_v31 }
 0x38b   : > { %v2494_v51 = vpop.f32.mrf.mxu3  ;;  %v2542_v24 = vmax.f32 %v2503_v59, %v2541_v37 }
 0x38c   : > { %v2495_v49 = vadd.f32 %v2494_v51, %v2475_v39  ;;  %2945 = vmatpush.msra.mxu2 %v2930_v11 }
 0x38d   : > { %v2543_v57 = vrot.slane %v2542_v24, 2 }
 0x38e   : > { %v2504_v50 = vmax.f32 %v2495_v49, 0.0  ;;  %2946 = vmatpush.msra.mxu2 %v2929_v52 }
 0x38f   : > { %v2544_v29 = vmax.f32 %v2542_v24, %v2543_v57 }
 0x390   : > { %v2547_v47 = vrot.slane %v2504_v50, 4  ;;  %2947 = vmatpush.msra.mxu2 %v2928_v43 }
 0x391   : > { %v2545_v33 = vrot.slane %v2544_v29, 1 }
 0x392   : > { %v2548_v1 = vmax.f32 %v2504_v50, %v2547_v47  ;;  %2948 = vmatpush.msra.mxu2 %v2927_v0 }
 0x393   : > { %v2546_v17 = vmax.f32 %v2544_v29, %v2545_v33 }
 0x394   : > { %v2549_v23 = vrot.slane %v2548_v1, 2  ;;  %2949 = vmatpush.msra.mxu2 %v2926_v60 }
 0x395   : > { %2817 = vmatmul.f32.vlgmr.msrb.gmra.mxu2 %v2546_v17 }
 0x396   : > { %v2550_v35 = vmax.f32 %v2548_v1, %v2549_v23  ;;  %2950 = vmatpush.msra.mxu2 %v2925_v18 }
 0x398   : > { %v2551_v10 = vrot.slane %v2550_v35, 1  ;;  %2951 = vmatpush.msra.mxu2 %v2924_v14 }
 0x39a   : > { %v2552_v15 = vmax.f32 %v2550_v35, %v2551_v10  ;;  %2952 = vmatpush.msra.mxu2 %v2923_v21 }
 0x39c   : > { %2837 = vmatmul.f32.vlgmr.msrb.gmra.mxu3 %v2552_v15  ;;  %2953 = vmatpush.msra.mxu2 %v2922_v40 }
 0x39e   : > { %2954 = vmatpush.msra.mxu2 %v2921_v2 }
 0x3a0   : > { %2955 = vmatpush.msra.mxu2 %v2920_v5 }
 0x3c4   : > { %v2698_v44 = vpop.f32.mrf.mxu0 }
 0x3cb   : > { %v2718_v16 = vpop.f32.mrf.mxu1 }
 0x3cc   : > { %v2719_v42 = vadd.f32 %v2718_v16, %v2698_v44 }
 0x3d4   : > { %v2738_v7 = vpop.f32.mrf.mxu2 }
 0x3d5   : > { %v2739_v38 = vadd.f32 %v2738_v7, %v2719_v42 }
 0x3de   : > { %v2758_v34 = vpop.f32.mrf.mxu3 }
 0x3df   : > { %v2759_v62 = vadd.f32 %v2758_v34, %v2739_v38 }
 0x3f1   : > { %v2778_v56 = vpop.f32.mrf.mxu0 }
 0x3f2   : > { %v2779_v27 = vadd.f32 %v2778_v56, %v2759_v62 }
 0x3f8   : > { %v2798_v58 = vpop.f32.mrf.mxu1 }
 0x3f9   : > { %v2799_v26 = vadd.f32 %v2798_v58, %v2779_v27  ;;  %v2891_v25 = vpop.f32.mrf.mxu0 }
 0x400   : > { %v2911_v6 = vpop.f32.mrf.mxu1 }
 0x418   : > { %v2818_v46 = vpop.f32.mrf.mxu2 }
 0x419   : > { %v2819_v54 = vadd.f32 %v2818_v46, %v2799_v26 }
 0x41f   : > { %v2838_v4 = vpop.f32.mrf.mxu3 }
 0x420   : > { %v2839_v20 = vadd.f32 %v2838_v4, %v2819_v54 }
 0x422   : > { %v2841_v48 = vperm.slane %v2839_v20, 0 }
 0x424   : > { %v2892_v55 = vadd.f32 %v2891_v25, %v2841_v48 }
 0x426   : > { %v2912_v3 = vadd.f32 %v2911_v6, %v2892_v55 }
 0x428   : > { %v2918_v45 = vadd.f32 %v3266_v13, %v2912_v3 }
 0x42a   : > { %v2919_v28 = vmax.f32 %v2918_v45, 0.0 }
 0x42c   : > { %2956 = vmatmul.f32.vlgmr.msra.gmra.mxu2 %v2919_v28 }
 0x4af   : > { %v2957_v12 = vpop.f32.mrf.mxu2 }
 0x4b0   : > { %v2958_v8 = vadd.f32 %v3267_v53, %v2957_v12 }
 0x4b2   : > { %2961 = vst.msk [vmem:[%s3636_s17] sm:$0xff] %vm2960_vm0, %v2958_v8 }
 0x4b3 PF: > { %s27_s25 = sadd.s32 1, %s3445_s25  }
 0x4b4   : > { %p24_p8 = scmp.ge.s32.totalorder %s27_s25, 4  }
 0x4b6   :  { %26 = sbr.rel (!%p24_p8) target bundleno = 7 (0x7), region = 146 }
 0x4bb   :  { %2981 = vsyncpa [#allocation3], 1 }
 0x4bc   :  { %2983 = vsyncpa [#allocation3 + $0x1], 1 }
 0x4bd   :  { %2984 = vsyncpa [#allocation10], 1 }
 0x4be   :  { %2985 = vsyncpa [#allocation4], 1 }
 0x4bf   :  { %2987 = vsyncpa [#allocation4 + $0x1], 1 }
 0x4c0   :  { %2988 = vsyncpa [#allocation6], 1 }

</bundles_post_ra>
